<compile_context>
chip_gen: v6e
topology: v6e:2x2x1
jax: 0.10.0
libtpu: 0.0.40
codegen_flags: <defaults>
</compile_context>

<pallas_src>
import functools

import jax
import jax.numpy as jnp
from jax.experimental import pallas as pl
from jax.experimental.pallas import tpu as pltpu

EPS = 1e-5


def bn_relu_conv_kernel(x_ref, gamma_ref, beta_ref, w_hbm_ref, out_ref,
                        w_vmem, w_sem, *, bf16_elementwise):
    # x_ref:     (M, Cin)    f32  (pixels on sublanes, channels on lanes)
    # gamma_ref: (1, Cin)    f32
    # beta_ref:  (1, Cin)    f32
    # w_hbm_ref: (Cin, Cout) bf16  -- left in HBM, DMA'd manually below
    # out_ref:   (M, Cout)   f32

    # Kick off the weight DMA immediately so it overlaps the BN/ReLU compute.
    w_copy = pltpu.make_async_copy(w_hbm_ref, w_vmem, w_sem)
    w_copy.start()

    x = x_ref[...]                                   # (M, Cin) f32
    inv_m = 1.0 / x.shape[0]

    # One pass over x for both moments (training-mode BN, biased variance).
    s1 = jnp.sum(x, axis=0, keepdims=True)           # (1, Cin)
    s2 = jnp.sum(x * x, axis=0, keepdims=True)       # (1, Cin)
    mean = s1 * inv_m
    # Clamp: E[x^2] - mean^2 can come out slightly negative in f32 -> NaN rsqrt.
    var = jnp.maximum(s2 * inv_m - mean * mean, 0.0)

    # Fold BN affine into per-channel scale/shift, then one FMA + ReLU pass.
    scale = gamma_ref[...] * jax.lax.rsqrt(var + EPS)   # (1, Cin)
    shift = beta_ref[...] - mean * scale                # (1, Cin)

    if bf16_elementwise:
        # v6e/v7x: bf16 VALUs -> half the vregs for the dominant elementwise
        # pass; the bf16 cast needed for the MXU is already done here.
        y = jnp.maximum(
            x.astype(jnp.bfloat16) * scale.astype(jnp.bfloat16)
            + shift.astype(jnp.bfloat16),
            0.0)
    else:
        # v5e: no bf16 VPU -> keep elementwise math in f32, cast only for MXU.
        y = jnp.maximum(x * scale + shift, 0.0).astype(jnp.bfloat16)

    # Weight only needed now; its DMA was hidden behind the work above.
    w_copy.wait()

    # 1x1 conv == pixels-by-channels matmul on the MXU:
    # (M, Cin) @ (Cin, Cout) -> (M, Cout); Cout=128 -> lane-dense output store.
    out_ref[...] = jnp.dot(y, w_vmem[...], preferred_element_type=jnp.float32)


def prepare_conv_weight(w_oihw):
    """One-time prep (outside the hot path): (Cout,Cin,1,1) f32 -> (Cin,Cout) bf16."""
    cout, cin = w_oihw.shape[0], w_oihw.shape[1]
    return jnp.asarray(w_oihw.reshape(cout, cin).T, dtype=jnp.bfloat16)


@functools.partial(jax.jit, static_argnames=("bf16_elementwise",))
def bn_relu_conv1x1(x_nchw, gamma, beta, w_cin_cout_bf16, *, bf16_elementwise=True):
    """x_nchw: (N, Cin, H, W); gamma/beta: (Cin,); w_cin_cout_bf16: (Cin, Cout) bf16.
    Returns (N, Cout, H, W), matching the PyTorch NCHW output."""
    N, C, H, W = x_nchw.shape
    Cout = w_cin_cout_bf16.shape[1]
    M = N * H * W

    # Channels-last working layout (pixels x channels). BN stats span the whole
    # batch and the 1x1 conv is per-pixel, so stacking all pixels as rows is
    # correct for any N.
    x2d = jnp.transpose(x_nchw, (0, 2, 3, 1)).reshape(M, C).astype(jnp.float32)
    g2d = gamma.reshape(1, C).astype(jnp.float32)
    b2d = beta.reshape(1, C).astype(jnp.float32)

    cost = pl.CostEstimate(
        flops=2 * M * C * Cout + 6 * M * C,
        transcendentals=C,                      # per-channel rsqrt
        bytes_accessed=M * C * 4 + C * Cout * 2 + M * Cout * 4 + 2 * C * 4,
    )

    kernel = functools.partial(bn_relu_conv_kernel,
                               bf16_elementwise=bf16_elementwise)

    out2d = pl.pallas_call(
        kernel,
        out_shape=jax.ShapeDtypeStruct((M, Cout), jnp.float32),
        in_specs=[
            pl.BlockSpec(memory_space=pltpu.MemorySpace.VMEM),   # x  (auto-DMA)
            pl.BlockSpec(memory_space=pltpu.MemorySpace.VMEM),   # gamma
            pl.BlockSpec(memory_space=pltpu.MemorySpace.VMEM),   # beta
            pl.BlockSpec(memory_space=pl.ANY),                   # w  (manual DMA)
        ],
        out_specs=pl.BlockSpec(memory_space=pltpu.MemorySpace.VMEM),
        scratch_shapes=[
            pltpu.VMEM((C, Cout), jnp.bfloat16),                 # weight buffer
            pltpu.SemaphoreType.DMA(()),                         # its DMA sem
        ],
        cost_estimate=cost,
    )(x2d, g2d, b2d, w_cin_cout_bf16)

    # (M, Cout) -> NHWC -> NCHW
    return jnp.transpose(out2d.reshape(N, H, W, Cout), (0, 3, 1, 2))


def _default_bf16_elementwise():
    # bf16 elementwise pass only where the VPU supports bf16 (v6e / v7x).
    try:
        kind = jax.devices()[0].device_kind.lower()
    except Exception:
        return False
    return not any(tag in kind for tag in ("v5e", "v5 lite", "v5lite"))


def _reference(x_nchw, gamma, beta, w_oihw):
    # Pure-JAX f32 reference: training-mode BN + ReLU + 1x1 conv (NCHW).
    mean = jnp.mean(x_nchw, axis=(0, 2, 3), keepdims=True)
    var = jnp.mean((x_nchw - mean) ** 2, axis=(0, 2, 3), keepdims=True)
    y = (x_nchw - mean) * jax.lax.rsqrt(var + EPS)
    y = y * gamma[None, :, None, None] + beta[None, :, None, None]
    y = jnp.maximum(y, 0.0)
    return jnp.einsum("nchw,oc->nohw", y, w_oihw[:, :, 0, 0])


if __name__ == "__main__":
    key = jax.random.PRNGKey(0)
    kx, kg, kb, kw = jax.random.split(key, 4)

    # Shapes fixed by the module: BatchNorm2d(1792) -> Conv2d(1792, 128, 1x1)
    N, Cin, H, W = 1, 1792, 7, 7
    Cout = 128

    x = jax.random.normal(kx, (N, Cin, H, W), dtype=jnp.float32)
    gamma = 1.0 + 0.1 * jax.random.normal(kg, (Cin,), dtype=jnp.float32)
    beta = 0.1 * jax.random.normal(kb, (Cin,), dtype=jnp.float32)
    w = jax.random.normal(kw, (Cout, Cin, 1, 1), dtype=jnp.float32) * 0.02

    # One-time weight prep (cached outside the hot path in a real model).
    w_prepared = prepare_conv_weight(w)
    use_bf16 = _default_bf16_elementwise()

    out = bn_relu_conv1x1(x, gamma, beta, w_prepared, bf16_elementwise=use_bf16)
    out = jax.block_until_ready(out)

    ref = _reference(x, gamma, beta, w)
    assert out.shape == (N, Cout, H, W), out.shape
    # Tolerance accounts for bf16 MXU operands (+ bf16 normalize on v6e/v7x),
    # f32 accumulation over K=1792.
    err = float(jnp.max(jnp.abs(out - ref)))
    assert jnp.allclose(out, ref, rtol=2e-2, atol=2e-2), err

    print("KERNEL_OK")
</pallas_src>

<mosaic_0001>
module attributes {stable_mosaic.version = 11 : i64} {
  func.func @bn_relu_conv_kernel(%arg0: memref<49x1792xf32, #tpu.memory_space<vmem>>, %arg1: memref<1x1792xf32, #tpu.memory_space<vmem>>, %arg2: memref<1x1792xf32, #tpu.memory_space<vmem>>, %arg3: memref<1792x128xbf16, #tpu.memory_space<any>>, %arg4: memref<49x128xf32, #tpu.memory_space<vmem>>, %arg5: memref<1792x128xbf16, #tpu.memory_space<vmem>>, %arg6: memref<!tpu.dma_semaphore, #tpu.memory_space<semaphore_mem>>) attributes {dimension_semantics = [], scalar_prefetch = 0 : i64, scratch_operands = 2 : i64, tpu.core_type = #tpu.core_type<tc>} {
    tpu.enqueue_dma source(%arg3 : memref<1792x128xbf16, #tpu.memory_space<any>>) target(%arg5 : memref<1792x128xbf16, #tpu.memory_space<vmem>>) target_semaphore(%arg6 : memref<!tpu.dma_semaphore, #tpu.memory_space<semaphore_mem>>)
    %c0 = arith.constant 0 : index
    %c0_0 = arith.constant 0 : index
    %0 = vector.load %arg0[%c0, %c0_0] : memref<49x1792xf32, #tpu.memory_space<vmem>>, vector<49x1792xf32>
    %cst = arith.constant dense<0.000000e+00> : vector<1792xf32>
    %1 = vector.multi_reduction <add>, %0, %cst [0] : vector<49x1792xf32> to vector<1792xf32>
    %2 = vector.shape_cast %1 : vector<1792xf32> to vector<1x1792xf32>
    %3 = arith.mulf %0, %0 : vector<49x1792xf32>
    %cst_1 = arith.constant dense<0.000000e+00> : vector<1792xf32>
    %4 = vector.multi_reduction <add>, %3, %cst_1 [0] : vector<49x1792xf32> to vector<1792xf32>
    %5 = vector.shape_cast %4 : vector<1792xf32> to vector<1x1792xf32>
    %cst_2 = arith.constant 0.0204081628 : f32
    %6 = vector.broadcast %cst_2 : f32 to vector<1x1792xf32>
    %7 = arith.mulf %2, %6 : vector<1x1792xf32>
    %cst_3 = arith.constant 0.0204081628 : f32
    %8 = vector.broadcast %cst_3 : f32 to vector<1x1792xf32>
    %9 = arith.mulf %5, %8 : vector<1x1792xf32>
    %10 = arith.mulf %7, %7 : vector<1x1792xf32>
    %11 = arith.subf %9, %10 : vector<1x1792xf32>
    %cst_4 = arith.constant 0.000000e+00 : f32
    %12 = vector.broadcast %cst_4 : f32 to vector<1x1792xf32>
    %13 = arith.maximumf %11, %12 : vector<1x1792xf32>
    %c0_5 = arith.constant 0 : index
    %c0_6 = arith.constant 0 : index
    %14 = vector.load %arg1[%c0_5, %c0_6] : memref<1x1792xf32, #tpu.memory_space<vmem>>, vector<1x1792xf32>
    %cst_7 = arith.constant 9.99999974E-6 : f32
    %15 = vector.broadcast %cst_7 : f32 to vector<1x1792xf32>
    %16 = arith.addf %13, %15 : vector<1x1792xf32>
    %17 = math.rsqrt %16 : vector<1x1792xf32>
    %18 = arith.mulf %14, %17 : vector<1x1792xf32>
    %c0_8 = arith.constant 0 : index
    %c0_9 = arith.constant 0 : index
    %19 = vector.load %arg2[%c0_8, %c0_9] : memref<1x1792xf32, #tpu.memory_space<vmem>>, vector<1x1792xf32>
    %20 = arith.mulf %7, %18 : vector<1x1792xf32>
    %21 = arith.subf %19, %20 : vector<1x1792xf32>
    %22 = arith.truncf %0 : vector<49x1792xf32> to vector<49x1792xbf16>
    %23 = arith.truncf %18 : vector<1x1792xf32> to vector<1x1792xbf16>
    %24 = vector.broadcast %23 : vector<1x1792xbf16> to vector<49x1792xbf16>
    %25 = arith.mulf %22, %24 : vector<49x1792xbf16>
    %26 = arith.truncf %21 : vector<1x1792xf32> to vector<1x1792xbf16>
    %27 = vector.broadcast %26 : vector<1x1792xbf16> to vector<49x1792xbf16>
    %28 = arith.addf %25, %27 : vector<49x1792xbf16>
    %cst_10 = arith.constant 0.000000e+00 : bf16
    %29 = vector.broadcast %cst_10 : bf16 to vector<49x1792xbf16>
    %30 = arith.maximumf %28, %29 : vector<49x1792xbf16>
    tpu.wait_dma2 semaphore(%arg6 : memref<!tpu.dma_semaphore, #tpu.memory_space<semaphore_mem>>) src(%arg3 : memref<1792x128xbf16, #tpu.memory_space<any>>) dst(%arg5 : memref<1792x128xbf16, #tpu.memory_space<vmem>>)
    %c0_11 = arith.constant 0 : index
    %c0_12 = arith.constant 0 : index
    %31 = vector.load %arg5[%c0_11, %c0_12] : memref<1792x128xbf16, #tpu.memory_space<vmem>>, vector<1792x128xbf16>
    %cst_13 = arith.constant dense<0.000000e+00> : vector<49x128xf32>
    %32 = tpu.matmul %30, %31, %cst_13 {dimension_numbers = #tpu.dot_dimension_numbers<[1], [0], [0], [1], [0, 0, 1, 1], [], []>} : vector<49x1792xbf16>, vector<1792x128xbf16>, vector<49x128xf32> -> vector<49x128xf32>
    %c0_14 = arith.constant 0 : index
    %c0_15 = arith.constant 0 : index
    %33 = vector.load %arg4[%c0_14, %c0_15] : memref<49x128xf32, #tpu.memory_space<vmem>>, vector<49x128xf32>
    tpu.vector_store %arg4[%c0_14, %c0_15], %32 {strides = array<i32>} : memref<49x128xf32, #tpu.memory_space<vmem>>, vector<49x128xf32>,
    return
  }
}

</mosaic_0001>

<bundles_post_ra>
// kernel: bn_relu_conv1x1.1
= control target key start
LH: loop header
LB: loop body
LE: loop exit
PB: predicated region body
PF: predicated region fallthrough
CT: control target
= control target key end

     0   :  { %s6674_s0 = inlined_call_operand.vmem [shape: f32[49,1792], index: 0, kind: input, shape index: {}]   ;;  %s6675_s1 = inlined_call_operand.vmem [shape: f32[1,1792], index: 1, kind: input, shape index: {}]   ;;  %s6676_s2 = inlined_call_operand.vmem [shape: f32[1,1792], index: 2, kind: input, shape index: {}]   ;;  %s6677_s3 = inlined_call_operand.vmem [shape: bf16[1792,128], index: 3, kind: input, shape index: {}]   ;;  %s6678_s4 = inlined_call_operand.vmem [shape: f32[49,128], index: 4, kind: output, shape index: {}]  }
   0x1   :  { %v49_v0 = vld [vmem:[%s6677_s3] sm:$0xff]  ;;  %v51_v1 = vld [vmem:[%s6677_s3 + $0x8] sm:$0xff]  ;;  %v53_v2 = vld [vmem:[%s6677_s3 + $0x10] sm:$0xff] }
   0x2   :  { %50 = vst [vmem:[#allocation2] sm:$0xff] %v49_v0  ;;  %52 = vst [vmem:[#allocation2 + $0x8] sm:$0xff] %v51_v1  ;;  %v55_v3 = vld [vmem:[%s6677_s3 + $0x18] sm:$0xff]  ;;  %v57_v4 = vld [vmem:[%s6677_s3 + $0x20] sm:$0xff] }
   0x3   :  { %54 = vst [vmem:[#allocation2 + $0x10] sm:$0xff] %v53_v2  ;;  %v59_v5 = vld [vmem:[%s6677_s3 + $0x28] sm:$0xff]  ;;  %56 = vst [vmem:[#allocation2 + $0x18] sm:$0xff] %v55_v3  ;;  %v61_v6 = vld [vmem:[%s6677_s3 + $0x30] sm:$0xff] }
   0x4   :  { %58 = vst [vmem:[#allocation2 + $0x20] sm:$0xff] %v57_v4  ;;  %60 = vst [vmem:[#allocation2 + $0x28] sm:$0xff] %v59_v5  ;;  %v63_v7 = vld [vmem:[%s6677_s3 + $0x38] sm:$0xff]  ;;  %v65_v8 = vld [vmem:[%s6677_s3 + $0x40] sm:$0xff] }
   0x5   :  { %62 = vst [vmem:[#allocation2 + $0x30] sm:$0xff] %v61_v6  ;;  %64 = vst [vmem:[#allocation2 + $0x38] sm:$0xff] %v63_v7  ;;  %v67_v9 = vld [vmem:[%s6677_s3 + $0x48] sm:$0xff]  ;;  %v69_v10 = vld [vmem:[%s6677_s3 + $0x50] sm:$0xff] }
   0x6   :  { %66 = vst [vmem:[#allocation2 + $0x40] sm:$0xff] %v65_v8  ;;  %v71_v11 = vld [vmem:[%s6677_s3 + $0x58] sm:$0xff]  ;;  %68 = vst [vmem:[#allocation2 + $0x48] sm:$0xff] %v67_v9  ;;  %v73_v12 = vld [vmem:[%s6677_s3 + $0x60] sm:$0xff] }
   0x7   :  { %70 = vst [vmem:[#allocation2 + $0x50] sm:$0xff] %v69_v10  ;;  %72 = vst [vmem:[#allocation2 + $0x58] sm:$0xff] %v71_v11  ;;  %v75_v13 = vld [vmem:[%s6677_s3 + $0x68] sm:$0xff]  ;;  %v77_v14 = vld [vmem:[%s6677_s3 + $0x70] sm:$0xff] }
   0x8   :  { %74 = vst [vmem:[#allocation2 + $0x60] sm:$0xff] %v73_v12  ;;  %76 = vst [vmem:[#allocation2 + $0x68] sm:$0xff] %v75_v13  ;;  %v79_v15 = vld [vmem:[%s6677_s3 + $0x78] sm:$0xff]  ;;  %v81_v16 = vld [vmem:[%s6677_s3 + $0x80] sm:$0xff] }
   0x9   :  { %78 = vst [vmem:[#allocation2 + $0x70] sm:$0xff] %v77_v14  ;;  %v83_v17 = vld [vmem:[%s6677_s3 + $0x88] sm:$0xff]  ;;  %80 = vst [vmem:[#allocation2 + $0x78] sm:$0xff] %v79_v15  ;;  %v85_v18 = vld [vmem:[%s6677_s3 + $0x90] sm:$0xff] }
   0xa   :  { %82 = vst [vmem:[#allocation2 + $0x80] sm:$0xff] %v81_v16  ;;  %84 = vst [vmem:[#allocation2 + $0x88] sm:$0xff] %v83_v17  ;;  %v87_v19 = vld [vmem:[%s6677_s3 + $0x98] sm:$0xff]  ;;  %v89_v20 = vld [vmem:[%s6677_s3 + $0xa0] sm:$0xff] }
   0xb   :  { %86 = vst [vmem:[#allocation2 + $0x90] sm:$0xff] %v85_v18  ;;  %88 = vst [vmem:[#allocation2 + $0x98] sm:$0xff] %v87_v19  ;;  %v91_v21 = vld [vmem:[%s6677_s3 + $0xa8] sm:$0xff]  ;;  %v93_v22 = vld [vmem:[%s6677_s3 + $0xb0] sm:$0xff] }
   0xc   :  { %90 = vst [vmem:[#allocation2 + $0xa0] sm:$0xff] %v89_v20  ;;  %v95_v23 = vld [vmem:[%s6677_s3 + $0xb8] sm:$0xff]  ;;  %92 = vst [vmem:[#allocation2 + $0xa8] sm:$0xff] %v91_v21  ;;  %v97_v24 = vld [vmem:[%s6677_s3 + $0xc0] sm:$0xff] }
   0xd   :  { %94 = vst [vmem:[#allocation2 + $0xb0] sm:$0xff] %v93_v22  ;;  %96 = vst [vmem:[#allocation2 + $0xb8] sm:$0xff] %v95_v23  ;;  %v99_v25 = vld [vmem:[%s6677_s3 + $0xc8] sm:$0xff]  ;;  %v101_v26 = vld [vmem:[%s6677_s3 + $0xd0] sm:$0xff] }
   0xe   :  { %98 = vst [vmem:[#allocation2 + $0xc0] sm:$0xff] %v97_v24  ;;  %100 = vst [vmem:[#allocation2 + $0xc8] sm:$0xff] %v99_v25  ;;  %v103_v27 = vld [vmem:[%s6677_s3 + $0xd8] sm:$0xff]  ;;  %v105_v28 = vld [vmem:[%s6677_s3 + $0xe0] sm:$0xff] }
   0xf   :  { %102 = vst [vmem:[#allocation2 + $0xd0] sm:$0xff] %v101_v26  ;;  %v107_v29 = vld [vmem:[%s6677_s3 + $0xe8] sm:$0xff]  ;;  %104 = vst [vmem:[#allocation2 + $0xd8] sm:$0xff] %v103_v27  ;;  %v109_v30 = vld [vmem:[%s6677_s3 + $0xf0] sm:$0xff] }
  0x10   :  { %106 = vst [vmem:[#allocation2 + $0xe0] sm:$0xff] %v105_v28  ;;  %108 = vst [vmem:[#allocation2 + $0xe8] sm:$0xff] %v107_v29  ;;  %v111_v31 = vld [vmem:[%s6677_s3 + $0xf8] sm:$0xff]  ;;  %v113_v32 = vld [vmem:[%s6677_s3 + $0x100] sm:$0xff] }
  0x11   :  { %110 = vst [vmem:[#allocation2 + $0xf0] sm:$0xff] %v109_v30  ;;  %112 = vst [vmem:[#allocation2 + $0xf8] sm:$0xff] %v111_v31  ;;  %v115_v33 = vld [vmem:[%s6677_s3 + $0x108] sm:$0xff]  ;;  %v117_v34 = vld [vmem:[%s6677_s3 + $0x110] sm:$0xff] }
  0x12   :  { %114 = vst [vmem:[#allocation2 + $0x100] sm:$0xff] %v113_v32  ;;  %v119_v35 = vld [vmem:[%s6677_s3 + $0x118] sm:$0xff]  ;;  %116 = vst [vmem:[#allocation2 + $0x108] sm:$0xff] %v115_v33  ;;  %v121_v36 = vld [vmem:[%s6677_s3 + $0x120] sm:$0xff] }
  0x13   :  { %118 = vst [vmem:[#allocation2 + $0x110] sm:$0xff] %v117_v34  ;;  %120 = vst [vmem:[#allocation2 + $0x118] sm:$0xff] %v119_v35  ;;  %v123_v37 = vld [vmem:[%s6677_s3 + $0x128] sm:$0xff]  ;;  %v125_v38 = vld [vmem:[%s6677_s3 + $0x130] sm:$0xff] }
  0x14   :  { %122 = vst [vmem:[#allocation2 + $0x120] sm:$0xff] %v121_v36  ;;  %124 = vst [vmem:[#allocation2 + $0x128] sm:$0xff] %v123_v37  ;;  %v127_v39 = vld [vmem:[%s6677_s3 + $0x138] sm:$0xff]  ;;  %v129_v40 = vld [vmem:[%s6677_s3 + $0x140] sm:$0xff] }
  0x15   :  { %126 = vst [vmem:[#allocation2 + $0x130] sm:$0xff] %v125_v38  ;;  %v131_v41 = vld [vmem:[%s6677_s3 + $0x148] sm:$0xff]  ;;  %128 = vst [vmem:[#allocation2 + $0x138] sm:$0xff] %v127_v39  ;;  %v133_v42 = vld [vmem:[%s6677_s3 + $0x150] sm:$0xff] }
  0x16   :  { %130 = vst [vmem:[#allocation2 + $0x140] sm:$0xff] %v129_v40  ;;  %132 = vst [vmem:[#allocation2 + $0x148] sm:$0xff] %v131_v41  ;;  %v135_v43 = vld [vmem:[%s6677_s3 + $0x158] sm:$0xff]  ;;  %v137_v44 = vld [vmem:[%s6677_s3 + $0x160] sm:$0xff] }
  0x17   :  { %134 = vst [vmem:[#allocation2 + $0x150] sm:$0xff] %v133_v42  ;;  %136 = vst [vmem:[#allocation2 + $0x158] sm:$0xff] %v135_v43  ;;  %v139_v45 = vld [vmem:[%s6677_s3 + $0x168] sm:$0xff]  ;;  %v141_v46 = vld [vmem:[%s6677_s3 + $0x170] sm:$0xff] }
  0x18   :  { %138 = vst [vmem:[#allocation2 + $0x160] sm:$0xff] %v137_v44  ;;  %v143_v47 = vld [vmem:[%s6677_s3 + $0x178] sm:$0xff]  ;;  %140 = vst [vmem:[#allocation2 + $0x168] sm:$0xff] %v139_v45  ;;  %v145_v48 = vld [vmem:[%s6677_s3 + $0x180] sm:$0xff] }
  0x19   :  { %142 = vst [vmem:[#allocation2 + $0x170] sm:$0xff] %v141_v46  ;;  %144 = vst [vmem:[#allocation2 + $0x178] sm:$0xff] %v143_v47  ;;  %v147_v49 = vld [vmem:[%s6677_s3 + $0x188] sm:$0xff]  ;;  %v149_v50 = vld [vmem:[%s6677_s3 + $0x190] sm:$0xff] }
  0x1a   :  { %146 = vst [vmem:[#allocation2 + $0x180] sm:$0xff] %v145_v48  ;;  %148 = vst [vmem:[#allocation2 + $0x188] sm:$0xff] %v147_v49  ;;  %v151_v51 = vld [vmem:[%s6677_s3 + $0x198] sm:$0xff]  ;;  %v153_v52 = vld [vmem:[%s6677_s3 + $0x1a0] sm:$0xff] }
  0x1b   :  { %150 = vst [vmem:[#allocation2 + $0x190] sm:$0xff] %v149_v50  ;;  %v155_v53 = vld [vmem:[%s6677_s3 + $0x1a8] sm:$0xff]  ;;  %152 = vst [vmem:[#allocation2 + $0x198] sm:$0xff] %v151_v51  ;;  %v157_v54 = vld [vmem:[%s6677_s3 + $0x1b0] sm:$0xff] }
  0x1c   :  { %154 = vst [vmem:[#allocation2 + $0x1a0] sm:$0xff] %v153_v52  ;;  %156 = vst [vmem:[#allocation2 + $0x1a8] sm:$0xff] %v155_v53  ;;  %v159_v55 = vld [vmem:[%s6677_s3 + $0x1b8] sm:$0xff]  ;;  %v161_v56 = vld [vmem:[%s6677_s3 + $0x1c0] sm:$0xff] }
  0x1d   :  { %158 = vst [vmem:[#allocation2 + $0x1b0] sm:$0xff] %v157_v54  ;;  %160 = vst [vmem:[#allocation2 + $0x1b8] sm:$0xff] %v159_v55  ;;  %v163_v57 = vld [vmem:[%s6677_s3 + $0x1c8] sm:$0xff]  ;;  %v165_v58 = vld [vmem:[%s6677_s3 + $0x1d0] sm:$0xff] }
  0x1e   :  { %162 = vst [vmem:[#allocation2 + $0x1c0] sm:$0xff] %v161_v56  ;;  %v167_v59 = vld [vmem:[%s6677_s3 + $0x1d8] sm:$0xff]  ;;  %164 = vst [vmem:[#allocation2 + $0x1c8] sm:$0xff] %v163_v57  ;;  %v169_v60 = vld [vmem:[%s6677_s3 + $0x1e0] sm:$0xff] }
  0x1f   :  { %166 = vst [vmem:[#allocation2 + $0x1d0] sm:$0xff] %v165_v58  ;;  %168 = vst [vmem:[#allocation2 + $0x1d8] sm:$0xff] %v167_v59  ;;  %v171_v61 = vld [vmem:[%s6677_s3 + $0x1e8] sm:$0xff]  ;;  %v173_v62 = vld [vmem:[%s6677_s3 + $0x1f0] sm:$0xff] }
  0x20   :  { %170 = vst [vmem:[#allocation2 + $0x1e0] sm:$0xff] %v169_v60  ;;  %172 = vst [vmem:[#allocation2 + $0x1e8] sm:$0xff] %v171_v61  ;;  %v175_v63 = vld [vmem:[%s6677_s3 + $0x1f8] sm:$0xff]  ;;  %v177_v0 = vld [vmem:[%s6677_s3 + $0x200] sm:$0xff] }
  0x21   :  { %174 = vst [vmem:[#allocation2 + $0x1f0] sm:$0xff] %v173_v62  ;;  %v179_v1 = vld [vmem:[%s6677_s3 + $0x208] sm:$0xff]  ;;  %176 = vst [vmem:[#allocation2 + $0x1f8] sm:$0xff] %v175_v63  ;;  %v181_v2 = vld [vmem:[%s6677_s3 + $0x210] sm:$0xff] }
  0x22   :  { %178 = vst [vmem:[#allocation2 + $0x200] sm:$0xff] %v177_v0  ;;  %180 = vst [vmem:[#allocation2 + $0x208] sm:$0xff] %v179_v1  ;;  %v183_v3 = vld [vmem:[%s6677_s3 + $0x218] sm:$0xff]  ;;  %v185_v4 = vld [vmem:[%s6677_s3 + $0x220] sm:$0xff] }
  0x23   :  { %182 = vst [vmem:[#allocation2 + $0x210] sm:$0xff] %v181_v2  ;;  %184 = vst [vmem:[#allocation2 + $0x218] sm:$0xff] %v183_v3  ;;  %v187_v5 = vld [vmem:[%s6677_s3 + $0x228] sm:$0xff]  ;;  %v189_v6 = vld [vmem:[%s6677_s3 + $0x230] sm:$0xff] }
  0x24   :  { %186 = vst [vmem:[#allocation2 + $0x220] sm:$0xff] %v185_v4  ;;  %v191_v7 = vld [vmem:[%s6677_s3 + $0x238] sm:$0xff]  ;;  %188 = vst [vmem:[#allocation2 + $0x228] sm:$0xff] %v187_v5  ;;  %v193_v8 = vld [vmem:[%s6677_s3 + $0x240] sm:$0xff] }
  0x25   :  { %190 = vst [vmem:[#allocation2 + $0x230] sm:$0xff] %v189_v6  ;;  %192 = vst [vmem:[#allocation2 + $0x238] sm:$0xff] %v191_v7  ;;  %v195_v9 = vld [vmem:[%s6677_s3 + $0x248] sm:$0xff]  ;;  %v197_v10 = vld [vmem:[%s6677_s3 + $0x250] sm:$0xff] }
  0x26   :  { %194 = vst [vmem:[#allocation2 + $0x240] sm:$0xff] %v193_v8  ;;  %196 = vst [vmem:[#allocation2 + $0x248] sm:$0xff] %v195_v9  ;;  %v199_v11 = vld [vmem:[%s6677_s3 + $0x258] sm:$0xff]  ;;  %v201_v12 = vld [vmem:[%s6677_s3 + $0x260] sm:$0xff] }
  0x27   :  { %198 = vst [vmem:[#allocation2 + $0x250] sm:$0xff] %v197_v10  ;;  %v203_v13 = vld [vmem:[%s6677_s3 + $0x268] sm:$0xff]  ;;  %200 = vst [vmem:[#allocation2 + $0x258] sm:$0xff] %v199_v11  ;;  %v205_v14 = vld [vmem:[%s6677_s3 + $0x270] sm:$0xff] }
  0x28   :  { %202 = vst [vmem:[#allocation2 + $0x260] sm:$0xff] %v201_v12  ;;  %204 = vst [vmem:[#allocation2 + $0x268] sm:$0xff] %v203_v13  ;;  %v207_v15 = vld [vmem:[%s6677_s3 + $0x278] sm:$0xff]  ;;  %v209_v16 = vld [vmem:[%s6677_s3 + $0x280] sm:$0xff] }
  0x29   :  { %206 = vst [vmem:[#allocation2 + $0x270] sm:$0xff] %v205_v14  ;;  %208 = vst [vmem:[#allocation2 + $0x278] sm:$0xff] %v207_v15  ;;  %v211_v17 = vld [vmem:[%s6677_s3 + $0x288] sm:$0xff]  ;;  %v213_v18 = vld [vmem:[%s6677_s3 + $0x290] sm:$0xff] }
  0x2a   :  { %210 = vst [vmem:[#allocation2 + $0x280] sm:$0xff] %v209_v16  ;;  %v215_v19 = vld [vmem:[%s6677_s3 + $0x298] sm:$0xff]  ;;  %212 = vst [vmem:[#allocation2 + $0x288] sm:$0xff] %v211_v17  ;;  %v217_v20 = vld [vmem:[%s6677_s3 + $0x2a0] sm:$0xff] }
  0x2b   :  { %214 = vst [vmem:[#allocation2 + $0x290] sm:$0xff] %v213_v18  ;;  %216 = vst [vmem:[#allocation2 + $0x298] sm:$0xff] %v215_v19  ;;  %v219_v21 = vld [vmem:[%s6677_s3 + $0x2a8] sm:$0xff]  ;;  %v221_v22 = vld [vmem:[%s6677_s3 + $0x2b0] sm:$0xff] }
  0x2c   :  { %218 = vst [vmem:[#allocation2 + $0x2a0] sm:$0xff] %v217_v20  ;;  %220 = vst [vmem:[#allocation2 + $0x2a8] sm:$0xff] %v219_v21  ;;  %v223_v23 = vld [vmem:[%s6677_s3 + $0x2b8] sm:$0xff]  ;;  %v225_v24 = vld [vmem:[%s6677_s3 + $0x2c0] sm:$0xff] }
  0x2d   :  { %222 = vst [vmem:[#allocation2 + $0x2b0] sm:$0xff] %v221_v22  ;;  %v227_v25 = vld [vmem:[%s6677_s3 + $0x2c8] sm:$0xff]  ;;  %224 = vst [vmem:[#allocation2 + $0x2b8] sm:$0xff] %v223_v23  ;;  %v229_v26 = vld [vmem:[%s6677_s3 + $0x2d0] sm:$0xff] }
  0x2e   :  { %226 = vst [vmem:[#allocation2 + $0x2c0] sm:$0xff] %v225_v24  ;;  %228 = vst [vmem:[#allocation2 + $0x2c8] sm:$0xff] %v227_v25  ;;  %v231_v27 = vld [vmem:[%s6677_s3 + $0x2d8] sm:$0xff]  ;;  %v233_v28 = vld [vmem:[%s6677_s3 + $0x2e0] sm:$0xff] }
  0x2f   :  { %230 = vst [vmem:[#allocation2 + $0x2d0] sm:$0xff] %v229_v26  ;;  %232 = vst [vmem:[#allocation2 + $0x2d8] sm:$0xff] %v231_v27  ;;  %v235_v29 = vld [vmem:[%s6677_s3 + $0x2e8] sm:$0xff]  ;;  %v237_v30 = vld [vmem:[%s6677_s3 + $0x2f0] sm:$0xff] }
  0x30   :  { %234 = vst [vmem:[#allocation2 + $0x2e0] sm:$0xff] %v233_v28  ;;  %v239_v31 = vld [vmem:[%s6677_s3 + $0x2f8] sm:$0xff]  ;;  %236 = vst [vmem:[#allocation2 + $0x2e8] sm:$0xff] %v235_v29  ;;  %v241_v32 = vld [vmem:[%s6677_s3 + $0x300] sm:$0xff] }
  0x31   :  { %238 = vst [vmem:[#allocation2 + $0x2f0] sm:$0xff] %v237_v30  ;;  %240 = vst [vmem:[#allocation2 + $0x2f8] sm:$0xff] %v239_v31  ;;  %v243_v33 = vld [vmem:[%s6677_s3 + $0x308] sm:$0xff]  ;;  %v245_v34 = vld [vmem:[%s6677_s3 + $0x310] sm:$0xff] }
  0x32   :  { %242 = vst [vmem:[#allocation2 + $0x300] sm:$0xff] %v241_v32  ;;  %244 = vst [vmem:[#allocation2 + $0x308] sm:$0xff] %v243_v33  ;;  %v247_v35 = vld [vmem:[%s6677_s3 + $0x318] sm:$0xff]  ;;  %v249_v36 = vld [vmem:[%s6677_s3 + $0x320] sm:$0xff] }
  0x33   :  { %246 = vst [vmem:[#allocation2 + $0x310] sm:$0xff] %v245_v34  ;;  %v251_v37 = vld [vmem:[%s6677_s3 + $0x328] sm:$0xff]  ;;  %248 = vst [vmem:[#allocation2 + $0x318] sm:$0xff] %v247_v35  ;;  %v253_v38 = vld [vmem:[%s6677_s3 + $0x330] sm:$0xff] }
  0x34   :  { %250 = vst [vmem:[#allocation2 + $0x320] sm:$0xff] %v249_v36  ;;  %252 = vst [vmem:[#allocation2 + $0x328] sm:$0xff] %v251_v37  ;;  %v255_v39 = vld [vmem:[%s6677_s3 + $0x338] sm:$0xff]  ;;  %v257_v40 = vld [vmem:[%s6677_s3 + $0x340] sm:$0xff] }
  0x35   :  { %254 = vst [vmem:[#allocation2 + $0x330] sm:$0xff] %v253_v38  ;;  %256 = vst [vmem:[#allocation2 + $0x338] sm:$0xff] %v255_v39  ;;  %v259_v41 = vld [vmem:[%s6677_s3 + $0x348] sm:$0xff]  ;;  %v261_v42 = vld [vmem:[%s6677_s3 + $0x350] sm:$0xff] }
  0x36   :  { %258 = vst [vmem:[#allocation2 + $0x340] sm:$0xff] %v257_v40  ;;  %v263_v43 = vld [vmem:[%s6677_s3 + $0x358] sm:$0xff]  ;;  %260 = vst [vmem:[#allocation2 + $0x348] sm:$0xff] %v259_v41  ;;  %v265_v44 = vld [vmem:[%s6677_s3 + $0x360] sm:$0xff] }
  0x37   :  { %262 = vst [vmem:[#allocation2 + $0x350] sm:$0xff] %v261_v42  ;;  %264 = vst [vmem:[#allocation2 + $0x358] sm:$0xff] %v263_v43  ;;  %v267_v45 = vld [vmem:[%s6677_s3 + $0x368] sm:$0xff]  ;;  %v269_v46 = vld [vmem:[%s6677_s3 + $0x370] sm:$0xff] }
  0x38   :  { %266 = vst [vmem:[#allocation2 + $0x360] sm:$0xff] %v265_v44  ;;  %268 = vst [vmem:[#allocation2 + $0x368] sm:$0xff] %v267_v45  ;;  %v271_v47 = vld [vmem:[%s6677_s3 + $0x378] sm:$0xff] }
  0x39   :  { %270 = vst [vmem:[#allocation2 + $0x370] sm:$0xff] %v269_v46  ;;  %272 = vst [vmem:[#allocation2 + $0x378] sm:$0xff] %v271_v47 }
  0x3a   :  { %280 = vsyncadd [#allocation3], 14336  ;;  %v281_v48 = vld [vmem:[%s6674_s0] sm:$0xff]  ;;  %v282_v49 = vld [vmem:[%s6674_s0 + $0x8] sm:$0xff]  ;;  %vm384_vm0 = vcmask 1040384  }
  0x3b   :  { %v283_v50 = vld [vmem:[%s6674_s0 + $0x10] sm:$0xff]  ;;  %v284_v51 = vld [vmem:[%s6674_s0 + $0x18] sm:$0xff]  ;;  %v285_v52 = vld [vmem:[%s6674_s0 + $0x20] sm:$0xff]  ;;  %v4194_v0 = vmul.f32 %v281_v48, %v281_v48  ;;  %v4196_v1 = vmul.f32 %v282_v49, %v282_v49 }
  0x3c   :  { %v286_v53 = vld [vmem:[%s6674_s0 + $0x28] sm:$0xff]  ;;  %v287_v54 = vld [vmem:[%s6674_s0 + $0x30] sm:$0xff]  ;;  %v288_v55 = vld [vmem:[%s6674_s0 + $0x38] sm:$0xff]  ;;  %v4198_v2 = vmul.f32 %v283_v50, %v283_v50  ;;  %v4200_v3 = vmul.f32 %v284_v51, %v284_v51  ;;  %v4211_v7 = vmul.f32 %v285_v52, %v285_v52 }
  0x3d   :  { %v289_v56 = vld [vmem:[%s6674_s0 + $0x40] sm:$0xff]  ;;  %v290_v57 = vld [vmem:[%s6674_s0 + $0x48] sm:$0xff]  ;;  %v291_v58 = vld [vmem:[%s6674_s0 + $0x50] sm:$0xff]  ;;  %6819 = vst [vmem:[#allocation6_spill] sm:$0xff] %v4194_v0  ;;  %v4213_v8 = vmul.f32 %v286_v53, %v286_v53  ;;  %v4215_v9 = vmul.f32 %v287_v54, %v287_v54  ;;  %v4217_v10 = vmul.f32 %v288_v55, %v288_v55 }
  0x3e   :  { %v292_v59 = vld [vmem:[%s6674_s0 + $0x58] sm:$0xff]  ;;  %v293_v60 = vld [vmem:[%s6674_s0 + $0x60] sm:$0xff]  ;;  %v294_v61 = vld [vmem:[%s6674_s0 + $0x68] sm:$0xff]  ;;  %6820 = vst [vmem:[#allocation7_spill] sm:$0xff] %v4196_v1  ;;  %v4230_v14 = vmul.f32 %v289_v56, %v289_v56  ;;  %v4232_v15 = vmul.f32 %v290_v57, %v290_v57  ;;  %v4234_v16 = vmul.f32 %v291_v58, %v291_v58 }
  0x3f   :  { %v295_v62 = vld [vmem:[%s6674_s0 + $0x70] sm:$0xff]  ;;  %v296_v63 = vld [vmem:[%s6674_s0 + $0x78] sm:$0xff]  ;;  %6821 = vst [vmem:[#allocation8_spill] sm:$0xff] %v4198_v2  ;;  %6822 = vst [vmem:[#allocation9_spill] sm:$0xff] %v4200_v3  ;;  %v4236_v17 = vmul.f32 %v292_v59, %v292_v59  ;;  %v4253_v23 = vmul.f32 %v293_v60, %v293_v60  ;;  %v4255_v24 = vmul.f32 %v294_v61, %v294_v61 }
  0x40   :  { %v297_v4 = vld [vmem:[%s6674_s0 + $0x80] sm:$0xff]  ;;  %v298_v5 = vld [vmem:[%s6674_s0 + $0x88] sm:$0xff]  ;;  %v299_v6 = vld [vmem:[%s6674_s0 + $0x90] sm:$0xff]  ;;  %6823 = vst [vmem:[#allocation10_spill] sm:$0xff] %v4211_v7  ;;  %v379_v21 = vadd.f32 %v295_v62, %v281_v48  ;;  %v393_v22 = vadd.f32 %v296_v63, %v282_v49  ;;  %v4272_v31 = vmul.f32 %v295_v62, %v295_v62  ;;  %v4290_v38 = vmul.f32 %v296_v63, %v296_v63 }
  0x41   :  { %6824 = vst [vmem:[#allocation11_spill] sm:$0xff] %v4213_v8  ;;  %6825 = vst [vmem:[#allocation12_spill] sm:$0xff] %v4215_v9  ;;  %v300_v11 = vld [vmem:[%s6674_s0 + $0x98] sm:$0xff]  ;;  %v301_v12 = vld [vmem:[%s6674_s0 + $0xa0] sm:$0xff]  ;;  %v406_v28 = vadd.f32 %v297_v4, %v283_v50  ;;  %v419_v29 = vadd.f32 %v298_v5, %v284_v51  ;;  %v432_v30 = vadd.f32 %v299_v6, %v285_v52 }
  0x42   :  { %6826 = vst [vmem:[#allocation13_spill] sm:$0xff] %v4217_v10  ;;  %v4228_v13 = vld [vmem:[%s6674_s0 + $0xa8] sm:$0xff]  ;;  %6827 = vst [vmem:[#allocation14_spill] sm:$0xff] %v4230_v14  ;;  %v4241_v18 = vld [vmem:[%s6674_s0 + $0xb0] sm:$0xff]  ;;  %v445_v35 = vadd.f32 %v300_v11, %v286_v53  ;;  %v458_v36 = vadd.f32 %v301_v12, %v287_v54  ;;  %v4310_v45 = vmul.f32 %v297_v4, %v297_v4 }
  0x43   :  { %6828 = vst [vmem:[#allocation15_spill] sm:$0xff] %v4232_v15  ;;  %6829 = vst [vmem:[#allocation16_spill] sm:$0xff] %v4234_v16  ;;  %v4246_v19 = vld [vmem:[%s6674_s0 + $0xb8] sm:$0xff]  ;;  %v4251_v20 = vld [vmem:[%s6674_s0 + $0xc0] sm:$0xff]  ;;  %v471_v37 = vadd.f32 %v4228_v13, %v288_v55  ;;  %v484_v42 = vadd.f32 %v4241_v18, %v289_v56  ;;  %v4330_v52 = vmul.f32 %v298_v5, %v298_v5 }
  0x44   :  { %6830 = vst [vmem:[#allocation17_spill] sm:$0xff] %v4236_v17  ;;  %6831 = vst [vmem:[#allocation18_spill] sm:$0xff] %v4253_v23  ;;  %v4260_v25 = vld [vmem:[%s6674_s0 + $0xc8] sm:$0xff]  ;;  %v4265_v26 = vld [vmem:[%s6674_s0 + $0xd0] sm:$0xff]  ;;  %v497_v43 = vadd.f32 %v4246_v19, %v290_v57  ;;  %v510_v44 = vadd.f32 %v4251_v20, %v291_v58  ;;  %v4412_v17 = vmul.f32 %v4228_v13, %v4228_v13 }
  0x45   :  { %6832 = vst [vmem:[#allocation19_spill] sm:$0xff] %v4255_v24  ;;  %v4270_v27 = vld [vmem:[%s6674_s0 + $0xe0] sm:$0xff]  ;;  %6833 = vst [vmem:[#allocation20_spill] sm:$0xff] %v4272_v31  ;;  %v4277_v32 = vld [vmem:[%s6674_s0 + $0xd8] sm:$0xff]  ;;  %v523_v50 = vadd.f32 %v4260_v25, %v292_v59  ;;  %v536_v51 = vadd.f32 %v4265_v26, %v293_v60  ;;  %v4350_v59 = vmul.f32 %v299_v6, %v299_v6 }
  0x46   :  { %v4282_v33 = vld [vmem:[%s6674_s0 + $0xe8] sm:$0xff]  ;;  %v4287_v34 = vld [vmem:[%s6674_s0 + $0xf0] sm:$0xff]  ;;  %6834 = vst [vmem:[#allocation21_spill] sm:$0xff] %v4290_v38  ;;  %v4295_v39 = vld [vmem:[%s6674_s0 + $0xf8] sm:$0xff]  ;;  %v380_v49 = vadd.f32 %v379_v21, %v4270_v27  ;;  %v549_v58 = vadd.f32 %v4277_v32, %v294_v61  ;;  %v4370_v6 = vmul.f32 %v300_v11, %v300_v11  ;;  %v4434_v14 = vmul.f32 %v4241_v18, %v4241_v18 }
  0x47   :  { %v4300_v40 = vld [vmem:[%s6674_s0 + $0x100] sm:$0xff]  ;;  %v4305_v41 = vld [vmem:[%s6674_s0 + $0x108] sm:$0xff]  ;;  %6835 = vst [vmem:[#allocation22_spill] sm:$0xff] %v4310_v45  ;;  %v4315_v46 = vld [vmem:[%s6674_s0 + $0x110] sm:$0xff]  ;;  %v394_v56 = vadd.f32 %v393_v22, %v4282_v33  ;;  %v407_v57 = vadd.f32 %v406_v28, %v4287_v34  ;;  %v420_v4 = vadd.f32 %v419_v29, %v4295_v39 }
  0x48   :  { %v4320_v47 = vld [vmem:[%s6674_s0 + $0x118] sm:$0xff]  ;;  %v4325_v48 = vld [vmem:[%s6674_s0 + $0x120] sm:$0xff]  ;;  %6836 = vst [vmem:[#allocation23_spill] sm:$0xff] %v4330_v52  ;;  %v4335_v53 = vld [vmem:[%s6674_s0 + $0x128] sm:$0xff]  ;;  %v433_v61 = vadd.f32 %v432_v30, %v4300_v40  ;;  %v446_v5 = vadd.f32 %v445_v35, %v4305_v41  ;;  %v459_v29 = vadd.f32 %v458_v36, %v4315_v46  ;;  %v4390_v35 = vmul.f32 %v301_v12, %v301_v12 }
  0x49   :  { %v4340_v54 = vld [vmem:[%s6674_s0 + $0x130] sm:$0xff]  ;;  %v4345_v55 = vld [vmem:[%s6674_s0 + $0x138] sm:$0xff]  ;;  %6837 = vst [vmem:[#allocation24_spill] sm:$0xff] %v4350_v59  ;;  %v4355_v60 = vld [vmem:[%s6674_s0 + $0x140] sm:$0xff]  ;;  %v472_v11 = vadd.f32 %v471_v37, %v4320_v47  ;;  %v485_v30 = vadd.f32 %v484_v42, %v4325_v48  ;;  %v498_v37 = vadd.f32 %v497_v43, %v4335_v53 }
  0x4a   :  { %v4360_v62 = vld [vmem:[%s6674_s0 + $0x150] sm:$0xff]  ;;  %v4365_v63 = vld [vmem:[%s6674_s0 + $0x158] sm:$0xff]  ;;  %6838 = vst [vmem:[#allocation25_spill] sm:$0xff] %v4370_v6  ;;  %v4375_v21 = vld [vmem:[%s6674_s0 + $0x148] sm:$0xff]  ;;  %v511_v12 = vadd.f32 %v510_v44, %v4340_v54  ;;  %v524_v42 = vadd.f32 %v523_v50, %v4345_v55  ;;  %v537_v50 = vadd.f32 %v536_v51, %v4355_v60 }
  0x4b   :  { %v4380_v22 = vld [vmem:[%s6674_s0 + $0x160] sm:$0xff]  ;;  %v4385_v28 = vld [vmem:[%s6674_s0 + $0x168] sm:$0xff]  ;;  %6839 = vst [vmem:[#allocation26_spill] sm:$0xff] %v4390_v35  ;;  %v4395_v24 = vld [vmem:[%s6674_s0 + $0x170] sm:$0xff]  ;;  %v381_v44 = vadd.f32 %v380_v49, %v4360_v62  ;;  %v395_v13 = vadd.f32 %v394_v56, %v4365_v63  ;;  %v550_v56 = vadd.f32 %v549_v58, %v4375_v21 }
  0x4c   :  { %v4400_v23 = vld [vmem:[%s6674_s0 + $0x178] sm:$0xff]  ;;  %v4405_v36 = vld [vmem:[%s6674_s0 + $0x180] sm:$0xff]  ;;  %6840 = vst [vmem:[#allocation27_spill] sm:$0xff] %v4412_v17  ;;  %v4417_v16 = vld [vmem:[%s6674_s0 + $0x188] sm:$0xff]  ;;  %v408_v51 = vadd.f32 %v407_v57, %v4380_v22  ;;  %v421_v18 = vadd.f32 %v420_v4, %v4385_v28  ;;  %v434_v58 = vadd.f32 %v433_v61, %v4395_v24 }
  0x4d   :  { %v4422_v15 = vld [vmem:[%s6674_s0 + $0x190] sm:$0xff]  ;;  %v4427_v43 = vld [vmem:[%s6674_s0 + $0x198] sm:$0xff]  ;;  %6841 = vst [vmem:[#allocation28_spill] sm:$0xff] %v4434_v14  ;;  %v4439_v17 = vld [vmem:[%s6674_s0 + $0x1a0] sm:$0xff]  ;;  %v4456_v14 = vmul.f32 %v4246_v19, %v4246_v19  ;;  %v447_v19 = vadd.f32 %v446_v5, %v4400_v23  ;;  %v460_v4 = vadd.f32 %v459_v29, %v4405_v36  ;;  %v473_v5 = vadd.f32 %v472_v11, %v4417_v16 }
  0x4e   :  { %v4444_v10 = vld [vmem:[%s6674_s0 + $0x1a8] sm:$0xff]  ;;  %v4449_v49 = vld [vmem:[%s6674_s0 + $0x1b0] sm:$0xff]  ;;  %v4461_v35 = vld [vmem:[%s6674_s0 + $0x1b8] sm:$0xff]  ;;  %v499_v29 = vadd.f32 %v498_v37, %v4427_v43 }
  0x4f   :  { %6842 = vst [vmem:[#allocation29_spill] sm:$0xff] %v4456_v14  ;;  %v4466_v9 = vld [vmem:[%s6674_s0 + $0x1c0] sm:$0xff]  ;;  %v4471_v57 = vld [vmem:[%s6674_s0 + $0x1c8] sm:$0xff]  ;;  %v4478_v14 = vmul.f32 %v4251_v20, %v4251_v20  ;;  %v4483_v6 = vld [vmem:[%s6674_s0 + $0x1d0] sm:$0xff]  ;;  %v486_v20 = vadd.f32 %v485_v30, %v4422_v15  ;;  %v512_v30 = vadd.f32 %v511_v12, %v4439_v17  ;;  %v538_v37 = vadd.f32 %v537_v50, %v4449_v49 }
  0x50   :  { %v4488_v8 = vld [vmem:[%s6674_s0 + $0x1d8] sm:$0xff]  ;;  %v4493_v61 = vld [vmem:[%s6674_s0 + $0x1e0] sm:$0xff]  ;;  %v4505_v59 = vld [vmem:[%s6674_s0 + $0x1e8] sm:$0xff]  ;;  %v551_v50 = vadd.f32 %v550_v56, %v4461_v35 }
  0x51   :  { %6843 = vst [vmem:[#allocation30_spill] sm:$0xff] %v4478_v14  ;;  %v4500_v14 = vmul.f32 %v4260_v25, %v4260_v25  ;;  %v4510_v7 = vld [vmem:[%s6674_s0 + $0x1f0] sm:$0xff]  ;;  %v4515_v11 = vld [vmem:[%s6674_s0 + $0x1f8] sm:$0xff]  ;;  %v525_v25 = vadd.f32 %v524_v42, %v4444_v10  ;;  %v4527_v52 = vld [vmem:[%s6674_s0 + $0x200] sm:$0xff]  ;;  %v382_v42 = vadd.f32 %v381_v44, %v4466_v9  ;;  %v435_v56 = vadd.f32 %v434_v58, %v4493_v61 }
  0x52   :  { %6845 = vst [vmem:[#allocation32_spill] sm:$0xff] %v4510_v7  ;;  %6846 = vst [vmem:[#allocation33_spill] sm:$0xff] %v4515_v11  ;;  %v4532_v3 = vld [vmem:[%s6674_s0 + $0x208] sm:$0xff]  ;;  %v4537_v12 = vld [vmem:[%s6674_s0 + $0x210] sm:$0xff]  ;;  %v474_v58 = vadd.f32 %v473_v5, %v4515_v11 }
  0x53   :  { %6844 = vst [vmem:[#allocation31_spill] sm:$0xff] %v4500_v14  ;;  %v4522_v14 = vmul.f32 %v4265_v26, %v4265_v26  ;;  %6848 = vst [vmem:[#allocation35_spill] sm:$0xff] %v4532_v3  ;;  %v396_v26 = vadd.f32 %v395_v13, %v4471_v57  ;;  %v4549_v45 = vld [vmem:[%s6674_s0 + $0x218] sm:$0xff]  ;;  %v4554_v2 = vld [vmem:[%s6674_s0 + $0x220] sm:$0xff]  ;;  %v409_v13 = vadd.f32 %v408_v51, %v4483_v6 }
  0x54   :  { %6849 = vst [vmem:[#allocation36_spill] sm:$0xff] %v4537_v12  ;;  %6851 = vst [vmem:[#allocation38_spill] sm:$0xff] %v4554_v2  ;;  %v4559_v44 = vld [vmem:[%s6674_s0 + $0x230] sm:$0xff]  ;;  %v4571_v38 = vld [vmem:[%s6674_s0 + $0x228] sm:$0xff]  ;;  %v513_v5 = vadd.f32 %v512_v30, %v4537_v12  ;;  %v539_v30 = vadd.f32 %v538_v37, %v4554_v2 }
  0x55   :  { %6847 = vst [vmem:[#allocation34_spill] sm:$0xff] %v4522_v14  ;;  %v4544_v14 = vmul.f32 %v4277_v32, %v4277_v32  ;;  %6852 = vst [vmem:[#allocation39_spill] sm:$0xff] %v4559_v44  ;;  %v422_v32 = vadd.f32 %v421_v18, %v4488_v8  ;;  %v4576_v1 = vld [vmem:[%s6674_s0 + $0x238] sm:$0xff]  ;;  %v4581_v51 = vld [vmem:[%s6674_s0 + $0x240] sm:$0xff]  ;;  %v448_v18 = vadd.f32 %v447_v19, %v4505_v59 }
  0x56   :  { %6854 = vst [vmem:[#allocation41_spill] sm:$0xff] %v4571_v38  ;;  %6855 = vst [vmem:[#allocation42_spill] sm:$0xff] %v4576_v1  ;;  %v4593_v31 = vld [vmem:[%s6674_s0 + $0x248] sm:$0xff]  ;;  %v4598_v0 = vld [vmem:[%s6674_s0 + $0x250] sm:$0xff]  ;;  %v397_v37 = vadd.f32 %v396_v26, %v4576_v1 }
  0x57   :  { %6850 = vst [vmem:[#allocation37_spill] sm:$0xff] %v4544_v14  ;;  %v4566_v14 = vmul.f32 %v4270_v27, %v4270_v27  ;;  %6856 = vst [vmem:[#allocation43_spill] sm:$0xff] %v4581_v51  ;;  %v461_v27 = vadd.f32 %v460_v4, %v4510_v7  ;;  %v4603_v19 = vld [vmem:[%s6674_s0 + $0x258] sm:$0xff]  ;;  %v487_v4 = vadd.f32 %v486_v20, %v4527_v52  ;;  %v4615_v11 = vld [vmem:[%s6674_s0 + $0x260] sm:$0xff] }
  0x58   :  { %6858 = vst [vmem:[#allocation45_spill] sm:$0xff] %v4593_v31  ;;  %6859 = vst [vmem:[#allocation46_spill] sm:$0xff] %v4598_v0  ;;  %v4620_v7 = vld [vmem:[%s6674_s0 + $0x268] sm:$0xff]  ;;  %v4625_v20 = vld [vmem:[%s6674_s0 + $0x270] sm:$0xff]  ;;  %v423_v26 = vadd.f32 %v422_v32, %v4593_v31  ;;  %v4685_v32 = vmul.f32 %v4315_v46, %v4315_v46 }
  0x59   :  { %6853 = vst [vmem:[#allocation40_spill] sm:$0xff] %v4566_v14  ;;  %v4588_v14 = vmul.f32 %v4282_v33, %v4282_v33  ;;  %6860 = vst [vmem:[#allocation47_spill] sm:$0xff] %v4603_v19  ;;  %v500_v33 = vadd.f32 %v499_v29, %v4532_v3  ;;  %v383_v29 = vadd.f32 %v382_v42, %v4559_v44  ;;  %v4637_v12 = vld [vmem:[%s6674_s0 + $0x278] sm:$0xff]  ;;  %v4642_v3 = vld [vmem:[%s6674_s0 + $0x280] sm:$0xff] }
  0x5a   :  { %6862 = vst [vmem:[#allocation49_spill] sm:$0xff] %v4615_v11  ;;  %6863 = vst [vmem:[#allocation50_spill] sm:$0xff] %v4620_v7  ;;  %v552_v42 = vadd.f32 %v551_v50, %v4571_v38  ;;  %v4659_v44 = vld [vmem:[%s6674_s0 + $0x290] sm:$0xff]  ;;  %v4664_v2 = vld [vmem:[%s6674_s0 + $0x298] sm:$0xff]  ;;  %v449_v50 = vadd.f32 %v448_v18, %v4603_v19  ;;  %v475_v1 = vadd.f32 %v474_v58, %v4620_v7 }
  0x5b   :  { %6857 = vst [vmem:[#allocation44_spill] sm:$0xff] %v4588_v14  ;;  %v4610_v14 = vmul.f32 %v4287_v34, %v4287_v34  ;;  %6864 = vst [vmem:[#allocation51_spill] sm:$0xff] %v4625_v20  ;;  %v526_v34 = vadd.f32 %v525_v25, %v4549_v45  ;;  %v4647_v25 = vld [vmem:[%s6674_s0 + $0x288] sm:$0xff]  ;;  %v4681_v38 = vadd.f32 %v487_v4, %v4625_v20  ;;  %v4700_v18 = vld [vmem:[%s6674_s0 + $0x2b8] sm:$0x1] }
  0x5c   :  { %6866 = vst [vmem:[#allocation53_spill] sm:$0xff] %v4637_v12  ;;  %6867 = vst [vmem:[#allocation54_spill] sm:$0xff] %v4642_v3  ;;  %v4706_v46 = vadd.f32 %v513_v5, %v4642_v3  ;;  %v4713_v4 = vmul.f32 %v4320_v47, %v4320_v47  ;;  %v4728_v5 = vmul.f32 %v4325_v48, %v4325_v48  ;;  %v4737_v47 = vld [vmem:[%s6674_s0 + $0x2c8] sm:$0x1] }
  0x5d   :  { %6861 = vst [vmem:[#allocation48_spill] sm:$0xff] %v4610_v14  ;;  %v4632_v14 = vmul.f32 %v4295_v39, %v4295_v39  ;;  %6868 = vst [vmem:[#allocation55_spill] sm:$0xff] %v4647_v25  ;;  %v410_v39 = vadd.f32 %v409_v13, %v4581_v51  ;;  %v436_v13 = vadd.f32 %v435_v56, %v4598_v0  ;;  %v4695_v56 = vld [vmem:[%s6674_s0 + $0x2b0] sm:$0x1] }
  0x5e   :  { %6870 = vst [vmem:[#allocation57_spill] sm:$0xff] %v4659_v44  ;;  %6871 = vst [vmem:[#allocation58_spill] sm:$0xff] %v4664_v2  ;;  %v462_v51 = vadd.f32 %v461_v27, %v4615_v11  ;;  %v4703_v27 = vadd.f32 %v500_v33, %v4637_v12  ;;  %v4709_v58 = vadd.f32 %v526_v34, %v4647_v25 }
  0x5f   :  { %6865 = vst [vmem:[#allocation52_spill] sm:$0xff] %v4632_v14  ;;  %v4654_v14 = vmul.f32 %v4300_v40, %v4300_v40  ;;  %v4671_v40 = vmul.f32 %v4305_v41, %v4305_v41  ;;  %6874 = vst [vmem:[#allocation61_spill] sm:$0xff] %v4685_v32  ;;  %v4690_v41 = vld [vmem:[%s6674_s0 + $0x2a8] sm:$0x1]  ;;  %v4718_v32 = vld [vmem:[%s6674_s0 + $0x2c0] sm:$0x1]  ;;  %v4724_v33 = vadd.f32 %v552_v42, %v4664_v2 }
  0x60   :  { %6875 = vst [vmem:[#allocation62_spill] sm:$0xff] %v4690_v41  ;;  %6876 = vst [vmem:[#allocation63_spill] sm:$0xff] %v4695_v56  ;;  %v4732_v34 = vmul.f32 %v4335_v53, %v4335_v53  ;;  %v4747_v42 = vld [vmem:[%s6674_s0 + $0x2d8] sm:$0x1]  ;;  %v4751_v48 = vmul.f32 %v4340_v54, %v4340_v54  ;;  %v4755_v53 = vmul.f32 %v4345_v55, %v4345_v55  ;;  %v411_v54 = vsel %vm384_vm0, %v4695_v56, 0.0 }
  0x61   :  { %6869 = vst [vmem:[#allocation56_spill] sm:$0xff] %v4654_v14  ;;  %6872 = vst [vmem:[#allocation59_spill] sm:$0xff] %v4671_v40  ;;  %v4676_v14 = vld [vmem:[%s6674_s0 + $0x2a0] sm:$0x1]  ;;  %v4721_v40 = vadd.f32 %v539_v30, %v4659_v44  ;;  %v4742_v30 = vld [vmem:[%s6674_s0 + $0x2d0] sm:$0x1] }
  0x62   :  { %6873 = vst [vmem:[#allocation60_spill] sm:$0xff] %v4676_v14  ;;  %6877 = vst [vmem:[#allocation64_spill] sm:$0xff] %v4700_v18  ;;  %v385_v2 = vsel %vm384_vm0, %v4676_v14, 0.0  ;;  %v398_v44 = vsel %vm384_vm0, %v4690_v41, 0.0  ;;  %v424_v55 = vsel %vm384_vm0, %v4700_v18, 0.0  ;;  %v463_v25 = vsel %vm384_vm0, %v4742_v30, 0.0 }
  0x63   :  { %6878 = vst [vmem:[#allocation65_spill] sm:$0xff] %v4713_v4  ;;  %6879 = vst [vmem:[#allocation66_spill] sm:$0xff] %v4718_v32  ;;  %v476_v3 = vsel %vm384_vm0, %v4747_v42, 0.0 }
  0x64   :  { %6880 = vst [vmem:[#allocation67_spill] sm:$0xff] %v4728_v5  ;;  %6881 = vst [vmem:[#allocation68_spill] sm:$0xff] %v4732_v34  ;;  %v4759_v34 = vmul.f32 %v4355_v60, %v4355_v60  ;;  %v4763_v5 = vmul.f32 %v4375_v21, %v4375_v21  ;;  %v412_v60 = vadd.f32 %v411_v54, %v410_v39  ;;  %v437_v21 = vsel %vm384_vm0, %v4718_v32, 0.0 }
  0x65   :  { %6882 = vst [vmem:[#allocation69_spill] sm:$0xff] %v4737_v47  ;;  %6883 = vst [vmem:[#allocation70_spill] sm:$0xff] %v4742_v30 }
  0x66   :  { %6884 = vst [vmem:[#allocation71_spill] sm:$0xff] %v4747_v42  ;;  %6885 = vst [vmem:[#allocation72_spill] sm:$0xff] %v4751_v48  ;;  %v399_v48 = vadd.f32 %v398_v44, %v397_v37  ;;  %v413_v20 = vrot.slane %v412_v60, 4  ;;  %v477_v37 = vadd.f32 %v476_v3, %v475_v1  ;;  %v4783_v1 = vmul.f32 %v4360_v62, %v4360_v62  ;;  %v4802_v62 = vld [vmem:[%s6674_s0 + $0x2f0] sm:$0x1] }
  0x67   :  { %6886 = vst [vmem:[#allocation73_spill] sm:$0xff] %v4755_v53  ;;  %6887 = vst [vmem:[#allocation74_spill] sm:$0xff] %v4759_v34  ;;  %v386_v53 = vadd.f32 %v385_v2, %v383_v29  ;;  %v425_v34 = vadd.f32 %v424_v55, %v423_v26  ;;  %v438_v2 = vadd.f32 %v437_v21, %v436_v13 }
  0x68   :  { %6888 = vst [vmem:[#allocation75_spill] sm:$0xff] %v4763_v5  ;;  %v450_v5 = vsel %vm384_vm0, %v4737_v47, 0.0  ;;  %v400_v12 = vrot.slane %v399_v48, 4  ;;  %v464_v29 = vadd.f32 %v463_v25, %v462_v51  ;;  %v414_v54 = vadd.f32 %v413_v20, %v412_v60 }
  0x69   :  { %v387_v4 = vrot.slane %v386_v53, 4  ;;  %v426_v18 = vrot.slane %v425_v34, 4  ;;  %v451_v44 = vadd.f32 %v450_v5, %v449_v50  ;;  %v439_v32 = vrot.slane %v438_v2, 4 }
  0x6a   :  { %v401_v26 = vadd.f32 %v400_v12, %v399_v48  ;;  %v465_v7 = vrot.slane %v464_v29, 4  ;;  %v478_v11 = vrot.slane %v477_v37, 4  ;;  %v415_v56 = vrot.slane %v414_v54, 2 }
  0x6b   :  { %v388_v39 = vadd.f32 %v387_v4, %v386_v53  ;;  %v427_v55 = vadd.f32 %v426_v18, %v425_v34  ;;  %v452_v47 = vrot.slane %v451_v44, 4  ;;  %v440_v41 = vadd.f32 %v439_v32, %v438_v2  ;;  %v4792_v32 = vld [vmem:[%s6674_s0 + $0x2e0] sm:$0x1]  ;;  %v4823_v18 = vld [vmem:[%s6674_s0 + $0x2f8] sm:$0x1] }
  0x6c   :  { %v402_v19 = vrot.slane %v401_v26, 2  ;;  %v466_v0 = vadd.f32 %v465_v7, %v464_v29  ;;  %v479_v31 = vadd.f32 %v478_v11, %v477_v37  ;;  %v4787_v3 = vmul.f32 %v4365_v63, %v4365_v63  ;;  %6889 = vst [vmem:[#allocation76_spill] sm:$0xff] %v4792_v32  ;;  %v4797_v7 = vld [vmem:[%s6674_s0 + $0x2e8] sm:$0x1]  ;;  %6891 = vst [vmem:[#allocation78_spill] sm:$0xff] %v4823_v18 }
  0x6d   :  { %v389_v30 = vrot.slane %v388_v39, 2  ;;  %v428_v42 = vrot.slane %v427_v55, 2  ;;  %v453_v14 = vadd.f32 %v452_v47, %v451_v44  ;;  %v416_v12 = vadd.f32 %v415_v56, %v414_v54  ;;  %6890 = vst [vmem:[#allocation77_spill] sm:$0xff] %v4797_v7 }
  0x6e   :  { %v403_v50 = vadd.f32 %v402_v19, %v401_v26  ;;  %v441_v20 = vrot.slane %v440_v41, 2  ;;  %v4806_v63 = vmul.f32 %v4380_v22, %v4380_v22  ;;  %v4810_v11 = vmul.f32 %v4385_v28, %v4385_v28 }
  0x6f   :  { %v390_v13 = vadd.f32 %v389_v30, %v388_v39  ;;  %v429_v51 = vadd.f32 %v428_v42, %v427_v55  ;;  %v454_v25 = vrot.slane %v453_v14, 2  ;;  %v4814_v19 = vmul.f32 %v4395_v24, %v4395_v24  ;;  %v4844_v30 = vld [vmem:[%s6674_s0 + $0x300] sm:$0x1] }
  0x70   :  { %v4818_v56 = vmul.f32 %v4400_v23, %v4400_v23  ;;  %v404_v22 = vrot.slane %v403_v50, 1  ;;  %v467_v5 = vrot.slane %v466_v0, 2  ;;  %v480_v34 = vrot.slane %v479_v31, 2  ;;  %6892 = vst [vmem:[#allocation79_spill] sm:$0xff] %v4844_v30 }
  0x71   :  { %v391_v4 = vrot.slane %v390_v13, 1  ;;  %v4827_v28 = vmul.f32 %v4405_v36, %v4405_v36  ;;  %v4831_v24 = vmul.f32 %v4417_v16, %v4417_v16  ;;  %v4835_v23 = vmul.f32 %v4422_v15, %v4422_v15  ;;  %v4849_v16 = vld [vmem:[%s6674_s0 + $0x308] sm:$0x1] }
  0x72   :  { %v4839_v47 = vmul.f32 %v4427_v43, %v4427_v43  ;;  %v417_v42 = vrot.slane %v416_v12, 1  ;;  %v430_v36 = vrot.slane %v429_v51, 1  ;;  %v442_v48 = vadd.f32 %v441_v20, %v440_v41  ;;  %6893 = vst [vmem:[#allocation80_spill] sm:$0xff] %v4849_v16 }
  0x73   :  { %v455_v53 = vadd.f32 %v454_v25, %v453_v14  ;;  %v489_v15 = vsel %vm384_vm0, %v4792_v32, 0.0  ;;  %v502_v43 = vsel %vm384_vm0, %v4797_v7, 0.0  ;;  %v515_v60 = vsel %vm384_vm0, %v4802_v62, 0.0 }
  0x74   :  { %v528_v21 = vsel %vm384_vm0, %v4823_v18, 0.0  ;;  %v4859_v2 = vadd.f32 %v391_v4, %v390_v13  ;;  %v4861_v14 = vadd.f32 %v404_v22, %v403_v50  ;;  %v468_v41 = vadd.f32 %v467_v5, %v466_v0 }
  0x75   :  { %v481_v44 = vadd.f32 %v480_v34, %v479_v31  ;;  %v490_v29 = vadd.f32 %v489_v15, %v4681_v38  ;;  %v503_v37 = vadd.f32 %v502_v43, %v4703_v27  ;;  %v516_v39 = vadd.f32 %v515_v60, %v4706_v46 }
  0x76   :  { %6894 = vst [vmem:[#allocation81_spill] sm:$0xff] %v4859_v2  ;;  %6895 = vst [vmem:[#allocation82_spill] sm:$0xff] %v4861_v14  ;;  %v529_v26 = vadd.f32 %v528_v21, %v4709_v58  ;;  %v4867_v54 = vadd.f32 %v417_v42, %v416_v12  ;;  %v4869_v55 = vadd.f32 %v430_v36, %v429_v51  ;;  %v541_v13 = vsel %vm384_vm0, %v4844_v30, 0.0  ;;  %v6946_v2 = vld [vmem:[#allocation8_spill] sm:$0xff] }
  0x77   :  { %v554_v50 = vsel %vm384_vm0, %v4849_v16, 0.0  ;;  %v491_v0 = vrot.slane %v490_v29, 4  ;;  %v504_v31 = vrot.slane %v503_v37, 4  ;;  %v517_v20 = vrot.slane %v516_v39, 4 }
  0x78   :  { %6896 = vst [vmem:[#allocation83_spill] sm:$0xff] %v4867_v54  ;;  %6897 = vst [vmem:[#allocation84_spill] sm:$0xff] %v4869_v55  ;;  %v530_v38 = vrot.slane %v529_v26, 4  ;;  %v443_v25 = vrot.slane %v442_v48, 1  ;;  %v456_v27 = vrot.slane %v455_v53, 1  ;;  %v542_v46 = vadd.f32 %v541_v13, %v4721_v40 }
  0x79   :  { %v555_v58 = vadd.f32 %v554_v50, %v4724_v33  ;;  %v492_v12 = vadd.f32 %v491_v0, %v490_v29  ;;  %v505_v4 = vadd.f32 %v504_v31, %v503_v37  ;;  %v518_v51 = vadd.f32 %v517_v20, %v516_v39 }
  0x7a   :  { %v531_v22 = vadd.f32 %v530_v38, %v529_v26  ;;  %v469_v5 = vrot.slane %v468_v41, 1  ;;  %v482_v34 = vrot.slane %v481_v44, 1  ;;  %v543_v42 = vrot.slane %v542_v46, 4 }
  0x7b   :  { %v556_v36 = vrot.slane %v555_v58, 4  ;;  %v493_v15 = vrot.slane %v492_v12, 2  ;;  %v506_v43 = vrot.slane %v505_v4, 2  ;;  %v519_v60 = vrot.slane %v518_v51, 2 }
  0x7c   :  { %v532_v21 = vrot.slane %v531_v22, 2  ;;  %v4877_v55 = vadd.f32 %v443_v25, %v442_v48  ;;  %v4879_v54 = vadd.f32 %v456_v27, %v455_v53  ;;  %v544_v14 = vadd.f32 %v543_v42, %v542_v46 }
  0x7d   :  { %v557_v40 = vadd.f32 %v556_v36, %v555_v58  ;;  %v494_v13 = vadd.f32 %v493_v15, %v492_v12  ;;  %v507_v33 = vadd.f32 %v506_v43, %v505_v4  ;;  %v520_v29 = vadd.f32 %v519_v60, %v518_v51  ;;  %v6906_v51 = vld [vmem:[#allocation33_spill] sm:$0xff]  ;;  %v6913_v36 = vld [vmem:[#allocation36_spill] sm:$0xff] }
  0x7e   :  { %6898 = vst [vmem:[#allocation85_spill] sm:$0xff] %v4877_v55  ;;  %6899 = vst [vmem:[#allocation86_spill] sm:$0xff] %v4879_v54  ;;  %v533_v37 = vadd.f32 %v532_v21, %v531_v22  ;;  %v4881_v39 = vadd.f32 %v469_v5, %v468_v41  ;;  %v4883_v26 = vadd.f32 %v482_v34, %v481_v44  ;;  %v545_v50 = vrot.slane %v544_v14, 2  ;;  %v6911_v34 = vld [vmem:[#allocation35_spill] sm:$0xff]  ;;  %v6945_v54 = vld [vmem:[#allocation21_spill] sm:$0xff] }
  0x7f   :  { %v558_v0 = vrot.slane %v557_v40, 2  ;;  %v495_v31 = vrot.slane %v494_v13, 1  ;;  %v508_v20 = vrot.slane %v507_v33, 1  ;;  %v4887_v48 = vmul.f32 %v4439_v17, %v4439_v17 }
  0x80   :  { %6900 = vst [vmem:[#allocation87_spill] sm:$0xff] %v4881_v39  ;;  %6901 = vst [vmem:[#allocation88_spill] sm:$0xff] %v4883_v26  ;;  %v4891_v53 = vmul.f32 %v4444_v10, %v4444_v10  ;;  %v521_v38 = vrot.slane %v520_v29, 1  ;;  %v534_v25 = vrot.slane %v533_v37, 1  ;;  %v546_v27 = vadd.f32 %v545_v50, %v544_v14  ;;  %v6923_v50 = vld [vmem:[#allocation42_spill] sm:$0xff] }
  0x81   :  { %v559_v46 = vadd.f32 %v558_v0, %v557_v40  ;;  %v4895_v41 = vmul.f32 %v4449_v49, %v4449_v49  ;;  %v4899_v44 = vmul.f32 %v4461_v35, %v4461_v35  ;;  %v618_v17 = vmul.f32 %v4466_v9, %v4466_v9  ;;  %v6918_v40 = vld [vmem:[#allocation38_spill] sm:$0xff] }
  0x82   :  { %6902 = vst [vmem:[#allocation89_spill] sm:$0xff] %v4891_v53  ;;  %v4905_v58 = vmul.f32 %v4471_v57, %v4471_v57  ;;  %v547_v10 = vrot.slane %v546_v27, 1  ;;  %v4909_v14 = vmul.f32 %v4483_v6, %v4483_v6  ;;  %v4913_v49 = vmul.f32 %v4488_v8, %v4488_v8  ;;  %v6905_v57 = vld [vmem:[#allocation32_spill] sm:$0xff]  ;;  %v6955_v53 = vld [vmem:[#allocation11_spill] sm:$0xff] }
  0x83   :  { %6903 = vst [vmem:[#allocation90_spill] sm:$0xff] %v4895_v41  ;;  %6904 = vst [vmem:[#allocation91_spill] sm:$0xff] %v4899_v44  ;;  %v560_v12 = vrot.slane %v559_v46, 1  ;;  %v4917_v35 = vmul.f32 %v4493_v61, %v4493_v61  ;;  %v4921_v9 = vmul.f32 %v4505_v59, %v4505_v59  ;;  %v4925_v4 = vmul.f32 %v6905_v57, %v6905_v57  ;;  %v6949_v41 = vld [vmem:[#allocation9_spill] sm:$0xff] }
  0x84   :  { %v4929_v6 = vmul.f32 %v6906_v51, %v6906_v51  ;;  %v4931_v22 = vadd.f32 %v495_v31, %v494_v13  ;;  %v4933_v8 = vadd.f32 %v508_v20, %v507_v33  ;;  %v4935_v5 = vadd.f32 %v521_v38, %v520_v29  ;;  %v6920_v13 = vld [vmem:[#allocation41_spill] sm:$0xff]  ;;  %v6922_v29 = vld [vmem:[#allocation39_spill] sm:$0xff] }
  0x85   :  { %v4937_v61 = vadd.f32 %v534_v25, %v533_v37  ;;  %v4941_v59 = vmul.f32 %v4527_v52, %v4527_v52  ;;  %v4945_v42 = vmul.f32 %v6911_v34, %v6911_v34  ;;  %v4949_v15 = vmul.f32 %v6913_v36, %v6913_v36  ;;  %v6925_v20 = vld [vmem:[#allocation45_spill] sm:$0xff]  ;;  %v6926_v25 = vld [vmem:[#allocation46_spill] sm:$0xff]  ;;  %v6929_v51 = vld [vmem:[#allocation63_spill] sm:$0xff] }
  0x86   :  { %6907 = vst [vmem:[#allocation32_spill] sm:$0xff] %v4931_v22  ;;  %6908 = vst [vmem:[#allocation33_spill] sm:$0xff] %v4933_v8  ;;  %v4953_v43 = vmul.f32 %v4549_v45, %v4549_v45  ;;  %v4955_v60 = vadd.f32 %v547_v10, %v546_v27  ;;  %v4957_v21 = vadd.f32 %v560_v12, %v559_v46  ;;  %v6924_v45 = vld [vmem:[#allocation43_spill] sm:$0xff]  ;;  %v6927_v46 = vld [vmem:[#allocation60_spill] sm:$0xff] }
  0x87   :  { %6909 = vst [vmem:[#allocation92_spill] sm:$0xff] %v4935_v5  ;;  %6910 = vst [vmem:[#allocation93_spill] sm:$0xff] %v4937_v61  ;;  %v4961_v52 = vmul.f32 %v6918_v40, %v6918_v40  ;;  %v4965_v33 = vmul.f32 %v6920_v13, %v6920_v13  ;;  %v632_v37 = vmul.f32 %v6922_v29, %v6922_v29  ;;  %v6928_v12 = vld [vmem:[#allocation62_spill] sm:$0xff]  ;;  %v6930_v36 = vld [vmem:[#allocation47_spill] sm:$0xff] }
  0x88   :  { %6912 = vst [vmem:[#allocation35_spill] sm:$0xff] %v4945_v42  ;;  %6914 = vst [vmem:[#allocation36_spill] sm:$0xff] %v4949_v15  ;;  %v633_v0 = vmul.f32 %v6923_v50, %v6923_v50  ;;  %v634_v31 = vmul.f32 %v6924_v45, %v6924_v45  ;;  %v635_v38 = vmul.f32 %v6925_v20, %v6925_v20  ;;  %v6931_v13 = vld [vmem:[#allocation49_spill] sm:$0xff]  ;;  %v6932_v50 = vld [vmem:[#allocation50_spill] sm:$0xff] }
  0x89   :  { %6915 = vst [vmem:[#allocation94_spill] sm:$0xff] %v4953_v43  ;;  %6916 = vst [vmem:[#allocation95_spill] sm:$0xff] %v4955_v60  ;;  %v636_v27 = vmul.f32 %v6926_v25, %v6926_v25  ;;  %v646_v10 = vmul.f32 %v6927_v46, %v6927_v46  ;;  %v647_v57 = vmul.f32 %v6928_v12, %v6928_v12  ;;  %v6933_v20 = vld [vmem:[#allocation64_spill] sm:$0xff]  ;;  %v6934_v46 = vld [vmem:[#allocation51_spill] sm:$0xff] }
  0x8a   :  { %6917 = vst [vmem:[#allocation96_spill] sm:$0xff] %v4957_v21  ;;  %6919 = vst [vmem:[#allocation38_spill] sm:$0xff] %v4961_v52  ;;  %v648_v34 = vmul.f32 %v6929_v51, %v6929_v51  ;;  %v637_v40 = vmul.f32 %v6930_v36, %v6930_v36  ;;  %v638_v29 = vmul.f32 %v6931_v13, %v6931_v13  ;;  %v6936_v12 = vld [vmem:[#allocation53_spill] sm:$0xff]  ;;  %v6938_v60 = vld [vmem:[#allocation66_spill] sm:$0xff] }
  0x8b   :  { %6921 = vst [vmem:[#allocation41_spill] sm:$0xff] %v4965_v33  ;;  %v4989_v45 = vmul.f32 %v6932_v50, %v6932_v50  ;;  %v649_v25 = vmul.f32 %v6933_v20, %v6933_v20  ;;  %v4995_v21 = vmul.f32 %v6934_v46, %v6934_v46  ;;  %v4999_v51 = vmul.f32 %v6936_v12, %v6936_v12  ;;  %v6939_v61 = vld [vmem:[#allocation69_spill] sm:$0xff]  ;;  %v6940_v5 = vld [vmem:[#allocation70_spill] sm:$0xff]  ;;  %v6941_v8 = vld [vmem:[#allocation71_spill] sm:$0xff] }
  0x8c   :  { %v650_v36 = vmul.f32 %v6938_v60, %v6938_v60  ;;  %v651_v13 = vmul.f32 %v6939_v61, %v6939_v61  ;;  %v652_v50 = vmul.f32 %v6940_v5, %v6940_v5  ;;  %v5009_v20 = vmul.f32 %v6941_v8, %v6941_v8  ;;  %v6942_v22 = vld [vmem:[#allocation6_spill] sm:$0xff]  ;;  %v6943_v46 = vld [vmem:[#allocation20_spill] sm:$0xff]  ;;  %v6944_v12 = vld [vmem:[#allocation7_spill] sm:$0xff] }
  0x8d   :  { %6935 = vst [vmem:[#allocation39_spill] sm:$0xff] %v4995_v21  ;;  %6937 = vst [vmem:[#allocation42_spill] sm:$0xff] %v4999_v51  ;;  %v660_v26 = vadd.f32 %v6943_v46, %v6942_v22  ;;  %v665_v39 = vsel %vm384_vm0, %v646_v10, 0.0  ;;  %v673_v55 = vadd.f32 %v6945_v54, %v6944_v12  ;;  %v678_v60 = vsel %vm384_vm0, %v647_v57, 0.0  ;;  %v6947_v33 = vld [vmem:[#allocation22_spill] sm:$0xff]  ;;  %v6948_v5 = vld [vmem:[#allocation40_spill] sm:$0xff] }
  0x8e   :  { %v686_v61 = vadd.f32 %v6947_v33, %v6946_v2  ;;  %v691_v52 = vsel %vm384_vm0, %v648_v34, 0.0  ;;  %v6950_v8 = vld [vmem:[#allocation23_spill] sm:$0xff]  ;;  %v704_v51 = vsel %vm384_vm0, %v649_v25, 0.0  ;;  %v6951_v22 = vld [vmem:[#allocation10_spill] sm:$0xff]  ;;  %v6952_v46 = vld [vmem:[#allocation24_spill] sm:$0xff]  ;;  %v717_v57 = vsel %vm384_vm0, %v650_v36, 0.0 }
  0x8f   :  { %v661_v44 = vadd.f32 %v660_v26, %v6948_v5  ;;  %v699_v43 = vadd.f32 %v6950_v8, %v6949_v41  ;;  %v712_v10 = vadd.f32 %v6952_v46, %v6951_v22  ;;  %v6953_v15 = vld [vmem:[#allocation44_spill] sm:$0xff]  ;;  %v6956_v2 = vld [vmem:[#allocation25_spill] sm:$0xff]  ;;  %v730_v25 = vsel %vm384_vm0, %v651_v13, 0.0  ;;  %v6961_v46 = vld [vmem:[#allocation26_spill] sm:$0xff] }
  0x90   :  { %v674_v21 = vadd.f32 %v673_v55, %v6953_v15  ;;  %v6954_v54 = vld [vmem:[#allocation48_spill] sm:$0xff]  ;;  %v725_v33 = vadd.f32 %v6956_v2, %v6955_v53  ;;  %v6959_v55 = vld [vmem:[#allocation59_spill] sm:$0xff] }
  0x91   :  { %v687_v12 = vadd.f32 %v686_v61, %v6954_v54  ;;  %v662_v34 = vadd.f32 %v661_v44, %v4783_v1  ;;  %v6957_v26 = vld [vmem:[#allocation52_spill] sm:$0xff]  ;;  %v743_v44 = vsel %vm384_vm0, %v652_v50, 0.0  ;;  %v6964_v2 = vld [vmem:[#allocation27_spill] sm:$0xff] }
  0x92   :  { %v700_v5 = vadd.f32 %v699_v43, %v6957_v26  ;;  %v6958_v42 = vld [vmem:[#allocation56_spill] sm:$0xff]  ;;  %v675_v8 = vadd.f32 %v674_v21, %v4787_v3  ;;  %v726_v15 = vadd.f32 %v725_v33, %v6959_v55  ;;  %v6962_v21 = vld [vmem:[#allocation61_spill] sm:$0xff] }
  0x93   :  { %v713_v41 = vadd.f32 %v712_v10, %v6958_v42  ;;  %v688_v22 = vadd.f32 %v687_v12, %v4806_v63  ;;  %v6960_v61 = vld [vmem:[#allocation12_spill] sm:$0xff]  ;;  %v663_v54 = vadd.f32 %v662_v34, %v618_v17  ;;  %v6963_v17 = vld [vmem:[#allocation13_spill] sm:$0xff] }
  0x94   :  { %v738_v36 = vadd.f32 %v6961_v46, %v6960_v61  ;;  %v701_v53 = vadd.f32 %v700_v5, %v4810_v11  ;;  %v676_v42 = vadd.f32 %v675_v8, %v4905_v58  ;;  %v727_v3 = vadd.f32 %v726_v15, %v4818_v56  ;;  %v6965_v56 = vld [vmem:[#allocation65_spill] sm:$0xff] }
  0x95   :  { %v714_v1 = vadd.f32 %v713_v41, %v4814_v19  ;;  %v689_v43 = vadd.f32 %v688_v22, %v4909_v14  ;;  %v664_v13 = vadd.f32 %v663_v54, %v632_v37  ;;  %v751_v11 = vadd.f32 %v6964_v2, %v6963_v17  ;;  %v6968_v2 = vld [vmem:[#allocation57_spill] sm:$0xff] }
  0x96   :  { %v739_v63 = vadd.f32 %v738_v36, %v6962_v21  ;;  %v702_v10 = vadd.f32 %v701_v53, %v4913_v49  ;;  %v677_v33 = vadd.f32 %v676_v42, %v633_v0  ;;  %v728_v50 = vadd.f32 %v727_v3, %v4921_v9 }
  0x97   :  { %v715_v12 = vadd.f32 %v714_v1, %v4917_v35  ;;  %v690_v19 = vadd.f32 %v689_v43, %v634_v31  ;;  %v666_v34 = vadd.f32 %v665_v39, %v664_v13  ;;  %v752_v5 = vadd.f32 %v751_v11, %v6965_v56  ;;  %v6967_v13 = vld [vmem:[#allocation55_spill] sm:$0xff] }
  0x98   :  { %v740_v58 = vadd.f32 %v739_v63, %v4827_v28  ;;  %v703_v14 = vadd.f32 %v702_v10, %v635_v38  ;;  %v679_v41 = vadd.f32 %v678_v60, %v677_v33  ;;  %v729_v8 = vadd.f32 %v728_v50, %v637_v40  ;;  %v6969_v33 = vld [vmem:[#allocation58_spill] sm:$0xff] }
  0x99   :  { %v716_v26 = vadd.f32 %v715_v12, %v636_v27  ;;  %v692_v37 = vadd.f32 %v691_v52, %v690_v19  ;;  %v667_v35 = vrot.slane %v666_v34, 4  ;;  %v753_v0 = vadd.f32 %v752_v5, %v4831_v24 }
  0x9a   :  { %v741_v49 = vadd.f32 %v740_v58, %v4925_v4  ;;  %v705_v22 = vadd.f32 %v704_v51, %v703_v14  ;;  %v680_v31 = vrot.slane %v679_v41, 4  ;;  %v731_v9 = vadd.f32 %v730_v25, %v729_v8 }
  0x9b   :  { %v718_v55 = vadd.f32 %v717_v57, %v716_v26  ;;  %v693_v15 = vrot.slane %v692_v37, 4  ;;  %v668_v28 = vadd.f32 %v667_v35, %v666_v34  ;;  %v754_v27 = vadd.f32 %v753_v0, %v4929_v6  ;;  %v6966_v6 = vld [vmem:[#allocation54_spill] sm:$0xff] }
  0x9c   :  { %v742_v61 = vadd.f32 %v741_v49, %v638_v29  ;;  %v706_v39 = vrot.slane %v705_v22, 4  ;;  %v681_v46 = vadd.f32 %v680_v31, %v679_v41  ;;  %v732_v52 = vrot.slane %v731_v9, 4 }
  0x9d   :  { %v719_v38 = vrot.slane %v718_v55, 4  ;;  %v694_v60 = vadd.f32 %v693_v15, %v692_v37  ;;  %v669_v36 = vrot.slane %v668_v28, 2  ;;  %v755_v51 = vadd.f32 %v754_v27, %v4989_v45  ;;  %v6974_v27 = vld [vmem:[#allocation67_spill] sm:$0xff] }
  0x9e   :  { %v744_v40 = vadd.f32 %v743_v44, %v742_v61  ;;  %v707_v4 = vadd.f32 %v706_v39, %v705_v22  ;;  %v682_v57 = vrot.slane %v681_v46, 2  ;;  %v733_v53 = vadd.f32 %v732_v52, %v731_v9  ;;  %v6970_v22 = vld [vmem:[#allocation14_spill] sm:$0xff]  ;;  %v6972_v9 = vld [vmem:[#allocation15_spill] sm:$0xff]  ;;  %v6973_v61 = vld [vmem:[#allocation29_spill] sm:$0xff] }
  0x9f   :  { %v720_v54 = vadd.f32 %v719_v38, %v718_v55  ;;  %v695_v24 = vrot.slane %v694_v60, 2  ;;  %v670_v25 = vadd.f32 %v669_v36, %v668_v28  ;;  %v756_v43 = vsel %vm384_vm0, %v5009_v20, 0.0  ;;  %v6971_v55 = vld [vmem:[#allocation28_spill] sm:$0xff]  ;;  %v6976_v52 = vld [vmem:[#allocation30_spill] sm:$0xff] }
  0xa0   :  { %v745_v1 = vrot.slane %v744_v40, 4  ;;  %v708_v29 = vrot.slane %v707_v4, 2  ;;  %v642_v3 = vmul.f32 %v6966_v6, %v6966_v6  ;;  %v683_v21 = vadd.f32 %v682_v57, %v681_v46  ;;  %v6978_v57 = vld [vmem:[#allocation17_spill] sm:$0xff] }
  0xa1   :  { %v721_v42 = vrot.slane %v720_v54, 2  ;;  %v696_v44 = vadd.f32 %v695_v24, %v694_v60  ;;  %v734_v63 = vrot.slane %v733_v53, 2  ;;  %v643_v10 = vmul.f32 %v6967_v13, %v6967_v13  ;;  %v6975_v60 = vld [vmem:[#allocation16_spill] sm:$0xff]  ;;  %v6979_v24 = vld [vmem:[#allocation31_spill] sm:$0xff]  ;;  %v6982_v13 = vld [vmem:[#allocation18_spill] sm:$0xff] }
  0xa2   :  { %v709_v45 = vadd.f32 %v708_v29, %v707_v4  ;;  %v746_v12 = vadd.f32 %v745_v1, %v744_v40  ;;  %v757_v17 = vadd.f32 %v756_v43, %v755_v51  ;;  %v5066_v11 = vmul.f32 %v6968_v2, %v6968_v2 }
  0xa3   :  { %v5070_v19 = vmul.f32 %v6969_v33, %v6969_v33  ;;  %v654_v20 = vmul.f32 %v4792_v32, %v4792_v32  ;;  %v671_v50 = vrot.slane %v670_v25, 1  ;;  %v655_v58 = vmul.f32 %v4797_v7, %v4797_v7 }
  0xa4   :  { %v684_v34 = vrot.slane %v683_v21, 1  ;;  %v5076_v14 = vadd.f32 %v721_v42, %v720_v54  ;;  %v758_v26 = vrot.slane %v757_v17, 4  ;;  %v656_v56 = vmul.f32 %v4802_v62, %v4802_v62  ;;  %v6977_v54 = vld [vmem:[#allocation68_spill] sm:$0xff] }
  0xa5   :  { %v657_v5 = vmul.f32 %v4823_v18, %v4823_v18  ;;  %v697_v41 = vrot.slane %v696_v44, 1  ;;  %v5082_v37 = vadd.f32 %v734_v63, %v733_v53  ;;  %v658_v8 = vmul.f32 %v4844_v30, %v4844_v30  ;;  %v6980_v42 = vld [vmem:[#allocation72_spill] sm:$0xff]  ;;  %v6981_v63 = vld [vmem:[#allocation73_spill] sm:$0xff] }
  0xa6   :  { %v710_v49 = vrot.slane %v709_v45, 1  ;;  %v747_v35 = vrot.slane %v746_v12, 2  ;;  %v764_v0 = vadd.f32 %v6971_v55, %v6970_v22  ;;  %v659_v31 = vmul.f32 %v4849_v16, %v4849_v16  ;;  %v6988_v22 = vld [vmem:[#allocation74_spill] sm:$0xff] }
  0xa7   :  { %v5090_v15 = vadd.f32 %v671_v50, %v670_v25  ;;  %v759_v62 = vadd.f32 %v758_v26, %v757_v17  ;;  %v777_v28 = vadd.f32 %v6973_v61, %v6972_v9  ;;  %v5094_v39 = vadd.f32 %v684_v34, %v683_v21  ;;  %v6983_v17 = vld [vmem:[#allocation34_spill] sm:$0xff]  ;;  %v6984_v34 = vld [vmem:[#allocation19_spill] sm:$0xff]  ;;  %v6990_v61 = vld [vmem:[#allocation36_spill] sm:$0xff] }
  0xa8   :  { %v723_v38 = vrot.slane %v5076_v14, 1  ;;  %v765_v46 = vadd.f32 %v764_v0, %v6974_v27  ;;  %v790_v40 = vadd.f32 %v6976_v52, %v6975_v60  ;;  %v5100_v36 = vadd.f32 %v697_v41, %v696_v44  ;;  %v6989_v0 = vld [vmem:[#allocation39_spill] sm:$0xff]  ;;  %v6993_v52 = vld [vmem:[#allocation94_spill] sm:$0xff] }
  0xa9   :  { %v736_v4 = vrot.slane %v5082_v37, 1  ;;  %v778_v51 = vadd.f32 %v777_v28, %v6977_v54  ;;  %v803_v53 = vadd.f32 %v6979_v24, %v6978_v57  ;;  %v5106_v1 = vadd.f32 %v710_v49, %v709_v45  ;;  %v6994_v54 = vld [vmem:[#allocation90_spill] sm:$0xff] }
  0xaa   :  { %v748_v25 = vadd.f32 %v747_v35, %v746_v12  ;;  %v766_v29 = vadd.f32 %v765_v46, %v4835_v23  ;;  %v791_v43 = vadd.f32 %v790_v40, %v6980_v42  ;;  %v760_v6 = vrot.slane %v759_v62, 2  ;;  %v6985_v12 = vld [vmem:[#allocation37_spill] sm:$0xff]  ;;  %v6986_v23 = vld [vmem:[#allocation35_spill] sm:$0xff]  ;;  %v6992_v46 = vld [vmem:[#allocation42_spill] sm:$0xff] }
  0xab   :  { %v779_v21 = vadd.f32 %v778_v51, %v4839_v47  ;;  %v804_v44 = vadd.f32 %v803_v53, %v6981_v63  ;;  %v816_v2 = vadd.f32 %v6983_v17, %v6982_v13  ;;  %v769_v50 = vsel %vm384_vm0, %v654_v20, 0.0  ;;  %v6987_v35 = vld [vmem:[#allocation89_spill] sm:$0xff]  ;;  %v6991_v20 = vld [vmem:[#allocation75_spill] sm:$0xff]  ;;  %v6996_v63 = vld [vmem:[#allocation38_spill] sm:$0xff] }
  0xac   :  { %v767_v33 = vadd.f32 %v766_v29, %v4941_v59  ;;  %v792_v45 = vadd.f32 %v791_v43, %v4887_v48  ;;  %v829_v26 = vadd.f32 %v6985_v12, %v6984_v34  ;;  %v782_v49 = vsel %vm384_vm0, %v655_v58, 0.0  ;;  %v6995_v53 = vld [vmem:[#allocation91_spill] sm:$0xff] }
  0xad   :  { %v780_v41 = vadd.f32 %v779_v21, %v6986_v23  ;;  %v805_v47 = vadd.f32 %v804_v44, %v6987_v35  ;;  %v817_v55 = vadd.f32 %v816_v2, %v6988_v22  ;;  %v795_v59 = vsel %vm384_vm0, %v656_v56, 0.0 }
  0xae   :  { %v768_v9 = vadd.f32 %v767_v33, %v6989_v0  ;;  %v793_v28 = vadd.f32 %v792_v45, %v6990_v61  ;;  %v830_v27 = vadd.f32 %v829_v26, %v6991_v20  ;;  %v761_v48 = vadd.f32 %v760_v6, %v759_v62  ;;  %v6997_v6 = vld [vmem:[#allocation41_spill] sm:$0xff] }
  0xaf   :  { %v781_v60 = vadd.f32 %v780_v41, %v6992_v46  ;;  %v806_v40 = vadd.f32 %v805_v47, %v6993_v52  ;;  %v818_v51 = vadd.f32 %v817_v55, %v6994_v54  ;;  %v808_v24 = vsel %vm384_vm0, %v657_v5, 0.0  ;;  %v7001_v54 = vld [vmem:[#allocation84_spill] sm:$0xff] }
  0xb0   :  { %v770_v58 = vadd.f32 %v769_v50, %v768_v9  ;;  %v794_v57 = vadd.f32 %v793_v28, %v642_v3  ;;  %v831_v29 = vadd.f32 %v830_v27, %v6995_v53  ;;  %v749_v42 = vrot.slane %v748_v25, 1 }
  0xb1   :  { %v783_v43 = vadd.f32 %v782_v49, %v781_v60  ;;  %v807_v21 = vadd.f32 %v806_v40, %v643_v10  ;;  %v819_v56 = vadd.f32 %v818_v51, %v6996_v63  ;;  %v821_v62 = vsel %vm384_vm0, %v658_v8, 0.0  ;;  %v7000_v60 = vld [vmem:[#allocation83_spill] sm:$0xff] }
  0xb2   :  { %v771_v44 = vrot.slane %v770_v58, 4  ;;  %v796_v13 = vadd.f32 %v795_v59, %v794_v57  ;;  %v832_v17 = vadd.f32 %v831_v29, %v6997_v6  ;;  %v834_v3 = vsel %vm384_vm0, %v659_v31, 0.0  ;;  %v7003_v29 = vld [vmem:[#allocation86_spill] sm:$0xff] }
  0xb3   :  { %v784_v2 = vrot.slane %v783_v43, 4  ;;  %v809_v33 = vadd.f32 %v808_v24, %v807_v21  ;;  %v820_v50 = vadd.f32 %v819_v56, %v5066_v11  ;;  %v762_v5 = vrot.slane %v761_v48, 1  ;;  %v7002_v24 = vld [vmem:[#allocation85_spill] sm:$0xff]  ;;  %v7004_v56 = vld [vmem:[#allocation87_spill] sm:$0xff] }
  0xb4   :  { %v772_v45 = vadd.f32 %v771_v44, %v770_v58  ;;  %v797_v34 = vrot.slane %v796_v13, 4  ;;  %v833_v12 = vadd.f32 %v832_v17, %v5070_v19  ;;  %v724_v10 = vadd.f32 %v723_v38, %v5076_v14  ;;  %v6998_v14 = vld [vmem:[#allocation81_spill] sm:$0xff]  ;;  %v7006_v17 = vld [vmem:[#allocation32_spill] sm:$0xff] }
  0xb5   :  { %v785_v26 = vadd.f32 %v784_v2, %v783_v43  ;;  %v810_v23 = vrot.slane %v809_v33, 4  ;;  %v822_v41 = vadd.f32 %v821_v62, %v820_v50  ;;  %v737_v8 = vadd.f32 %v736_v4, %v5082_v37  ;;  %v6999_v37 = vld [vmem:[#allocation82_spill] sm:$0xff]  ;;  %v7005_v62 = vld [vmem:[#allocation88_spill] sm:$0xff] }
  0xb6   :  { %v773_v49 = vrot.slane %v772_v45, 2  ;;  %v798_v35 = vadd.f32 %v797_v34, %v796_v13  ;;  %v835_v47 = vadd.f32 %v834_v3, %v833_v12  ;;  %v750_v22 = vadd.f32 %v749_v42, %v748_v25  ;;  %v7009_v34 = vld [vmem:[#allocation93_spill] sm:$0xff] }
  0xb7   :  { %v786_v55 = vrot.slane %v785_v26, 2  ;;  %v811_v11 = vadd.f32 %v810_v23, %v809_v33  ;;  %v823_v0 = vrot.slane %v822_v41, 4  ;;  %v763_v31 = vadd.f32 %v762_v5, %v761_v48  ;;  %v7007_v33 = vld [vmem:[#allocation33_spill] sm:$0xff]  ;;  %v7008_v5 = vld [vmem:[#allocation92_spill] sm:$0xff] }
  0xb8   :  { %v774_v9 = vadd.f32 %v773_v49, %v772_v45  ;;  %v799_v61 = vrot.slane %v798_v35, 2  ;;  %v836_v28 = vrot.slane %v835_v47, 4  ;;  %v5141_v38 = vmul.f32 0.020408163, %v6998_v14 }
  0xb9   :  { %v787_v59 = vadd.f32 %v786_v55, %v785_v26  ;;  %v812_v19 = vrot.slane %v811_v11, 2  ;;  %v824_v20 = vadd.f32 %v823_v0, %v822_v41  ;;  %v5144_v4 = vmul.f32 0.020408163, %v6999_v37  ;;  %v7010_v26 = vld [vmem:[#allocation95_spill] sm:$0xff] }
  0xba   :  { %v800_v27 = vadd.f32 %v799_v61, %v798_v35  ;;  %v837_v46 = vadd.f32 %v836_v28, %v835_v47  ;;  %v5147_v25 = vmul.f32 0.020408163, %v7000_v60  ;;  %v775_v52 = vrot.slane %v774_v9, 1  ;;  %v7011_v35 = vld [vmem:[#allocation96_spill] sm:$0xff] }
  0xbb   :  { %v813_v40 = vadd.f32 %v812_v19, %v811_v11  ;;  %v825_v48 = vrot.slane %v824_v20, 2  ;;  %v5150_v51 = vmul.f32 0.020408163, %v7001_v54  ;;  %v788_v58 = vrot.slane %v787_v59, 1 }
  0xbc   :  { %v838_v57 = vrot.slane %v837_v46, 2  ;;  %v5153_v53 = vmul.f32 0.020408163, %v7002_v24  ;;  %v5156_v42 = vmul.f32 0.020408163, %v7003_v29  ;;  %v801_v43 = vrot.slane %v800_v27, 1 }
  0xbd   :  { %v814_v21 = vrot.slane %v813_v40, 1  ;;  %v826_v63 = vadd.f32 %v825_v48, %v824_v20  ;;  %v5159_v44 = vmul.f32 0.020408163, %v7004_v56  ;;  %v5162_v6 = vmul.f32 0.020408163, %v7005_v62 }
  0xbe   :  { %v839_v13 = vadd.f32 %v838_v57, %v837_v46  ;;  %v5165_v2 = vmul.f32 0.020408163, %v7006_v17  ;;  %v5168_v50 = vmul.f32 0.020408163, %v7007_v33  ;;  %v776_v3 = vadd.f32 %v775_v52, %v774_v9 }
  0xbf   :  { %v5171_v45 = vmul.f32 0.020408163, %v7008_v5  ;;  %v5174_v12 = vmul.f32 0.020408163, %v7009_v34  ;;  %v5177_v23 = vmul.f32 0.020408163, %v7010_v26  ;;  %v789_v41 = vadd.f32 %v788_v58, %v787_v59 }
  0xc0   :  { %v827_v49 = vrot.slane %v826_v63, 1  ;;  %v5180_v47 = vmul.f32 0.020408163, %v7011_v35  ;;  %v856_v55 = vmul.f32 0.020408163, %v5090_v15  ;;  %v802_v11 = vadd.f32 %v801_v43, %v800_v27 }
  0xc1   :  { %v815_v0 = vadd.f32 %v814_v21, %v813_v40  ;;  %v857_v9 = vmul.f32 0.020408163, %v5094_v39  ;;  %v858_v61 = vmul.f32 0.020408163, %v5100_v36  ;;  %v840_v28 = vrot.slane %v839_v13, 1 }
  0xc2   :  { %v859_v19 = vmul.f32 0.020408163, %v5106_v1  ;;  %v870_v20 = vmul.f32 %v5141_v38, %v5141_v38  ;;  %v871_v59 = vmul.f32 %v5144_v4, %v5144_v4  ;;  %v860_v14 = vmul.f32 0.020408163, %v724_v10 }
  0xc3   :  { %v872_v46 = vmul.f32 %v5147_v25, %v5147_v25  ;;  %v873_v15 = vmul.f32 %v5150_v51, %v5150_v51  ;;  %v874_v39 = vmul.f32 %v5153_v53, %v5153_v53  ;;  %v828_v36 = vadd.f32 %v827_v49, %v826_v63 }
  0xc4   :  { %v861_v27 = vmul.f32 0.020408163, %v737_v8  ;;  %v862_v37 = vmul.f32 0.020408163, %v750_v22  ;;  %v875_v1 = vmul.f32 %v5156_v42, %v5156_v42  ;;  %v863_v60 = vmul.f32 0.020408163, %v763_v31 }
  0xc5   :  { %v864_v52 = vmul.f32 0.020408163, %v776_v3  ;;  %v876_v10 = vmul.f32 %v5159_v44, %v5159_v44  ;;  %v877_v40 = vmul.f32 %v5162_v6, %v5162_v6  ;;  %v841_v48 = vadd.f32 %v840_v28, %v839_v13 }
  0xc6   :  { %v865_v54 = vmul.f32 0.020408163, %v789_v41  ;;  %v884_v58 = vsub.f32 %v856_v55, %v870_v20  ;;  %v885_v57 = vsub.f32 %v857_v9, %v871_v59  ;;  %v878_v24 = vmul.f32 %v5165_v2, %v5165_v2 }
  0xc7   :  { %v886_v8 = vsub.f32 %v858_v61, %v872_v46  ;;  %v887_v22 = vsub.f32 %v859_v19, %v873_v15  ;;  %v888_v29 = vsub.f32 %v860_v14, %v874_v39  ;;  %v866_v43 = vmul.f32 0.020408163, %v802_v11 }
  0xc8   :  { %v867_v21 = vmul.f32 0.020408163, %v815_v0  ;;  %v879_v31 = vmul.f32 %v5168_v50, %v5168_v50  ;;  %v889_v63 = vsub.f32 %v861_v27, %v875_v1  ;;  %v880_v56 = vmul.f32 %v5171_v45, %v5171_v45 }
  0xc9   :  { %v881_v13 = vmul.f32 %v5174_v12, %v5174_v12  ;;  %v890_v62 = vsub.f32 %v862_v37, %v876_v10  ;;  %v891_v17 = vsub.f32 %v863_v60, %v877_v40  ;;  %v898_v33 = vmax.f32 %v884_v58, 0.0 }
  0xca   :  { %v899_v3 = vmax.f32 %v885_v57, 0.0  ;;  %v900_v5 = vmax.f32 %v886_v8, 0.0  ;;  %v901_v34 = vmax.f32 %v887_v22, 0.0  ;;  %v868_v26 = vmul.f32 0.020408163, %v828_v36 }
  0xcb   :  { %v882_v41 = vmul.f32 %v5177_v23, %v5177_v23  ;;  %v892_v49 = vsub.f32 %v864_v52, %v878_v24  ;;  %v902_v35 = vmax.f32 %v888_v29, 0.0  ;;  %v869_v55 = vmul.f32 0.020408163, %v841_v48 }
  0xcc   :  { %v883_v11 = vmul.f32 %v5180_v47, %v5180_v47  ;;  %v893_v0 = vsub.f32 %v865_v54, %v879_v31  ;;  %v903_v9 = vmax.f32 %v889_v63, 0.0  ;;  %v894_v61 = vsub.f32 %v866_v43, %v880_v56 }
  0xcd   :  { %v904_v28 = vmax.f32 %v890_v62, 0.0  ;;  %v914_v19 = vadd.f32 1e-05, %v898_v33  ;;  %v915_v20 = vadd.f32 1e-05, %v899_v3  ;;  %v895_v59 = vsub.f32 %v867_v21, %v881_v13  ;;  %v5219_v62 = vld [vmem:[%s6674_s0] sm:$0xff] }
  0xce   :  { %v905_v14 = vmax.f32 %v891_v17, 0.0  ;;  %v916_v46 = vadd.f32 1e-05, %v900_v5  ;;  %v917_v15 = vadd.f32 1e-05, %v901_v34  ;;  %v896_v39 = vsub.f32 %v868_v26, %v882_v41  ;;  %v5224_v17 = vld [vmem:[%s6674_s0 + $0x70] sm:$0xff] }
  0xcf   :  { %v906_v36 = vmax.f32 %v892_v49, 0.0  ;;  %v918_v27 = vadd.f32 1e-05, %v902_v35  ;;  %3548 = vrsqrt.f32 %v914_v19  ;;  %v897_v37 = vsub.f32 %v869_v55, %v883_v11  ;;  %v5234_v5 = vld [vmem:[%s6674_s0 + $0x8] sm:$0xff]  ;;  %v5239_v34 = vld [vmem:[%s6674_s0 + $0x78] sm:$0xff]  ;;  %v5246_v41 = vld [vmem:[%s6674_s0 + $0x10] sm:$0xff] }
  0xd0   :  { %v907_v1 = vmax.f32 %v893_v0, 0.0  ;;  %v919_v60 = vadd.f32 1e-05, %v903_v9  ;;  %3550 = vrsqrt.f32 %v915_v20  ;;  %v908_v52 = vmax.f32 %v894_v61, 0.0  ;;  %v5251_v49 = vld [vmem:[%s6674_s0 + $0x80] sm:$0xff]  ;;  %v5425_v35 = vld [vmem:[%s6674_s0 + $0xe8] sm:$0xff] }
  0xd1   :  { %v920_v10 = vadd.f32 1e-05, %v904_v28  ;;  %3552 = vrsqrt.f32 %v916_v46  ;;  %v909_v40 = vmax.f32 %v895_v59, 0.0  ;;  %v921_v48 = vadd.f32 1e-05, %v905_v14  ;;  %v5278_v14 = vld [vmem:[%s6674_s0 + $0x18] sm:$0xff] }
  0xd2   :  { %3554 = vrsqrt.f32 %v917_v15  ;;  %v910_v54 = vmax.f32 %v896_v39, 0.0  ;;  %v922_v58 = vadd.f32 1e-05, %v906_v36  ;;  %v963_v57 = vlaneseq  ;;  %v5283_v46 = vld [vmem:[%s6674_s0 + $0x88] sm:$0xff]  ;;  %v5290_v36 = vld [vmem:[%s6674_s0 + $0x20] sm:$0xff]  ;;  %7028 = vst [vmem:[#allocation6_spill] sm:$0xff] %v5425_v35 }
  0xd3   :  { %3556 = vrsqrt.f32 %v918_v27  ;;  %v911_v24 = vmax.f32 %v897_v37, 0.0  ;;  %v923_v8 = vadd.f32 1e-05, %v907_v1  ;;  %v3783_v22 = vmov 1966171168   ;;  %v5295_v27 = vld [vmem:[%s6674_s0 + $0x90] sm:$0xff] }
  0xd4   :  { %3558 = vrsqrt.f32 %v919_v60  ;;  %v961_v29 = vunpack.c.l.s4 %v3783_v22  ;;  %v924_v43 = vadd.f32 1e-05, %v908_v52  ;;  %v925_v21 = vadd.f32 1e-05, %v909_v40  ;;  %v5302_v1 = vld [vmem:[%s6674_s0 + $0x28] sm:$0xff]  ;;  %v5307_v60 = vld [vmem:[%s6674_s0 + $0x98] sm:$0xff] }
  0xd5   :  { %3560 = vrsqrt.f32 %v920_v10  ;;  %v926_v31 = vadd.f32 1e-05, %v910_v54  ;;  %v5214_v63 = vshrl.u32 %v963_v57, 7  ;;  %v927_v56 = vadd.f32 1e-05, %v911_v24  ;;  %v5314_v10 = vld [vmem:[%s6674_s0 + $0x30] sm:$0xff] }
  0xd6   :  { %3562 = vrsqrt.f32 %v921_v48  ;;  %v962_v13 = vunpack.c.0.s8 %v961_v29  ;;  %v5319_v40 = vld [vmem:[%s6674_s0 + $0xa0] sm:$0xff]  ;;  %v5326_v54 = vld [vmem:[%s6674_s0 + $0x38] sm:$0xff]  ;;  %v5343_v29 = vld [vmem:[%s6674_s0 + $0xb0] sm:$0xff] }
  0xd7   :  { %3564 = vrsqrt.f32 %v922_v58  ;;  %7012 = vst [vmem:[#allocation43_spill] sm:$0xff] %v5214_v63  ;;  %v5229_v3 = vsub.s32 0, %v5214_v63  ;;  %v5256_v55 = vsub.s32 1, %v5214_v63  ;;  %v5259_v11 = vsub.s32 2, %v5214_v63  ;;  %v5331_v58 = vld [vmem:[%s6674_s0 + $0xa8] sm:$0xff]  ;;  %v5338_v22 = vld [vmem:[%s6674_s0 + $0x40] sm:$0xff] }
  0xd8   :  { %3566 = vrsqrt.f32 %v923_v8  ;;  %v5262_v0 = vsub.s32 3, %v5214_v63  ;;  %v5265_v9 = vsub.s32 4, %v5214_v63  ;;  %v5268_v61 = vsub.s32 5, %v5214_v63  ;;  %v5374_v57 = vld [vmem:[%s6674_s0 + $0x58] sm:$0xff]  ;;  %v5386_v52 = vld [vmem:[%s6674_s0 + $0x60] sm:$0xff]  ;;  %v5398_v15 = vld [vmem:[%s6674_s0 + $0x68] sm:$0xff] }
  0xd9   :  { %3568 = vrsqrt.f32 %v924_v43  ;;  %7013 = vst [vmem:[#allocation45_spill] sm:$0xff] %v5256_v55  ;;  %7014 = vst [vmem:[#allocation46_spill] sm:$0xff] %v5259_v11  ;;  %v5272_v20 = vsub.s32 %v962_v13, %v5214_v63  ;;  %v5362_v13 = vld [vmem:[%s6674_s0 + $0x50] sm:$0xff]  ;;  %v5403_v48 = vld [vmem:[%s6674_s0 + $0xd8] sm:$0xff]  ;;  %v7092_v30 = vsub.s32 7, %v5214_v63 }
  0xda   :  { %3570 = vrsqrt.f32 %v925_v21  ;;  %7015 = vst [vmem:[#allocation60_spill] sm:$0xff] %v5262_v0  ;;  %7016 = vst [vmem:[#allocation62_spill] sm:$0xff] %v5265_v9  ;;  %v5350_v21 = vld [vmem:[%s6674_s0 + $0x48] sm:$0xff]  ;;  %v5410_v26 = vld [vmem:[%s6674_s0 + $0xe0] sm:$0xff] }
  0xdb   :  { %3572 = vrsqrt.f32 %v926_v31  ;;  %7017 = vst [vmem:[#allocation63_spill] sm:$0xff] %v5268_v61  ;;  %v5355_v31 = vld [vmem:[%s6674_s0 + $0xb8] sm:$0xff]  ;;  %7018 = vst [vmem:[#allocation47_spill] sm:$0xff] %v5362_v13  ;;  %v5415_v37 = vld [vmem:[%s6674_s0 + $0x150] sm:$0xff] }
  0xdc   :  { %v3549_v19 = vpop.eup %3548  ;;  %3574 = vrsqrt.f32 %v927_v56  ;;  %7020 = vst [vmem:[#allocation50_spill] sm:$0xff] %v5374_v57  ;;  %v5379_v56 = vld [vmem:[%s6674_s0 + $0xc8] sm:$0xff]  ;;  %7022 = vst [vmem:[#allocation51_spill] sm:$0xff] %v5386_v52  ;;  %v5478_v35 = vld [vmem:[%s6674_s0 + $0x178] sm:$0xff] }
  0xdd   :  { %v3551_v39 = vpop.eup %3550  ;;  %7021 = vst [vmem:[#allocation64_spill] sm:$0xff] %v5379_v56  ;;  %7024 = vst [vmem:[#allocation66_spill] sm:$0xff] %v5398_v15  ;;  %v5430_v15 = vld [vmem:[%s6674_s0 + $0x158] sm:$0xff] }
  0xde   :  { %v3553_v24 = vpop.eup %3552  ;;  %v956_v8 = vcombine.low %v3549_v19, %v3551_v39  ;;  %v5367_v19 = vld [vmem:[%s6674_s0 + $0xc0] sm:$0xff]  ;;  %v5391_v39 = vld [vmem:[%s6674_s0 + $0xd0] sm:$0xff]  ;;  %7025 = vst [vmem:[#allocation69_spill] sm:$0xff] %v5403_v48  ;;  %7026 = vst [vmem:[#allocation70_spill] sm:$0xff] %v5410_v26 }
  0xdf   :  { %7019 = vst [vmem:[#allocation49_spill] sm:$0xff] %v5367_v19  ;;  %v3555_v43 = vpop.eup %3554  ;;  %7023 = vst [vmem:[#allocation53_spill] sm:$0xff] %v5391_v39  ;;  %v5449_v26 = vld [vmem:[%s6674_s0 + $0xf8] sm:$0xff]  ;;  %v5454_v48 = vld [vmem:[%s6674_s0 + $0x168] sm:$0xff] }
  0xe0   :  { %7027 = vst [vmem:[#allocation71_spill] sm:$0xff] %v5415_v37  ;;  %v3557_v59 = vpop.eup %3556  ;;  %v957_v28 = vcombine.low %v3553_v24, %v3555_v43  ;;  %v5420_v52 = vrot.slane %v956_v8, %v5272_v20  ;;  %7029 = vst [vmem:[#allocation20_spill] sm:$0xff] %v5430_v15  ;;  %v5437_v24 = vld [vmem:[%s6674_s0 + $0xf0] sm:$0xff]  ;;  %v5442_v8 = vld [vmem:[%s6674_s0 + $0x160] sm:$0xff] }
  0xe1   :  { %7030 = vst [vmem:[#allocation7_spill] sm:$0xff] %v5437_v24  ;;  %7031 = vst [vmem:[#allocation21_spill] sm:$0xff] %v5442_v8  ;;  %v3559_v33 = vpop.eup %3558  ;;  %v5461_v15 = vld [vmem:[%s6674_s0 + $0x100] sm:$0xff]  ;;  %v5466_v43 = vld [vmem:[%s6674_s0 + $0x170] sm:$0xff] }
  0xe2   :  { %7032 = vst [vmem:[#allocation8_spill] sm:$0xff] %v5449_v26  ;;  %7033 = vst [vmem:[#allocation22_spill] sm:$0xff] %v5454_v48  ;;  %v5473_v8 = vld [vmem:[%s6674_s0 + $0x108] sm:$0xff]  ;;  %v5485_v48 = vld [vmem:[%s6674_s0 + $0x110] sm:$0xff]  ;;  %v958_v37 = vcombine.low %v3557_v59, %v3559_v33  ;;  %v5495_v39 = vrot.slane %v957_v28, %v5272_v20 }
  0xe3   :  { %7034 = vst [vmem:[#allocation40_spill] sm:$0xff] %v5461_v15  ;;  %7035 = vst [vmem:[#allocation9_spill] sm:$0xff] %v5466_v43  ;;  %v5490_v24 = vld [vmem:[%s6674_s0 + $0x180] sm:$0xff]  ;;  %v3561_v43 = vpop.eup %3560  ;;  %v5500_v26 = vld [vmem:[%s6674_s0 + $0x118] sm:$0xff] }
  0xe4   :  { %7036 = vst [vmem:[#allocation23_spill] sm:$0xff] %v5473_v8  ;;  %7037 = vst [vmem:[#allocation10_spill] sm:$0xff] %v5478_v35  ;;  %v5505_v8 = vld [vmem:[%s6674_s0 + $0x188] sm:$0xff]  ;;  %v5512_v33 = vld [vmem:[%s6674_s0 + $0x120] sm:$0xff]  ;;  %v3563_v15 = vpop.eup %3562  ;;  %v980_v57 = vrot.slane %v958_v37, %v5272_v20 }
  0xe5   :  { %7038 = vst [vmem:[#allocation24_spill] sm:$0xff] %v5485_v48  ;;  %7039 = vst [vmem:[#allocation44_spill] sm:$0xff] %v5490_v24  ;;  %v5517_v28 = vld [vmem:[%s6674_s0 + $0x190] sm:$0xff]  ;;  %v5524_v48 = vld [vmem:[%s6674_s0 + $0x128] sm:$0xff]  ;;  %v959_v24 = vcombine.low %v3561_v43, %v3563_v15 }
  0xe6   :  { %7040 = vst [vmem:[#allocation48_spill] sm:$0xff] %v5500_v26  ;;  %7041 = vst [vmem:[#allocation11_spill] sm:$0xff] %v5505_v8  ;;  %v5529_v35 = vld [vmem:[%s6674_s0 + $0x198] sm:$0xff]  ;;  %v5536_v8 = vld [vmem:[%s6674_s0 + $0x130] sm:$0xff] }
  0xe7   :  { %7042 = vst [vmem:[#allocation25_spill] sm:$0xff] %v5512_v33  ;;  %7043 = vst [vmem:[#allocation52_spill] sm:$0xff] %v5517_v28  ;;  %v5541_v59 = vld [vmem:[%s6674_s0 + $0x1a0] sm:$0xff]  ;;  %v5548_v28 = vld [vmem:[%s6674_s0 + $0x138] sm:$0xff] }
  0xe8   :  { %7044 = vst [vmem:[#allocation56_spill] sm:$0xff] %v5524_v48  ;;  %7045 = vst [vmem:[#allocation59_spill] sm:$0xff] %v5529_v35  ;;  %v5553_v26 = vld [vmem:[%s6674_s0 + $0x1a8] sm:$0xff]  ;;  %v5560_v35 = vld [vmem:[%s6674_s0 + $0x140] sm:$0xff]  ;;  %v988_v48 = vcombine.low %v5420_v52, %v5495_v39 }
  0xe9   :  { %7046 = vst [vmem:[#allocation12_spill] sm:$0xff] %v5536_v8  ;;  %7047 = vst [vmem:[#allocation26_spill] sm:$0xff] %v5541_v59  ;;  %v5565_v33 = vld [vmem:[%s6674_s0 + $0x1b0] sm:$0xff]  ;;  %v3565_v59 = vpop.eup %3564  ;;  %v5587_v15 = vld [vmem:[%s6674_s0 + $0x1c0] sm:$0xff] }
  0xea   :  { %7048 = vst [vmem:[#allocation61_spill] sm:$0xff] %v5548_v28  ;;  %7049 = vst [vmem:[#allocation13_spill] sm:$0xff] %v5553_v26  ;;  %v5575_v28 = vld [vmem:[%s6674_s0 + $0x148] sm:$0xff]  ;;  %v5580_v26 = vld [vmem:[%s6674_s0 + $0x1b8] sm:$0xff]  ;;  %v996_v56 = vrot.slane %v988_v48, %v5272_v20 }
  0xeb   :  { %7050 = vst [vmem:[#allocation27_spill] sm:$0xff] %v5560_v35  ;;  %7051 = vst [vmem:[#allocation65_spill] sm:$0xff] %v5565_v33  ;;  %v3567_v35 = vpop.eup %3566  ;;  %v5592_v37 = vld [vmem:[%s6674_s0 + $0x230] sm:$0xff]  ;;  %v5599_v39 = vld [vmem:[%s6674_s0 + $0x1c8] sm:$0xff] }
  0xec   :  { %7052 = vst [vmem:[#allocation54_spill] sm:$0xff] %v5575_v28  ;;  %7053 = vst [vmem:[#allocation55_spill] sm:$0xff] %v5580_v26  ;;  %v5604_v43 = vld [vmem:[%s6674_s0 + $0x238] sm:$0xff]  ;;  %v5611_v28 = vld [vmem:[%s6674_s0 + $0x1d0] sm:$0xff]  ;;  %v987_v26 = vrot.slane %v959_v24, %v5272_v20  ;;  %v1005_v33 = vcombine.low %v3565_v59, %v3567_v35 }
  0xed   :  { %7054 = vst [vmem:[#allocation57_spill] sm:$0xff] %v5587_v15  ;;  %7055 = vst [vmem:[#allocation58_spill] sm:$0xff] %v5592_v37  ;;  %v5616_v52 = vld [vmem:[%s6674_s0 + $0x240] sm:$0xff]  ;;  %v5623_v37 = vld [vmem:[%s6674_s0 + $0x1d8] sm:$0xff] }
  0xee   :  { %7056 = vst [vmem:[#allocation14_spill] sm:$0xff] %v5599_v39  ;;  %7057 = vst [vmem:[#allocation28_spill] sm:$0xff] %v5604_v43  ;;  %v5628_v8 = vld [vmem:[%s6674_s0 + $0x248] sm:$0xff]  ;;  %v3569_v43 = vpop.eup %3568  ;;  %v5636_v15 = vld [vmem:[%s6674_s0 + $0x1e0] sm:$0xff] }
  0xef   :  { %7058 = vst [vmem:[#allocation15_spill] sm:$0xff] %v5611_v28  ;;  %7059 = vst [vmem:[#allocation29_spill] sm:$0xff] %v5616_v52  ;;  %v5641_v28 = vld [vmem:[%s6674_s0 + $0x250] sm:$0xff]  ;;  %v5648_v39 = vld [vmem:[%s6674_s0 + $0x1e8] sm:$0xff]  ;;  %v3571_v59 = vpop.eup %3570 }
  0xf0   :  { %7060 = vst [vmem:[#allocation67_spill] sm:$0xff] %v5623_v37  ;;  %7061 = vst [vmem:[#allocation16_spill] sm:$0xff] %v5628_v8  ;;  %v5653_v35 = vld [vmem:[%s6674_s0 + $0x258] sm:$0xff]  ;;  %v5660_v37 = vld [vmem:[%s6674_s0 + $0x1f0] sm:$0xff]  ;;  %v989_v8 = vcombine.low %v980_v57, %v987_v26  ;;  %v1006_v13 = vcombine.low %v3569_v43, %v3571_v59 }
  0xf1   :  { %7062 = vst [vmem:[#allocation30_spill] sm:$0xff] %v5636_v15  ;;  %7063 = vst [vmem:[#allocation68_spill] sm:$0xff] %v5641_v28  ;;  %v5665_v52 = vld [vmem:[%s6674_s0 + $0x260] sm:$0xff]  ;;  %v5672_v28 = vld [vmem:[%s6674_s0 + $0x1f8] sm:$0xff] }
  0xf2   :  { %7064 = vst [vmem:[#allocation17_spill] sm:$0xff] %v5648_v39  ;;  %7065 = vst [vmem:[#allocation31_spill] sm:$0xff] %v5653_v35  ;;  %v5677_v24 = vld [vmem:[%s6674_s0 + $0x268] sm:$0xff]  ;;  %v5684_v35 = vld [vmem:[%s6674_s0 + $0x200] sm:$0xff] }
  0xf3   :  { %7066 = vst [vmem:[#allocation72_spill] sm:$0xff] %v5660_v37  ;;  %7067 = vst [vmem:[#allocation73_spill] sm:$0xff] %v5665_v52  ;;  %v5689_v15 = vld [vmem:[%s6674_s0 + $0x270] sm:$0xff]  ;;  %v5696_v52 = vld [vmem:[%s6674_s0 + $0x208] sm:$0xff]  ;;  %v1014_v37 = vrot.slane %v1005_v33, %v5272_v20 }
  0xf4   :  { %7068 = vst [vmem:[#allocation18_spill] sm:$0xff] %v5672_v28  ;;  %7069 = vst [vmem:[#allocation34_spill] sm:$0xff] %v5677_v24  ;;  %v5701_v39 = vld [vmem:[%s6674_s0 + $0x278] sm:$0xff]  ;;  %v3573_v24 = vpop.eup %3572  ;;  %v5715_v19 = vld [vmem:[%s6674_s0 + $0x280] sm:$0xff] }
  0xf5   :  { %7070 = vst [vmem:[#allocation19_spill] sm:$0xff] %v5684_v35  ;;  %7071 = vst [vmem:[#allocation37_spill] sm:$0xff] %v5689_v15  ;;  %v3575_v35 = vpop.eup %3574  ;;  %v5710_v15 = vld [vmem:[%s6674_s0 + $0x210] sm:$0xff]  ;;  %v5722_v26 = vld [vmem:[%s6674_s0 + $0x218] sm:$0xff] }
  0xf6   :  { %7072 = vst [vmem:[#allocation35_spill] sm:$0xff] %v5696_v52  ;;  %7073 = vst [vmem:[#allocation89_spill] sm:$0xff] %v5701_v39  ;;  %v5727_v48 = vld [vmem:[%s6674_s0 + $0x288] sm:$0xff]  ;;  %v5734_v33 = vld [vmem:[%s6674_s0 + $0x220] sm:$0xff] }
  0xf7   :  { %7074 = vst [vmem:[#allocation74_spill] sm:$0xff] %v5710_v15  ;;  %7075 = vst [vmem:[#allocation39_spill] sm:$0xff] %v5715_v19  ;;  %v5739_v43 = vld [vmem:[%s6674_s0 + $0x290] sm:$0xff]  ;;  %v5746_v28 = vld [vmem:[%s6674_s0 + $0x228] sm:$0xff]  ;;  %v1007_v15 = vcombine.low %v3573_v24, %v3575_v35  ;;  %v1021_v19 = vrot.slane %v1006_v13, %v5272_v20 }
  0xf8   :  { %7076 = vst [vmem:[#allocation36_spill] sm:$0xff] %v5722_v26  ;;  %7077 = vst [vmem:[#allocation75_spill] sm:$0xff] %v5727_v48  ;;  %v5751_v57 = vld [vmem:[%s6674_s0 + $0x298] sm:$0xff]  ;;  %v1003_v48 = vrot.slane %v989_v8, %v5272_v20  ;;  %v5760_v59 = vld [vmem:[%s6674_s0 + $0x2a0] sm:$0x1] }
  0xf9   :  { %7078 = vst [vmem:[#allocation42_spill] sm:$0xff] %v5734_v33  ;;  %7079 = vst [vmem:[#allocation94_spill] sm:$0xff] %v5739_v43  ;;  %v912_v43 = vld [vmem:[%s6675_s1] sm:$0xff]  ;;  %v5770_v26 = vld [vmem:[%s6674_s0 + $0x2a8] sm:$0x1]  ;;  %v1029_v35 = vcombine.low %v1014_v37, %v1021_v19  ;;  %v7091_v37 = vsub.s32 6, %v5214_v63 }
  0xfa   :  { %7080 = vst [vmem:[#allocation90_spill] sm:$0xff] %v5746_v28  ;;  %7081 = vst [vmem:[#allocation91_spill] sm:$0xff] %v5751_v57  ;;  %v5777_v8 = vld [vmem:[%s6674_s0 + $0x2b0] sm:$0x1]  ;;  %v5784_v24 = vld [vmem:[%s6674_s0 + $0x2b8] sm:$0x1]  ;;  %v1028_v28 = vrot.slane %v1007_v15, %v5272_v20 }
  0xfb   :  { %7082 = vst [vmem:[#allocation38_spill] sm:$0xff] %v5760_v59  ;;  %7083 = vst [vmem:[#allocation41_spill] sm:$0xff] %v5770_v26  ;;  %v5791_v13 = vld [vmem:[%s6674_s0 + $0x2c0] sm:$0x1]  ;;  %v1004_v59 = vcombine.low %v996_v56, %v1003_v48  ;;  %v5813_v56 = vld [vmem:[%s6674_s0 + $0x2d8] sm:$0x1]  ;;  %v1036_v48 = vrot.slane %v1029_v35, %v5272_v20 }
  0xfc   :  { %7084 = vst [vmem:[#allocation81_spill] sm:$0xff] %v5777_v8  ;;  %7085 = vst [vmem:[#allocation82_spill] sm:$0xff] %v5784_v24  ;;  %v5799_v8 = vld [vmem:[%s6674_s0 + $0x2c8] sm:$0x1]  ;;  %v5806_v24 = vld [vmem:[%s6674_s0 + $0x2d0] sm:$0x1]  ;;  %v1043_v33 = vrot.slane %v1028_v28, %v5272_v20 }
  0xfd   :  { %7086 = vst [vmem:[#allocation83_spill] sm:$0xff] %v5791_v13  ;;  %7087 = vst [vmem:[#allocation84_spill] sm:$0xff] %v5799_v8  ;;  %v1047_v8 = vmul.f32 %v1004_v59, %v912_v43  ;;  %v5826_v26 = vld [vmem:[%s6674_s0 + $0x2f0] sm:$0x1]  ;;  %v913_v15 = vld [vmem:[%s6675_s1 + $0x8] sm:$0x3f] }
  0xfe   :  { %7088 = vst [vmem:[#allocation85_spill] sm:$0xff] %v5806_v24  ;;  %7089 = vst [vmem:[#allocation86_spill] sm:$0xff] %v5813_v56  ;;  %v1044_v43 = vcombine.low %v1036_v48, %v1043_v33 }
  0xff   :  { %7090 = vst [vmem:[#allocation87_spill] sm:$0xff] %v5826_v26  ;;  %v1056_v59 = vrot.slane %v1047_v8, %v5229_v3  ;;  %v1060_v19 = vrot.slane %v1047_v8, %v5256_v55  ;;  %v1064_v24 = vrot.slane %v1047_v8, %v5259_v11  ;;  %v1068_v26 = vrot.slane %v1047_v8, %v5262_v0 }
 0x100   :  { %v1072_v7 = vrot.slane %v1047_v8, %v5265_v9  ;;  %v1076_v32 = vrot.slane %v1047_v8, %v5268_v61  ;;  %v1080_v18 = vrot.slane %v1047_v8, %v7091_v37  ;;  %v1048_v35 = vmul.f32 %v1044_v43, %v913_v15 }
 0x101   :  { %v1084_v28 = vrot.slane %v1047_v8, %v7092_v30  ;;  %v1123_v33 = vmul.f32 %v1056_v59, %v5141_v38  ;;  %v1124_v48 = vmul.f32 %v1060_v19, %v5144_v4  ;;  %v1125_v16 = vmul.f32 %v1064_v24, %v5147_v25 }
 0x102   :  { %v1126_v56 = vmul.f32 %v1068_v26, %v5150_v51  ;;  %v1127_v13 = vmul.f32 %v1072_v7, %v5153_v53  ;;  %v1128_v57 = vmul.f32 %v1076_v32, %v5156_v42  ;;  %v1088_v52 = vrot.slane %v1048_v35, %v5229_v3 }
 0x103   :  { %v1092_v37 = vrot.slane %v1048_v35, %v5256_v55  ;;  %v1096_v15 = vrot.slane %v1048_v35, %v5259_v11  ;;  %v1100_v30 = vrot.slane %v1048_v35, %v5262_v0  ;;  %v1104_v38 = vrot.slane %v1048_v35, %v5265_v9 }
 0x104   :  { %v1108_v4 = vrot.slane %v1048_v35, %v5268_v61  ;;  %v1129_v25 = vmul.f32 %v1080_v18, %v5159_v44  ;;  %v1130_v51 = vmul.f32 %v1084_v28, %v5162_v6  ;;  %v1131_v53 = vmul.f32 %v1088_v52, %v5165_v2 }
 0x105   :  { %v1132_v42 = vmul.f32 %v1092_v37, %v5168_v50  ;;  %v1133_v8 = vmul.f32 %v1096_v15, %v5171_v45  ;;  %v1134_v43 = vmul.f32 %v1100_v30, %v5174_v12  ;;  %v1135_v63 = vmul.f32 %v1104_v38, %v5177_v23 }
 0x106   :  { %v1136_v0 = vmul.f32 %v1108_v4, %v5180_v47  ;;  %v1151_v11 = vcombine.low %v1123_v33, %v1124_v48  ;;  %v1152_v9 = vcombine.low %v1125_v16, %v1126_v56  ;;  %v1153_v55 = vcombine.low %v1127_v13, %v1128_v57 }
 0x107   :  { %v1154_v35 = vcombine.low %v1129_v25, %v1130_v51  ;;  %v1200_v61 = vcombine.low %v1131_v53, %v1132_v42  ;;  %v1201_v44 = vcombine.low %v1133_v8, %v1134_v43  ;;  %v1300_v50 = vpack.c.bf16 %v1056_v59, %v1056_v59 }
 0x108   :  { %v1161_v6 = vrot.slane %v1151_v11, %v5272_v20  ;;  %v1168_v2 = vrot.slane %v1152_v9, %v5272_v20  ;;  %v1202_v39 = vcombine.low %v1135_v63, %v1136_v0  ;;  %v1175_v45 = vrot.slane %v1153_v55, %v5272_v20 }
 0x109   :  { %v1182_v12 = vrot.slane %v1154_v35, %v5272_v20  ;;  %v1209_v23 = vrot.slane %v1200_v61, %v5272_v20  ;;  %v1216_v47 = vrot.slane %v1201_v44, %v5272_v20  ;;  %v1301_v57 = vpack.c.bf16 %v1060_v19, %v1060_v19 }
 0x10a   :  { %v1183_v33 = vcombine.low %v1161_v6, %v1168_v2  ;;  %v1223_v16 = vrot.slane %v1202_v39, %v5272_v20  ;;  %v1302_v13 = vpack.c.bf16 %v1064_v24, %v1064_v24  ;;  %v1303_v11 = vpack.c.bf16 %v1068_v26, %v1068_v26  ;;  %v1049_v39 = vld [vmem:[%s6676_s2] sm:$0xff] }
 0x10b   :  { %v1184_v56 = vcombine.low %v1175_v45, %v1182_v12  ;;  %v1224_v48 = vcombine.low %v1209_v23, %v1216_v47  ;;  %v1304_v25 = vpack.c.bf16 %v1072_v7, %v1072_v7  ;;  %v1305_v55 = vpack.c.bf16 %v1076_v32, %v1076_v32  ;;  %v1050_v7 = vld [vmem:[%s6676_s2 + $0x8] sm:$0x3f] }
 0x10c   :  { %v1191_v63 = vrot.slane %v1183_v33, %v5272_v20  ;;  %v1238_v0 = vrot.slane %v1223_v16, %v5272_v20  ;;  %v1306_v9 = vpack.c.bf16 %v1080_v18, %v1080_v18  ;;  %v1307_v51 = vpack.c.bf16 %v1084_v28, %v1084_v28 }
 0x10d   :  { %v1198_v59 = vrot.slane %v1184_v56, %v5272_v20  ;;  %v1231_v61 = vrot.slane %v1224_v48, %v5272_v20  ;;  %v1308_v53 = vpack.c.bf16 %v1088_v52, %v1088_v52  ;;  %v1309_v26 = vpack.c.bf16 %v1092_v37, %v1092_v37 }
 0x10e   :  { %v1310_v24 = vpack.c.bf16 %v1096_v15, %v1096_v15  ;;  %v1311_v19 = vpack.c.bf16 %v1100_v30, %v1100_v30  ;;  %v1312_v42 = vpack.c.bf16 %v1104_v38, %v1104_v38  ;;  %v1313_v8 = vpack.c.bf16 %v1108_v4, %v1108_v4 }
 0x10f   :  { %v1199_v32 = vcombine.low %v1191_v63, %v1198_v59  ;;  %v1239_v18 = vcombine.low %v1231_v61, %v1238_v0  ;;  %v1315_v43 = vpack.i.b16 %v1300_v50, %v1300_v50  ;;  %v1322_v35 = vpack.i.b16 %v1301_v57, %v1301_v57 }
 0x110   :  { %v1329_v20 = vpack.i.b16 %v1302_v13, %v1302_v13  ;;  %v1336_v28 = vpack.i.b16 %v1303_v11, %v1303_v11  ;;  %v1343_v52 = vpack.i.b16 %v1304_v25, %v1304_v25  ;;  %v1350_v45 = vpack.i.b16 %v1305_v55, %v1305_v55 }
 0x111   :  { %v5886_v44 = vsub.f32 %v1049_v39, %v1199_v32  ;;  %v5888_v6 = vsub.f32 %v1050_v7, %v1239_v18  ;;  %v5891_v2 = vrot.slane %v1315_v43, %v5229_v3  ;;  %v5894_v37 = vrot.slane %v1322_v35, %v5229_v3  ;;  %v7107_v32 = vld [vmem:[#allocation64_spill] sm:$0xff]  ;;  %v7108_v18 = vld [vmem:[#allocation50_spill] sm:$0xff]  ;;  %v7111_v43 = vld [vmem:[#allocation51_spill] sm:$0xff] }
 0x112   :  { %v5897_v15 = vrot.slane %v1329_v20, %v5229_v3  ;;  %v5900_v30 = vrot.slane %v1336_v28, %v5229_v3  ;;  %v5903_v38 = vrot.slane %v1343_v52, %v5229_v3  ;;  %v5906_v4 = vrot.slane %v1350_v45, %v5229_v3  ;;  %v7113_v35 = vld [vmem:[#allocation69_spill] sm:$0xff]  ;;  %v7114_v20 = vld [vmem:[#allocation66_spill] sm:$0xff]  ;;  %v7116_v28 = vld [vmem:[#allocation71_spill] sm:$0xff] }
 0x113   :  { %v1357_v50 = vpack.i.b16 %v1306_v9, %v1306_v9  ;;  %v1364_v12 = vpack.i.b16 %v1307_v51, %v1307_v51  ;;  %v1371_v23 = vpack.i.b16 %v1308_v53, %v1308_v53  ;;  %v1378_v47 = vpack.i.b16 %v1309_v26, %v1309_v26  ;;  %v7117_v52 = vld [vmem:[#allocation70_spill] sm:$0xff] }
 0x114   :  { %v1385_v33 = vpack.i.b16 %v1310_v24, %v1310_v24  ;;  %v1392_v16 = vpack.i.b16 %v1311_v19, %v1311_v19  ;;  %v1399_v57 = vpack.i.b16 %v1312_v42, %v1312_v42  ;;  %v1406_v11 = vpack.i.b16 %v1313_v8, %v1313_v8  ;;  %v7104_v19 = vld [vmem:[#allocation49_spill] sm:$0xff]  ;;  %v7105_v42 = vld [vmem:[#allocation47_spill] sm:$0xff] }
 0x115   :  { %v1362_v13 = vrot.slane %v1357_v50, %v5229_v3  ;;  %v1369_v56 = vrot.slane %v1364_v12, %v5229_v3  ;;  %v1376_v48 = vrot.slane %v1371_v23, %v5229_v3  ;;  %v1383_v25 = vrot.slane %v1378_v47, %v5229_v3  ;;  %v7110_v8 = vld [vmem:[#allocation53_spill] sm:$0xff]  ;;  %v7119_v12 = vld [vmem:[#allocation20_spill] sm:$0xff]  ;;  %v7120_v23 = vld [vmem:[#allocation6_spill] sm:$0xff] }
 0x116   :  { %v1390_v63 = vrot.slane %v1385_v33, %v5229_v3  ;;  %v1397_v0 = vrot.slane %v1392_v16, %v5229_v3  ;;  %v1404_v55 = vrot.slane %v1399_v57, %v5229_v3  ;;  %v1411_v9 = vrot.slane %v1406_v11, %v5229_v3  ;;  %v7122_v16 = vld [vmem:[#allocation21_spill] sm:$0xff]  ;;  %v7123_v57 = vld [vmem:[#allocation7_spill] sm:$0xff] }
 0x117   :  { %v7093_v59 = vpack.c.bf16 %v5224_v17, %v5219_v62  ;;  %v7095_v51 = vpack.c.bf16 %v5239_v34, %v5234_v5  ;;  %v7096_v39 = vpack.c.bf16 %v5251_v49, %v5246_v41  ;;  %v7097_v26 = vpack.c.bf16 %v5283_v46, %v5278_v14 }
 0x118   :  { %v7098_v17 = vpack.c.bf16 %v5295_v27, %v5290_v36  ;;  %v7099_v34 = vpack.c.bf16 %v5307_v60, %v5302_v1  ;;  %v7100_v49 = vpack.c.bf16 %v5319_v40, %v5314_v10  ;;  %v7101_v14 = vpack.c.bf16 %v5331_v58, %v5326_v54 }
 0x119   :  { %v5920_v61 = vmul.bf16 %v5891_v2, %v7093_v59  ;;  %v5926_v53 = vmul.bf16 %v5894_v37, %v7095_v51  ;;  %v5932_v7 = vmul.bf16 %v5897_v15, %v7096_v39  ;;  %v5938_v62 = vmul.bf16 %v5900_v30, %v7097_v26  ;;  %v7125_v51 = vld [vmem:[#allocation22_spill] sm:$0xff]  ;;  %v7126_v39 = vld [vmem:[#allocation8_spill] sm:$0xff] }
 0x11a   :  { %v5944_v5 = vmul.bf16 %v5903_v38, %v7098_v17  ;;  %v5950_v41 = vmul.bf16 %v5906_v4, %v7099_v34  ;;  %v5955_v24 = vmul.bf16 %v1362_v13, %v7100_v49  ;;  %v5960_v46 = vmul.bf16 %v1369_v56, %v7101_v14  ;;  %v7128_v34 = vld [vmem:[#allocation9_spill] sm:$0xff]  ;;  %v7129_v49 = vld [vmem:[#allocation40_spill] sm:$0xff] }
 0x11b   :  { %7094 = vst [vmem:[#allocation88_spill] sm:$0xff] %v5920_v61  ;;  %v7102_v36 = vpack.c.bf16 %v5343_v29, %v5338_v22  ;;  %v7103_v1 = vpack.c.bf16 %v5355_v31, %v5350_v21  ;;  %v7106_v10 = vpack.c.bf16 %v7104_v19, %v7105_v42  ;;  %v7109_v54 = vpack.c.bf16 %v7107_v32, %v7108_v18  ;;  %v7132_v19 = vld [vmem:[#allocation23_spill] sm:$0xff]  ;;  %v7134_v32 = vld [vmem:[#allocation44_spill] sm:$0xff] }
 0x11c   :  { %v7112_v22 = vpack.c.bf16 %v7110_v8, %v7111_v43  ;;  %v7115_v21 = vpack.c.bf16 %v7113_v35, %v7114_v20  ;;  %v7118_v45 = vpack.c.bf16 %v7116_v28, %v7117_v52  ;;  %v7121_v47 = vpack.c.bf16 %v7119_v12, %v7120_v23  ;;  %v7135_v18 = vld [vmem:[#allocation24_spill] sm:$0xff]  ;;  %v7137_v43 = vld [vmem:[#allocation11_spill] sm:$0xff]  ;;  %v7141_v28 = vld [vmem:[#allocation25_spill] sm:$0xff] }
 0x11d   :  { %v5965_v27 = vmul.bf16 %v1376_v48, %v7102_v36  ;;  %v5970_v60 = vmul.bf16 %v1383_v25, %v7103_v1  ;;  %v5975_v40 = vmul.bf16 %v1390_v63, %v7106_v10  ;;  %v5980_v58 = vmul.bf16 %v1397_v0, %v7109_v54  ;;  %v7131_v1 = vld [vmem:[#allocation10_spill] sm:$0xff]  ;;  %v7143_v12 = vld [vmem:[#allocation59_spill] sm:$0xff]  ;;  %v7144_v23 = vld [vmem:[#allocation56_spill] sm:$0xff] }
 0x11e   :  { %v5985_v29 = vmul.bf16 %v1404_v55, %v7112_v22  ;;  %v5990_v31 = vmul.bf16 %v1411_v9, %v7115_v21  ;;  %v5996_v50 = vmul.bf16 %v5891_v2, %v7118_v45  ;;  %v6002_v33 = vmul.bf16 %v5894_v37, %v7121_v47  ;;  %v7138_v22 = vld [vmem:[#allocation48_spill] sm:$0xff] }
 0x11f   :  { %v7124_v11 = vpack.c.bf16 %v7122_v16, %v7123_v57  ;;  %v7127_v26 = vpack.c.bf16 %v7125_v51, %v7126_v39  ;;  %v7130_v14 = vpack.c.bf16 %v7128_v34, %v7129_v49  ;;  %v7133_v42 = vpack.c.bf16 %v7131_v1, %v7132_v19  ;;  %v7140_v21 = vld [vmem:[#allocation52_spill] sm:$0xff]  ;;  %v7146_v57 = vld [vmem:[#allocation26_spill] sm:$0xff]  ;;  %v7150_v34 = vld [vmem:[#allocation61_spill] sm:$0xff] }
 0x120   :  { %v7136_v54 = vpack.c.bf16 %v7134_v32, %v7135_v18  ;;  %v7139_v35 = vpack.c.bf16 %v7137_v43, %v7138_v22  ;;  %v7142_v52 = vpack.c.bf16 %v7140_v21, %v7141_v28  ;;  %v7145_v47 = vpack.c.bf16 %v7143_v12, %v7144_v23  ;;  %v7152_v1 = vld [vmem:[#allocation65_spill] sm:$0xff]  ;;  %v7153_v19 = vld [vmem:[#allocation27_spill] sm:$0xff]  ;;  %v7162_v12 = vld [vmem:[#allocation28_spill] sm:$0xff] }
 0x121   :  { %v6008_v59 = vmul.bf16 %v5897_v15, %v7124_v11  ;;  %v6014_v17 = vmul.bf16 %v5900_v30, %v7127_v26  ;;  %v6020_v36 = vmul.bf16 %v5903_v38, %v7130_v14  ;;  %v6026_v10 = vmul.bf16 %v5906_v4, %v7133_v42  ;;  %v7147_v11 = vld [vmem:[#allocation12_spill] sm:$0xff]  ;;  %v7149_v26 = vld [vmem:[#allocation13_spill] sm:$0xff]  ;;  %v7155_v18 = vld [vmem:[#allocation55_spill] sm:$0xff] }
 0x122   :  { %v6031_v8 = vmul.bf16 %v1362_v13, %v7136_v54  ;;  %v6036_v20 = vmul.bf16 %v1369_v56, %v7139_v35  ;;  %v6041_v45 = vmul.bf16 %v1376_v48, %v7142_v52  ;;  %v6046_v16 = vmul.bf16 %v1383_v25, %v7145_v47  ;;  %v7156_v54 = vld [vmem:[#allocation54_spill] sm:$0xff]  ;;  %v7159_v21 = vld [vmem:[#allocation57_spill] sm:$0xff] }
 0x123   :  { %v7148_v51 = vpack.c.bf16 %v7146_v57, %v7147_v11  ;;  %v7151_v49 = vpack.c.bf16 %v7149_v26, %v7150_v34  ;;  %v7154_v42 = vpack.c.bf16 %v7152_v1, %v7153_v19  ;;  %v7157_v43 = vpack.c.bf16 %v7155_v18, %v7156_v54  ;;  %v7158_v35 = vld [vmem:[#allocation58_spill] sm:$0xff]  ;;  %v7166_v11 = vld [vmem:[#allocation29_spill] sm:$0xff]  ;;  %v7171_v1 = vld [vmem:[#allocation67_spill] sm:$0xff] }
 0x124   :  { %v7160_v28 = vpack.c.bf16 %v7158_v35, %v7159_v21  ;;  %v7163_v23 = vld [vmem:[#allocation14_spill] sm:$0xff]  ;;  %v7174_v18 = vld [vmem:[#allocation68_spill] sm:$0xff]  ;;  %v7178_v21 = vld [vmem:[#allocation31_spill] sm:$0xff] }
 0x125   :  { %v6051_v39 = vmul.bf16 %v1390_v63, %v7148_v51  ;;  %v6056_v14 = vmul.bf16 %v1397_v0, %v7151_v49  ;;  %v6061_v32 = vmul.bf16 %v1404_v55, %v7154_v42  ;;  %v6066_v22 = vmul.bf16 %v1411_v9, %v7157_v43  ;;  %v7167_v51 = vld [vmem:[#allocation15_spill] sm:$0xff]  ;;  %v7170_v49 = vld [vmem:[#allocation16_spill] sm:$0xff]  ;;  %v7175_v54 = vld [vmem:[#allocation30_spill] sm:$0xff] }
 0x126   :  { %v6072_v52 = vmul.bf16 %v5891_v2, %v7160_v28  ;;  %v7164_v47 = vpack.c.bf16 %v7162_v12, %v7163_v23  ;;  %v7168_v26 = vpack.c.bf16 %v7166_v11, %v7167_v51  ;;  %v7172_v19 = vpack.c.bf16 %v7170_v49, %v7171_v1  ;;  %v7179_v28 = vld [vmem:[#allocation17_spill] sm:$0xff]  ;;  %v7183_v11 = vld [vmem:[#allocation72_spill] sm:$0xff]  ;;  %v7186_v49 = vld [vmem:[#allocation34_spill] sm:$0xff] }
 0x127   :  { %v7176_v43 = vpack.c.bf16 %v7174_v18, %v7175_v54  ;;  %v7180_v12 = vpack.c.bf16 %v7178_v21, %v7179_v28  ;;  %v7187_v1 = vld [vmem:[#allocation18_spill] sm:$0xff]  ;;  %v7190_v18 = vld [vmem:[#allocation37_spill] sm:$0xff]  ;;  %v7191_v54 = vld [vmem:[#allocation19_spill] sm:$0xff] }
 0x128   :  { %7161 = vst [vmem:[#allocation32_spill] sm:$0xff] %v6072_v52  ;;  %v6078_v57 = vmul.bf16 %v5894_v37, %v7164_v47  ;;  %v6084_v34 = vmul.bf16 %v5897_v15, %v7168_v26  ;;  %v6090_v42 = vmul.bf16 %v5900_v30, %v7172_v19  ;;  %v7182_v47 = vld [vmem:[#allocation73_spill] sm:$0xff]  ;;  %v7188_v19 = vpack.c.bf16 %v7186_v49, %v7187_v1  ;;  %v7195_v21 = vld [vmem:[#allocation35_spill] sm:$0xff] }
 0x129   :  { %v6096_v35 = vmul.bf16 %v5903_v38, %v7176_v43  ;;  %v6102_v23 = vmul.bf16 %v5906_v4, %v7180_v12  ;;  %v7184_v51 = vpack.c.bf16 %v7182_v47, %v7183_v11  ;;  %v7192_v43 = vpack.c.bf16 %v7190_v18, %v7191_v54 }
 0x12a   :  { %7165 = vst [vmem:[#allocation33_spill] sm:$0xff] %v6078_v57  ;;  %7169 = vst [vmem:[#allocation92_spill] sm:$0xff] %v6084_v34  ;;  %v7194_v34 = vld [vmem:[#allocation89_spill] sm:$0xff]  ;;  %v7199_v57 = vld [vmem:[#allocation74_spill] sm:$0xff] }
 0x12b   :  { %7173 = vst [vmem:[#allocation93_spill] sm:$0xff] %v6090_v42  ;;  %7177 = vst [vmem:[#allocation95_spill] sm:$0xff] %v6096_v35  ;;  %v6107_v26 = vmul.bf16 %v1362_v13, %v7184_v51  ;;  %v6112_v42 = vmul.bf16 %v1369_v56, %v7188_v19  ;;  %v6117_v35 = vmul.bf16 %v1376_v48, %v7192_v43  ;;  %v7202_v51 = vld [vmem:[#allocation75_spill] sm:$0xff]  ;;  %v7206_v19 = vld [vmem:[#allocation94_spill] sm:$0xff] }
 0x12c   :  { %7181 = vst [vmem:[#allocation96_spill] sm:$0xff] %v6102_v23  ;;  %v7196_v28 = vpack.c.bf16 %v7194_v34, %v7195_v21  ;;  %v7198_v23 = vld [vmem:[#allocation39_spill] sm:$0xff] }
 0x12d   :  { %7185 = vst [vmem:[#allocation49_spill] sm:$0xff] %v6107_v26  ;;  %7189 = vst [vmem:[#allocation47_spill] sm:$0xff] %v6112_v42  ;;  %v7200_v47 = vpack.c.bf16 %v7198_v23, %v7199_v57  ;;  %v7203_v26 = vld [vmem:[#allocation36_spill] sm:$0xff]  ;;  %v7207_v42 = vld [vmem:[#allocation42_spill] sm:$0xff] }
 0x12e   :  { %7193 = vst [vmem:[#allocation64_spill] sm:$0xff] %v6117_v35  ;;  %v6122_v12 = vmul.bf16 %v1383_v25, %v7196_v28  ;;  %v7204_v49 = vpack.c.bf16 %v7202_v51, %v7203_v26  ;;  %v7208_v18 = vpack.c.bf16 %v7206_v19, %v7207_v42  ;;  %v7210_v43 = vld [vmem:[#allocation91_spill] sm:$0xff]  ;;  %v7211_v35 = vld [vmem:[#allocation90_spill] sm:$0xff]  ;;  %v7220_v42 = vld [vmem:[#allocation81_spill] sm:$0xff] }
 0x12f   :  { %v6127_v11 = vmul.bf16 %v1390_v63, %v7200_v47  ;;  %v7212_v34 = vpack.c.bf16 %v7210_v43, %v7211_v35  ;;  %v7214_v28 = vld [vmem:[#allocation38_spill] sm:$0xff]  ;;  %v7217_v47 = vld [vmem:[#allocation41_spill] sm:$0xff] }
 0x130   :  { %7197 = vst [vmem:[#allocation50_spill] sm:$0xff] %v6122_v12  ;;  %v6132_v1 = vmul.bf16 %v1397_v0, %v7204_v49  ;;  %v6137_v54 = vmul.bf16 %v1404_v55, %v7208_v18  ;;  %v7215_v57 = vpack.c.bf16 %v7214_v28, %v7214_v28  ;;  %v7218_v26 = vpack.c.bf16 %v7217_v47, %v7217_v47  ;;  %v7223_v35 = vld [vmem:[#allocation82_spill] sm:$0xff] }
 0x131   :  { %7201 = vst [vmem:[#allocation53_spill] sm:$0xff] %v6127_v11  ;;  %v6142_v21 = vmul.bf16 %v1411_v9, %v7212_v34  ;;  %v7221_v49 = vpack.c.bf16 %v7220_v42, %v7220_v42  ;;  %v7224_v18 = vpack.c.bf16 %v7223_v35, %v7223_v35 }
 0x132   :  { %7205 = vst [vmem:[#allocation51_spill] sm:$0xff] %v6132_v1  ;;  %7209 = vst [vmem:[#allocation69_spill] sm:$0xff] %v6137_v54  ;;  %v6148_v23 = vmul.bf16 %v5891_v2, %v7215_v57  ;;  %v6154_v51 = vmul.bf16 %v5894_v37, %v7218_v26  ;;  %v7226_v2 = vld [vmem:[#allocation83_spill] sm:$0xff]  ;;  %v7229_v37 = vld [vmem:[#allocation84_spill] sm:$0xff] }
 0x133   :  { %7213 = vst [vmem:[#allocation66_spill] sm:$0xff] %v6142_v21  ;;  %v6160_v19 = vmul.bf16 %v5897_v15, %v7221_v49  ;;  %v6166_v43 = vmul.bf16 %v5900_v30, %v7224_v18  ;;  %v7227_v34 = vpack.c.bf16 %v7226_v2, %v7226_v2  ;;  %v7230_v57 = vpack.c.bf16 %v7229_v37, %v7229_v37  ;;  %v7232_v15 = vld [vmem:[#allocation85_spill] sm:$0xff]  ;;  %v7235_v49 = vld [vmem:[#allocation86_spill] sm:$0xff]  ;;  %v7238_v18 = vld [vmem:[#allocation76_spill] sm:$0xff] }
 0x134   :  { %7216 = vst [vmem:[#allocation71_spill] sm:$0xff] %v6148_v23  ;;  %7219 = vst [vmem:[#allocation70_spill] sm:$0xff] %v6154_v51  ;;  %v7233_v26 = vpack.c.bf16 %v7232_v15, %v7232_v15  ;;  %v7236_v30 = vpack.c.bf16 %v7235_v49, %v7235_v49 }
 0x135   :  { %7222 = vst [vmem:[#allocation20_spill] sm:$0xff] %v6160_v19  ;;  %7225 = vst [vmem:[#allocation6_spill] sm:$0xff] %v6166_v43  ;;  %v6172_v28 = vmul.bf16 %v5903_v38, %v7227_v34  ;;  %v6178_v47 = vmul.bf16 %v5906_v4, %v7230_v57  ;;  %v7239_v38 = vpack.c.bf16 %v7238_v18, %v7238_v18  ;;  %v7241_v34 = vld [vmem:[#allocation77_spill] sm:$0xff]  ;;  %v7244_v57 = vld [vmem:[#allocation87_spill] sm:$0xff] }
 0x136   :  { %v6183_v42 = vmul.bf16 %v1362_v13, %v7233_v26  ;;  %v6188_v35 = vmul.bf16 %v1369_v56, %v7236_v30  ;;  %v7242_v37 = vpack.c.bf16 %v7241_v34, %v7241_v34  ;;  %v7245_v15 = vpack.c.bf16 %v7244_v57, %v7244_v57  ;;  %v7247_v26 = vld [vmem:[#allocation78_spill] sm:$0xff]  ;;  %v7250_v30 = vld [vmem:[#allocation79_spill] sm:$0xff] }
 0x137   :  { %7228 = vst [vmem:[#allocation21_spill] sm:$0xff] %v6172_v28  ;;  %7231 = vst [vmem:[#allocation7_spill] sm:$0xff] %v6178_v47  ;;  %v6193_v2 = vmul.bf16 %v1376_v48, %v7239_v38  ;;  %v7248_v49 = vpack.c.bf16 %v7247_v26, %v7247_v26  ;;  %v7251_v18 = vpack.c.bf16 %v7250_v30, %v7250_v30  ;;  %v7253_v38 = vld [vmem:[#allocation80_spill] sm:$0xff]  ;;  %v7259_v30 = vld [vmem:[#allocation62_spill] sm:$0xff] }
 0x138   :  { %7234 = vst [vmem:[#allocation22_spill] sm:$0xff] %v6183_v42  ;;  %7237 = vst [vmem:[#allocation8_spill] sm:$0xff] %v6188_v35  ;;  %v6198_v4 = vmul.bf16 %v1383_v25, %v7242_v37  ;;  %v6203_v13 = vmul.bf16 %v1390_v63, %v7245_v15  ;;  %v7254_v34 = vpack.c.bf16 %v7253_v38, %v7253_v38  ;;  %v7256_v63 = vld [vmem:[#allocation45_spill] sm:$0xff]  ;;  %v7257_v15 = vld [vmem:[#allocation46_spill] sm:$0xff] }
 0x139   :  { %7240 = vst [vmem:[#allocation9_spill] sm:$0xff] %v6193_v2  ;;  %v6208_v56 = vmul.bf16 %v1397_v0, %v7248_v49  ;;  %v6213_v48 = vmul.bf16 %v1404_v55, %v7251_v18  ;;  %v1473_v37 = vrot.slane %v5886_v44, %v5229_v3  ;;  %v1477_v57 = vrot.slane %v5886_v44, %v7256_v63  ;;  %v7258_v26 = vld [vmem:[#allocation60_spill] sm:$0xff]  ;;  %v7260_v18 = vld [vmem:[#allocation63_spill] sm:$0xff] }
 0x13a   :  { %7243 = vst [vmem:[#allocation40_spill] sm:$0xff] %v6198_v4  ;;  %7246 = vst [vmem:[#allocation10_spill] sm:$0xff] %v6203_v13  ;;  %v6218_v25 = vmul.bf16 %v1411_v9, %v7254_v34  ;;  %v1481_v0 = vrot.slane %v5886_v44, %v7257_v15  ;;  %v1485_v49 = vrot.slane %v5886_v44, %v7258_v26  ;;  %v7261_v9 = vld [vmem:[#allocation43_spill] sm:$0xff] }
 0x13b   :  { %7249 = vst [vmem:[#allocation23_spill] sm:$0xff] %v6208_v56  ;;  %7252 = vst [vmem:[#allocation44_spill] sm:$0xff] %v6213_v48  ;;  %v1489_v55 = vrot.slane %v5886_v44, %v7259_v30  ;;  %v1493_v38 = vrot.slane %v5886_v44, %v7260_v18  ;;  %v7262_v34 = vsub.s32 6, %v7261_v9  ;;  %v7263_v48 = vsub.s32 7, %v7261_v9  ;;  %v7286_v61 = vld [vmem:[#allocation70_spill] sm:$0xff] }
 0x13c   :  { %7255 = vst [vmem:[#allocation24_spill] sm:$0xff] %v6218_v25  ;;  %v1505_v13 = vrot.slane %v5888_v6, %v5229_v3  ;;  %v1509_v4 = vrot.slane %v5888_v6, %v7256_v63  ;;  %v1513_v2 = vrot.slane %v5888_v6, %v7257_v15  ;;  %v1517_v35 = vrot.slane %v5888_v6, %v7258_v26 }
 0x13d   :  { %v1497_v25 = vrot.slane %v5886_v44, %v7262_v34  ;;  %v1501_v56 = vrot.slane %v5886_v44, %v7263_v48  ;;  %v1521_v42 = vrot.slane %v5888_v6, %v7259_v30  ;;  %v1525_v9 = vrot.slane %v5888_v6, %v7260_v18 }
 0x13e   :  { %v1540_v34 = vpack.c.bf16 %v1473_v37, %v1473_v37  ;;  %v1541_v44 = vpack.c.bf16 %v1477_v57, %v1477_v57  ;;  %v1542_v48 = vpack.c.bf16 %v1481_v0, %v1481_v0  ;;  %v1543_v47 = vpack.c.bf16 %v1485_v49, %v1485_v49 }
 0x13f   :  { %v1544_v28 = vpack.c.bf16 %v1489_v55, %v1489_v55  ;;  %v1545_v43 = vpack.c.bf16 %v1493_v38, %v1493_v38  ;;  %v1546_v19 = vpack.c.bf16 %v1497_v25, %v1497_v25  ;;  %v1547_v63 = vpack.c.bf16 %v1501_v56, %v1501_v56 }
 0x140   :  { %v1548_v51 = vpack.c.bf16 %v1505_v13, %v1505_v13  ;;  %v1549_v23 = vpack.c.bf16 %v1509_v4, %v1509_v4  ;;  %v1550_v15 = vpack.c.bf16 %v1513_v2, %v1513_v2  ;;  %v1551_v21 = vpack.c.bf16 %v1517_v35, %v1517_v35 }
 0x141   :  { %v1552_v54 = vpack.c.bf16 %v1521_v42, %v1521_v42  ;;  %v1553_v26 = vpack.c.bf16 %v1525_v9, %v1525_v9  ;;  %v1555_v1 = vpack.i.b16 %v1540_v34, %v1540_v34  ;;  %v1562_v11 = vpack.i.b16 %v1541_v44, %v1541_v44 }
 0x142   :  { %v1569_v30 = vpack.i.b16 %v1542_v48, %v1542_v48  ;;  %v1576_v12 = vpack.i.b16 %v1543_v47, %v1543_v47  ;;  %v1583_v52 = vpack.i.b16 %v1544_v28, %v1544_v28  ;;  %v1590_v6 = vpack.i.b16 %v1545_v43, %v1545_v43  ;;  %v7271_v48 = vld [vmem:[#allocation32_spill] sm:$0xff] }
 0x143   :  { %v1597_v37 = vpack.i.b16 %v1546_v19, %v1546_v19  ;;  %v6251_v57 = vrot.slane %v1555_v1, %v5229_v3  ;;  %v6254_v0 = vrot.slane %v1562_v11, %v5229_v3  ;;  %v1604_v2 = vpack.i.b16 %v1547_v63, %v1547_v63  ;;  %v7272_v63 = vld [vmem:[#allocation33_spill] sm:$0xff] }
 0x144   :  { %v6257_v13 = vrot.slane %v1569_v30, %v5229_v3  ;;  %v6260_v42 = vrot.slane %v1576_v12, %v5229_v3  ;;  %v6263_v35 = vrot.slane %v1583_v52, %v5229_v3  ;;  %v6266_v28 = vrot.slane %v1590_v6, %v5229_v3  ;;  %v7275_v30 = vld [vmem:[#allocation95_spill] sm:$0xff]  ;;  %v7276_v6 = vld [vmem:[#allocation96_spill] sm:$0xff] }
 0x145   :  { %7264 = vst [vmem:[#allocation11_spill] sm:$0xff] %v6251_v57  ;;  %v6269_v19 = vrot.slane %v1597_v37, %v5229_v3  ;;  %v6272_v1 = vrot.slane %v1604_v2, %v5229_v3  ;;  %v1611_v11 = vpack.i.b16 %v1548_v51, %v1548_v51  ;;  %v1618_v43 = vpack.i.b16 %v1549_v23, %v1549_v23  ;;  %v7277_v37 = vld [vmem:[#allocation49_spill] sm:$0xff]  ;;  %v7278_v2 = vld [vmem:[#allocation47_spill] sm:$0xff] }
 0x146   :  { %v1625_v47 = vpack.i.b16 %v1550_v15, %v1550_v15  ;;  %v1632_v4 = vpack.i.b16 %v1551_v21, %v1551_v21  ;;  %v1639_v56 = vpack.i.b16 %v1552_v54, %v1552_v54  ;;  %v1646_v25 = vpack.i.b16 %v1553_v26, %v1553_v26  ;;  %v7273_v15 = vld [vmem:[#allocation92_spill] sm:$0xff]  ;;  %v7274_v26 = vld [vmem:[#allocation93_spill] sm:$0xff]  ;;  %v7285_v12 = vld [vmem:[#allocation71_spill] sm:$0xff] }
 0x147   :  { %v6277_v52 = vrot.slane %v1611_v11, %v5229_v3  ;;  %v6280_v49 = vrot.slane %v1618_v43, %v5229_v3  ;;  %v1653_v51 = vadd.bf16 %v6254_v0, %v5926_v53  ;;  %v1654_v18 = vadd.bf16 %v6257_v13, %v5932_v7  ;;  %v7279_v43 = vld [vmem:[#allocation64_spill] sm:$0xff] }
 0x148   :  { %v6283_v55 = vrot.slane %v1625_v47, %v5229_v3  ;;  %v6288_v23 = vrot.slane %v1632_v4, %v5229_v3  ;;  %v6291_v54 = vrot.slane %v1639_v56, %v5229_v3  ;;  %v6294_v21 = vrot.slane %v1646_v25, %v5229_v3  ;;  %v7280_v4 = vld [vmem:[#allocation50_spill] sm:$0xff]  ;;  %v7281_v25 = vld [vmem:[#allocation53_spill] sm:$0xff] }
 0x149   :  { %7265 = vst [vmem:[#allocation48_spill] sm:$0xff] %v6277_v52  ;;  %7266 = vst [vmem:[#allocation52_spill] sm:$0xff] %v6280_v49  ;;  %v1655_v38 = vadd.bf16 %v6260_v42, %v5938_v62  ;;  %v1656_v9 = vadd.bf16 %v6263_v35, %v5944_v5  ;;  %v1657_v53 = vadd.bf16 %v6266_v28, %v5950_v41 }
 0x14a   :  { %7267 = vst [vmem:[#allocation25_spill] sm:$0xff] %v6283_v55  ;;  %7268 = vst [vmem:[#allocation59_spill] sm:$0xff] %v6288_v23  ;;  %v1658_v34 = vadd.bf16 %v6269_v19, %v5955_v24  ;;  %v1659_v44 = vadd.bf16 %v6272_v1, %v5960_v46  ;;  %v1660_v3 = vadd.bf16 %v6277_v52, %v5965_v27 }
 0x14b   :  { %7269 = vst [vmem:[#allocation56_spill] sm:$0xff] %v6291_v54  ;;  %7270 = vst [vmem:[#allocation26_spill] sm:$0xff] %v6294_v21  ;;  %v1661_v7 = vadd.bf16 %v6280_v49, %v5970_v60  ;;  %v1662_v62 = vadd.bf16 %v6283_v55, %v5975_v40  ;;  %v1663_v5 = vadd.bf16 %v6288_v23, %v5980_v58 }
 0x14c   :  { %v1664_v41 = vadd.bf16 %v6291_v54, %v5985_v29  ;;  %v1665_v24 = vadd.bf16 %v6294_v21, %v5990_v31  ;;  %v1666_v46 = vadd.bf16 %v6251_v57, %v5996_v50  ;;  %v1667_v27 = vadd.bf16 %v6254_v0, %v6002_v33 }
 0x14d   :  { %v1668_v60 = vadd.bf16 %v6257_v13, %v6008_v59  ;;  %v1669_v40 = vadd.bf16 %v6260_v42, %v6014_v17  ;;  %v1670_v58 = vadd.bf16 %v6263_v35, %v6020_v36  ;;  %v1671_v29 = vadd.bf16 %v6266_v28, %v6026_v10 }
 0x14e   :  { %v1672_v31 = vadd.bf16 %v6269_v19, %v6031_v8  ;;  %v1673_v50 = vadd.bf16 %v6272_v1, %v6036_v20  ;;  %v1674_v33 = vadd.bf16 %v6277_v52, %v6041_v45  ;;  %v1675_v59 = vadd.bf16 %v6280_v49, %v6046_v16 }
 0x14f   :  { %v1676_v17 = vadd.bf16 %v6283_v55, %v6051_v39  ;;  %v1677_v36 = vadd.bf16 %v6288_v23, %v6056_v14  ;;  %v1678_v10 = vadd.bf16 %v6291_v54, %v6061_v32  ;;  %v1679_v8 = vadd.bf16 %v6294_v21, %v6066_v22 }
 0x150   :  { %v1680_v20 = vadd.bf16 %v6251_v57, %v7271_v48  ;;  %v1681_v45 = vadd.bf16 %v6254_v0, %v7272_v63  ;;  %v1682_v16 = vadd.bf16 %v6257_v13, %v7273_v15  ;;  %v1683_v39 = vadd.bf16 %v6260_v42, %v7274_v26  ;;  %v7282_v63 = vld [vmem:[#allocation51_spill] sm:$0xff]  ;;  %v7283_v26 = vld [vmem:[#allocation69_spill] sm:$0xff] }
 0x151   :  { %v1684_v14 = vadd.bf16 %v6263_v35, %v7275_v30  ;;  %v1685_v32 = vadd.bf16 %v6266_v28, %v7276_v6  ;;  %v1686_v22 = vadd.bf16 %v6269_v19, %v7277_v37  ;;  %v1687_v11 = vadd.bf16 %v6272_v1, %v7278_v2  ;;  %v7284_v6 = vld [vmem:[#allocation66_spill] sm:$0xff] }
 0x152   :  { %v1688_v47 = vadd.bf16 %v6277_v52, %v7279_v43  ;;  %v1689_v56 = vadd.bf16 %v6280_v49, %v7280_v4  ;;  %v1690_v48 = vadd.bf16 %v6283_v55, %v7281_v25  ;;  %v1691_v15 = vadd.bf16 %v6288_v23, %v7282_v63  ;;  %v7287_v52 = vld [vmem:[#allocation20_spill] sm:$0xff]  ;;  %v7288_v49 = vld [vmem:[#allocation6_spill] sm:$0xff]  ;;  %v7289_v55 = vld [vmem:[#allocation21_spill] sm:$0xff] }
 0x153   :  { %v1692_v30 = vadd.bf16 %v6291_v54, %v7283_v26  ;;  %v1693_v37 = vadd.bf16 %v6294_v21, %v7284_v6  ;;  %v1694_v2 = vadd.bf16 %v6251_v57, %v7285_v12  ;;  %v1695_v43 = vadd.bf16 %v6254_v0, %v7286_v61  ;;  %v7290_v23 = vld [vmem:[#allocation7_spill] sm:$0xff]  ;;  %v7291_v54 = vld [vmem:[#allocation22_spill] sm:$0xff]  ;;  %v7292_v21 = vld [vmem:[#allocation8_spill] sm:$0xff] }
 0x154   :  { %v1696_v4 = vadd.bf16 %v6257_v13, %v7287_v52  ;;  %v1697_v25 = vadd.bf16 %v6260_v42, %v7288_v49  ;;  %v1698_v63 = vadd.bf16 %v6263_v35, %v7289_v55  ;;  %v1699_v26 = vadd.bf16 %v6266_v28, %v7290_v23  ;;  %v7293_v57 = vld [vmem:[#allocation9_spill] sm:$0xff]  ;;  %v7294_v61 = vld [vmem:[#allocation48_spill] sm:$0xff]  ;;  %v7297_v49 = vld [vmem:[#allocation10_spill] sm:$0xff] }
 0x155   :  { %v1700_v6 = vadd.bf16 %v6269_v19, %v7291_v54  ;;  %v1701_v12 = vadd.bf16 %v6272_v1, %v7292_v21  ;;  %v1702_v0 = vadd.bf16 %v7294_v61, %v7293_v57  ;;  %v7295_v13 = vld [vmem:[#allocation40_spill] sm:$0xff]  ;;  %v7298_v35 = vld [vmem:[#allocation25_spill] sm:$0xff]  ;;  %v7299_v23 = vld [vmem:[#allocation23_spill] sm:$0xff] }
 0x156   :  { %v7296_v52 = vld [vmem:[#allocation52_spill] sm:$0xff]  ;;  %v1704_v55 = vadd.bf16 %v7298_v35, %v7297_v49  ;;  %v7300_v28 = vld [vmem:[#allocation59_spill] sm:$0xff]  ;;  %v7304_v61 = vld [vmem:[#allocation26_spill] sm:$0xff] }
 0x157   :  { %v1703_v42 = vadd.bf16 %v7296_v52, %v7295_v13  ;;  %v1705_v19 = vadd.bf16 %v7300_v28, %v7299_v23  ;;  %v7301_v54 = vld [vmem:[#allocation44_spill] sm:$0xff]  ;;  %v3784_v52 = vmov 0   ;;  %v7305_v35 = vld [vmem:[#allocation11_spill] sm:$0xff] }
 0x158   :  { %v7302_v1 = vld [vmem:[#allocation56_spill] sm:$0xff] }
 0x159   :  { %v1706_v21 = vadd.bf16 %v7302_v1, %v7301_v54  ;;  %v7303_v57 = vld [vmem:[#allocation24_spill] sm:$0xff]  ;;  %v1709_v1 = vmax.bf16 %v3784_v52, %v1653_v51  ;;  %v6409_v54 = vmax.bf16 %v3784_v52, %v1654_v18  ;;  %v6421_v51 = vmax.bf16 %v3784_v52, %v1661_v7 }
 0x15a   :  { %v1707_v13 = vadd.bf16 %v7304_v61, %v7303_v57  ;;  %v7306_v49 = vld [vmem:[#allocation88_spill] sm:$0xff]  ;;  %v1711_v57 = vmax.bf16 %v3784_v52, %v1655_v38  ;;  %v6411_v61 = vmax.bf16 %v3784_v52, %v1656_v9  ;;  %v6423_v18 = vmax.bf16 %v3784_v52, %v1662_v62 }
 0x15b   :  { %v7307_v23 = vadd.bf16 %v7305_v35, %v7306_v49  ;;  %7309 = vst [vmem:[#allocation13_spill] sm:$0xff] %v6409_v54  ;;  %v6413_v35 = vmax.bf16 %v3784_v52, %v1657_v53  ;;  %v6415_v49 = vmax.bf16 %v3784_v52, %v1658_v34  ;;  %v6425_v54 = vmax.bf16 %v3784_v52, %v1663_v5 }
 0x15c   :  { %7310 = vst [vmem:[#allocation61_spill] sm:$0xff] %v6411_v61  ;;  %v6427_v38 = vmax.bf16 %v3784_v52, %v1664_v41  ;;  %v6429_v9 = vmax.bf16 %v3784_v52, %v1665_v24  ;;  %v6431_v61 = vmax.bf16 %v3784_v52, %v1666_v46  ;;  %v6433_v53 = vmax.bf16 %v3784_v52, %v1667_v27 }
 0x15d   :  { %v6407_v28 = vmax.bf16 %v3784_v52, %v7307_v23  ;;  %v6417_v23 = vmax.bf16 %v3784_v52, %v1659_v44  ;;  %v6435_v34 = vmax.bf16 %v3784_v52, %v1668_v60  ;;  %v6437_v44 = vmax.bf16 %v3784_v52, %v1669_v40 }
 0x15e   :  { %v6441_v7 = vmax.bf16 %v3784_v52, %v1671_v29  ;;  %v6443_v62 = vmax.bf16 %v3784_v52, %v1672_v31  ;;  %v6445_v5 = vmax.bf16 %v3784_v52, %v1673_v50  ;;  %v6447_v41 = vmax.bf16 %v3784_v52, %v1674_v33 }
 0x15f   :  { %7308 = vst [vmem:[#allocation12_spill] sm:$0xff] %v6407_v28  ;;  %v6419_v28 = vmax.bf16 %v3784_v52, %v1660_v3  ;;  %v6439_v3 = vmax.bf16 %v3784_v52, %v1670_v58  ;;  %v6449_v24 = vmax.bf16 %v3784_v52, %v1675_v59  ;;  %v6451_v46 = vmax.bf16 %v3784_v52, %v1676_v17 }
 0x160   :  { %v6453_v27 = vmax.bf16 %v3784_v52, %v1677_v36  ;;  %v6455_v60 = vmax.bf16 %v3784_v52, %v1678_v10  ;;  %v6457_v40 = vmax.bf16 %v3784_v52, %v1679_v8  ;;  %v6459_v58 = vmax.bf16 %v3784_v52, %v1680_v20 }
 0x161   :  { %v6461_v29 = vmax.bf16 %v3784_v52, %v1681_v45  ;;  %v6463_v31 = vmax.bf16 %v3784_v52, %v1682_v16  ;;  %v6465_v50 = vmax.bf16 %v3784_v52, %v1683_v39  ;;  %v6467_v33 = vmax.bf16 %v3784_v52, %v1684_v14 }
 0x162   :  { %v6469_v59 = vmax.bf16 %v3784_v52, %v1685_v32  ;;  %v6471_v17 = vmax.bf16 %v3784_v52, %v1686_v22  ;;  %v6473_v36 = vmax.bf16 %v3784_v52, %v1687_v11  ;;  %v6475_v10 = vmax.bf16 %v3784_v52, %v1688_v47 }
 0x163   :  { %v6477_v8 = vmax.bf16 %v3784_v52, %v1689_v56  ;;  %v6479_v20 = vmax.bf16 %v3784_v52, %v1690_v48  ;;  %v6481_v45 = vmax.bf16 %v3784_v52, %v1691_v15  ;;  %v6483_v16 = vmax.bf16 %v3784_v52, %v1692_v30 }
 0x164   :  { %v6485_v39 = vmax.bf16 %v3784_v52, %v1693_v37  ;;  %v6487_v14 = vmax.bf16 %v3784_v52, %v1694_v2  ;;  %v6489_v32 = vmax.bf16 %v3784_v52, %v1695_v43  ;;  %v6491_v22 = vmax.bf16 %v3784_v52, %v1696_v4 }
 0x165   :  { %v6493_v11 = vmax.bf16 %v3784_v52, %v1697_v25  ;;  %v6495_v47 = vmax.bf16 %v3784_v52, %v1698_v63  ;;  %v6497_v56 = vmax.bf16 %v3784_v52, %v1699_v26  ;;  %v6499_v48 = vmax.bf16 %v3784_v52, %v1700_v6 }
 0x166   :  { %v6501_v15 = vmax.bf16 %v3784_v52, %v1701_v12  ;;  %v6503_v30 = vmax.bf16 %v3784_v52, %v1702_v0  ;;  %v6505_v37 = vmax.bf16 %v3784_v52, %v1703_v42  ;;  %v6507_v2 = vmax.bf16 %v3784_v52, %v1704_v55 }
 0x167   :  { %v6509_v43 = vmax.bf16 %v3784_v52, %v1705_v19  ;;  %v6511_v4 = vmax.bf16 %v3784_v52, %v1706_v21  ;;  %v6513_v25 = vmax.bf16 %v3784_v52, %v1707_v13 }
 0x168   :  { %3781 = dma.done.wait [#allocation3], 14336 }
 0x169   :  { %3782 = vsyncadd [#allocation3], 4294952960  ;;  %2696 = vmatprep.mubr.bf16.mxu0 %v1709_v1  ;;  %2760 = vmatprep.mubr.bf16.mxu1 %v1711_v57  ;;  %v3669_v63 = vld [vmem:[#allocation2 + $0x78] sm:$0xff]   ;;  %v3673_v0 = vld [vmem:[#allocation2 + $0x70] sm:$0xff]  }
 0x16a   :  { %v3670_v26 = vld [vmem:[#allocation2 + $0xf8] sm:$0xff]   ;;  %3250 = vmatprep.subr.bf16.mxu0 %v3669_v63  ;;  %v3674_v42 = vld [vmem:[#allocation2 + $0xf0] sm:$0xff]   ;;  %v3677_v21 = vld [vmem:[#allocation2 + $0x68] sm:$0xff]  }
 0x16b   :  { %v3671_v6 = vld [vmem:[#allocation2 + $0x38] sm:$0xff]   ;;  %3290 = vmatprep.subr.bf16.mxu1 %v3670_v26  ;;  %v3675_v55 = vld [vmem:[#allocation2 + $0x30] sm:$0xff]   ;;  %v3678_v13 = vld [vmem:[#allocation2 + $0xe8] sm:$0xff]  }
 0x16c   :  { %v3672_v12 = vld [vmem:[#allocation2 + $0xb8] sm:$0xff]   ;;  %3251 = vmatpush3.bf16.msra.mxu0 %v3671_v6  ;;  %v3676_v19 = vld [vmem:[#allocation2 + $0xb0] sm:$0xff]   ;;  %v3679_v52 = vld [vmem:[#allocation2 + $0x28] sm:$0xff]  }
 0x16d   :  { %3291 = vmatpush3.bf16.msra.mxu1 %v3672_v12  ;;  %3252 = vmatprep.subr.bf16.mxu0 %v3673_v0  ;;  %v3680_v1 = vld [vmem:[#allocation2 + $0xa8] sm:$0xff]   ;;  %v3681_v57 = vld [vmem:[#allocation2 + $0x60] sm:$0xff]   ;;  %v3685_v12 = vld [vmem:[#allocation2 + $0x58] sm:$0xff]  }
 0x16e   :  { %3292 = vmatprep.subr.bf16.mxu1 %v3674_v42  ;;  %v3682_v63 = vld [vmem:[#allocation2 + $0xe0] sm:$0xff]   ;;  %v3686_v0 = vld [vmem:[#allocation2 + $0xd8] sm:$0xff]  }
 0x16f   :  { %v3683_v26 = vld [vmem:[#allocation2 + $0x20] sm:$0xff]   ;;  %v3687_v42 = vld [vmem:[#allocation2 + $0x18] sm:$0xff]  }
 0x170   :  { %3253 = vmatpush3.bf16.msra.mxu0 %v3675_v55  ;;  %v3684_v6 = vld [vmem:[#allocation2 + $0xa0] sm:$0xff]   ;;  %v3688_v55 = vld [vmem:[#allocation2 + $0x98] sm:$0xff]  }
 0x171   :  { %3293 = vmatpush3.bf16.msra.mxu1 %v3676_v19  ;;  %3254 = vmatprep.subr.bf16.mxu0 %v3677_v21  ;;  %v3689_v19 = vld [vmem:[#allocation2 + $0x50] sm:$0xff]  }
 0x172   :  { %3294 = vmatprep.subr.bf16.mxu1 %v3678_v13  ;;  %v3690_v21 = vld [vmem:[#allocation2 + $0xd0] sm:$0xff]  }
 0x173   :  { %v3691_v13 = vld [vmem:[#allocation2 + $0x10] sm:$0xff]  }
 0x174   :  { %3255 = vmatpush3.bf16.msra.mxu0 %v3679_v52  ;;  %v3692_v52 = vld [vmem:[#allocation2 + $0x90] sm:$0xff]  }
 0x175   :  { %3295 = vmatpush3.bf16.msra.mxu1 %v3680_v1  ;;  %3256 = vmatprep.subr.bf16.mxu0 %v3681_v57  ;;  %v3693_v1 = vld [vmem:[#allocation2 + $0x48] sm:$0xff]  }
 0x176   :  { %3296 = vmatprep.subr.bf16.mxu1 %v3682_v63  ;;  %v3694_v57 = vld [vmem:[#allocation2 + $0xc8] sm:$0xff]  }
 0x177   :  { %v3695_v63 = vld [vmem:[#allocation2 + $0x8] sm:$0xff]  }
 0x178   :  { %3257 = vmatpush3.bf16.msra.mxu0 %v3683_v26  ;;  %v3696_v26 = vld [vmem:[#allocation2 + $0x88] sm:$0xff]  }
 0x179   :  { %3297 = vmatpush3.bf16.msra.mxu1 %v3684_v6  ;;  %3258 = vmatprep.subr.bf16.mxu0 %v3685_v12  ;;  %v3697_v6 = vld [vmem:[#allocation2 + $0x40] sm:$0xff]  }
 0x17a   :  { %3298 = vmatprep.subr.bf16.mxu1 %v3686_v0  ;;  %v3698_v12 = vld [vmem:[#allocation2 + $0xc0] sm:$0xff]  }
 0x17b   :  { %v3699_v0 = vld [vmem:[#allocation2] sm:$0xff]  }
 0x17c   :  { %3259 = vmatpush3.bf16.msra.mxu0 %v3687_v42  ;;  %v3700_v42 = vld [vmem:[#allocation2 + $0x80] sm:$0xff]  }
 0x17d   :  { %3299 = vmatpush3.bf16.msra.mxu1 %v3688_v55  ;;  %3260 = vmatprep.subr.bf16.mxu0 %v3689_v19  ;;  %v3701_v55 = vld [vmem:[#allocation2 + $0x178] sm:$0xff]  }
 0x17e   :  { %3300 = vmatprep.subr.bf16.mxu1 %v3690_v21  ;;  %v3702_v19 = vld [vmem:[#allocation2 + $0x1f8] sm:$0xff]  }
 0x17f   :  { %v3703_v21 = vld [vmem:[#allocation2 + $0x138] sm:$0xff]  }
 0x180   :  { %3261 = vmatpush3.bf16.msra.mxu0 %v3691_v13  ;;  %v7311_v13 = vld [vmem:[#allocation12_spill] sm:$0xff] }
 0x181   :  { %3301 = vmatpush3.bf16.msra.mxu1 %v3692_v52  ;;  %3262 = vmatprep.subr.bf16.mxu0 %v3693_v1  ;;  %v3704_v52 = vld [vmem:[#allocation2 + $0x1b8] sm:$0xff]  }
 0x182   :  { %3302 = vmatprep.subr.bf16.mxu1 %v3694_v57  ;;  %v7312_v1 = vld [vmem:[#allocation13_spill] sm:$0xff]  ;;  %v3705_v57 = vld [vmem:[#allocation2 + $0x170] sm:$0xff]  }
 0x184   :  { %3263 = vmatpush3.bf16.msra.mxu0 %v3695_v63  ;;  %v3706_v63 = vld [vmem:[#allocation2 + $0x1f0] sm:$0xff]  }
 0x185   :  { %3303 = vmatpush3.bf16.msra.mxu1 %v3696_v26  ;;  %3264 = vmatprep.subr.bf16.mxu0 %v3697_v6  ;;  %v3707_v26 = vld [vmem:[#allocation2 + $0x130] sm:$0xff]  }
 0x186   :  { %3304 = vmatprep.subr.bf16.mxu1 %v3698_v12  ;;  %v3708_v6 = vld [vmem:[#allocation2 + $0x1b0] sm:$0xff]   ;;  %v3709_v12 = vld [vmem:[#allocation2 + $0x168] sm:$0xff]  }
 0x188   :  { %3265 = vmatpush3.bf16.msra.mxu0 %v3699_v0  ;;  %v3710_v0 = vld [vmem:[#allocation2 + $0x1e8] sm:$0xff]  }
 0x189   :  { %3305 = vmatpush3.bf16.msra.mxu1 %v3700_v42  ;;  %3330 = vmatprep.subr.bf16.mxu0 %v3701_v55  ;;  %v3711_v42 = vld [vmem:[#allocation2 + $0x128] sm:$0xff]  }
 0x18a   :  { %3370 = vmatprep.subr.bf16.mxu1 %v3702_v19  ;;  %v3712_v55 = vld [vmem:[#allocation2 + $0x1a8] sm:$0xff]   ;;  %v3714_v19 = vld [vmem:[#allocation2 + $0x1e0] sm:$0xff]  }
 0x18b   :  { %2697 = vmatmul.mubr.bf16.vlgmr.msra.gmra.mxu0 %v7311_v13  ;;  %v3717_v13 = vld [vmem:[#allocation2 + $0x158] sm:$0xff]  }
 0x18c   :  { %2761 = vmatmul.mubr.bf16.vlgmr.msra.gmra.mxu1 %v7312_v1  ;;  %3331 = vmatpush3.bf16.msra.mxu0 %v3703_v21  ;;  %v3716_v21 = vld [vmem:[#allocation2 + $0x1a0] sm:$0xff]   ;;  %v3722_v1 = vld [vmem:[#allocation2 + $0x1d0] sm:$0xff]  }
 0x18d   :  { %3371 = vmatpush3.bf16.msra.mxu1 %v3704_v52  ;;  %2704 = vmatprep.mubr.bf16.mxu0 %v6433_v53  ;;  %v3713_v53 = vld [vmem:[#allocation2 + $0x160] sm:$0xff]   ;;  %v3719_v52 = vld [vmem:[#allocation2 + $0x118] sm:$0xff]  }
 0x18e   :  { %3332 = vmatprep.subr.bf16.mxu0 %v3705_v57  ;;  %2768 = vmatprep.mubr.bf16.mxu1 %v6437_v44  ;;  %v3715_v44 = vld [vmem:[#allocation2 + $0x120] sm:$0xff]   ;;  %v3724_v57 = vld [vmem:[#allocation2 + $0x190] sm:$0xff]  }
 0x18f   :  { %3372 = vmatprep.subr.bf16.mxu1 %v3706_v63  ;;  %v3725_v63 = vld [vmem:[#allocation2 + $0x148] sm:$0xff]  }
 0x190   :  { %3333 = vmatpush3.bf16.msra.mxu0 %v3707_v26  ;;  %v3727_v26 = vld [vmem:[#allocation2 + $0x108] sm:$0xff]  }
 0x191   :  { %3373 = vmatpush3.bf16.msra.mxu1 %v3708_v6  ;;  %3334 = vmatprep.subr.bf16.mxu0 %v3709_v12  ;;  %v3730_v6 = vld [vmem:[#allocation2 + $0x1c0] sm:$0xff]  }
 0x192   :  { %3374 = vmatprep.subr.bf16.mxu1 %v3710_v0  ;;  %v3732_v12 = vld [vmem:[#allocation2 + $0x180] sm:$0xff]   ;;  %v3733_v0 = vld [vmem:[#allocation2 + $0x278] sm:$0xff]  }
 0x193   :  { %2705 = vmatmul.mubr.bf16.gmra.mxu0 %v6431_v61  ;;  %v3718_v61 = vld [vmem:[#allocation2 + $0x1d8] sm:$0xff]  }
 0x194   :  { %2769 = vmatmul.mubr.bf16.gmra.mxu1 %v6435_v34  ;;  %3335 = vmatpush3.bf16.msra.mxu0 %v3711_v42  ;;  %v3720_v34 = vld [vmem:[#allocation2 + $0x198] sm:$0xff]  }
 0x195   :  { %3375 = vmatpush3.bf16.msra.mxu1 %v3712_v55  ;;  %2712 = vmatprep.mubr.bf16.mxu0 %v6461_v29  ;;  %v3721_v29 = vld [vmem:[#allocation2 + $0x150] sm:$0xff]   ;;  %v3735_v42 = vld [vmem:[#allocation2 + $0x238] sm:$0xff]  }
 0x196   :  { %3336 = vmatprep.subr.bf16.mxu0 %v3713_v53  ;;  %2776 = vmatprep.mubr.bf16.mxu1 %v6465_v50  ;;  %v3723_v50 = vld [vmem:[#allocation2 + $0x110] sm:$0xff]   ;;  %v7313_v55 = vld [vmem:[#allocation61_spill] sm:$0xff] }
 0x197   :  { %3376 = vmatprep.subr.bf16.mxu1 %v3714_v19  ;;  %v3738_v53 = vld [vmem:[#allocation2 + $0x2f0] sm:$0xff]  }
 0x198   :  { %3337 = vmatpush3.bf16.msra.mxu0 %v3715_v44  ;;  %v3740_v19 = vld [vmem:[#allocation2 + $0x2b0] sm:$0xff]   ;;  %v3741_v44 = vld [vmem:[#allocation2 + $0x268] sm:$0xff]  }
 0x199   :  { %3377 = vmatpush3.bf16.msra.mxu1 %v3716_v21  ;;  %3338 = vmatprep.subr.bf16.mxu0 %v3717_v13  ;;  %v3742_v21 = vld [vmem:[#allocation2 + $0x2e8] sm:$0xff]  }
 0x19a   :  { %3378 = vmatprep.subr.bf16.mxu1 %v3718_v61  ;;  %v3743_v13 = vld [vmem:[#allocation2 + $0x228] sm:$0xff]   ;;  %v3746_v61 = vld [vmem:[#allocation2 + $0x2e0] sm:$0xff]  }
 0x19b   :  { %2713 = vmatmul.mubr.bf16.gmra.mxu0 %v6459_v58  ;;  %v3726_v58 = vld [vmem:[#allocation2 + $0x1c8] sm:$0xff]  }
 0x19c   :  { %2777 = vmatmul.mubr.bf16.gmra.mxu1 %v6463_v31  ;;  %3339 = vmatpush3.bf16.msra.mxu0 %v3719_v52  ;;  %v3728_v31 = vld [vmem:[#allocation2 + $0x188] sm:$0xff]   ;;  %v3748_v52 = vld [vmem:[#allocation2 + $0x2a0] sm:$0xff]  }
 0x19d   :  { %3379 = vmatpush3.bf16.msra.mxu1 %v3720_v34  ;;  %2720 = vmatprep.mubr.bf16.mxu0 %v6489_v32  ;;  %v3729_v32 = vld [vmem:[#allocation2 + $0x140] sm:$0xff]   ;;  %v3749_v34 = vld [vmem:[#allocation2 + $0x258] sm:$0xff]  }
 0x19e   :  { %3340 = vmatprep.subr.bf16.mxu0 %v3721_v29  ;;  %2784 = vmatprep.mubr.bf16.mxu1 %v6493_v11  ;;  %v3731_v11 = vld [vmem:[#allocation2 + $0x100] sm:$0xff]   ;;  %v3751_v29 = vld [vmem:[#allocation2 + $0x218] sm:$0xff]  }
 0x19f   :  { %3380 = vmatprep.subr.bf16.mxu1 %v3722_v1  ;;  %v3754_v1 = vld [vmem:[#allocation2 + $0x2d0] sm:$0xff]  }
 0x1a0   :  { %3341 = vmatpush3.bf16.msra.mxu0 %v3723_v50  ;;  %v3756_v50 = vld [vmem:[#allocation2 + $0x290] sm:$0xff]  }
 0x1a1   :  { %3381 = vmatpush3.bf16.msra.mxu1 %v3724_v57  ;;  %3342 = vmatprep.subr.bf16.mxu0 %v3725_v63  ;;  %v3757_v57 = vld [vmem:[#allocation2 + $0x248] sm:$0xff]  }
 0x1a2   :  { %3382 = vmatprep.subr.bf16.mxu1 %v3726_v58  ;;  %v3759_v63 = vld [vmem:[#allocation2 + $0x208] sm:$0xff]   ;;  %v3762_v58 = vld [vmem:[#allocation2 + $0x2c0] sm:$0xff]  }
 0x1a3   :  { %2721 = vmatmul.mubr.bf16.gmra.mxu0 %v6487_v14  ;;  %v3734_v14 = vld [vmem:[#allocation2 + $0x2f8] sm:$0xff]  }
 0x1a4   :  { %2785 = vmatmul.mubr.bf16.gmra.mxu1 %v6491_v22  ;;  %3343 = vmatpush3.bf16.msra.mxu0 %v3727_v26  ;;  %v3736_v22 = vld [vmem:[#allocation2 + $0x2b8] sm:$0xff]   ;;  %v3764_v26 = vld [vmem:[#allocation2 + $0x280] sm:$0xff]  }
 0x1a5   :  { %3383 = vmatpush3.bf16.msra.mxu1 %v3728_v31  ;;  %2824 = vmatprep.mubr.bf16.mxu0 %v6413_v35  ;;  %v3737_v35 = vld [vmem:[#allocation2 + $0x270] sm:$0xff]   ;;  %v3765_v31 = vld [vmem:[#allocation2 + $0x378] sm:$0xff]  }
 0x1a6   :  { %3344 = vmatprep.subr.bf16.mxu0 %v3729_v32  ;;  %2888 = vmatprep.mubr.bf16.mxu1 %v6417_v23  ;;  %v3739_v23 = vld [vmem:[#allocation2 + $0x230] sm:$0xff]  }
 0x1a7   :  { %3384 = vmatprep.subr.bf16.mxu1 %v3730_v6  ;;  %v3767_v32 = vld [vmem:[#allocation2 + $0x370] sm:$0xff]   ;;  %v3771_v6 = vld [vmem:[#allocation2 + $0x360] sm:$0xff]  }
 0x1a8   :  { %3345 = vmatpush3.bf16.msra.mxu0 %v3731_v11 }
 0x1a9   :  { %3385 = vmatpush3.bf16.msra.mxu1 %v3732_v12  ;;  %3410 = vmatprep.subr.bf16.mxu0 %v3733_v0 }
 0x1aa   :  { %3450 = vmatprep.subr.bf16.mxu1 %v3734_v14 }
 0x1ab   :  { %2825 = vmatmul.mubr.bf16.vlgmr.msra.gmra.mxu0 %v7313_v55 }
 0x1ac   :  { %2889 = vmatmul.mubr.bf16.vlgmr.msra.gmra.mxu1 %v6415_v49  ;;  %3411 = vmatpush3.bf16.msra.mxu0 %v3735_v42  ;;  %v3744_v49 = vld [vmem:[#allocation2 + $0x2a8] sm:$0xff]  }
 0x1ad   :  { %3451 = vmatpush3.bf16.msra.mxu1 %v3736_v22  ;;  %2832 = vmatprep.mubr.bf16.mxu0 %v6441_v7  ;;  %v3745_v7 = vld [vmem:[#allocation2 + $0x260] sm:$0xff]  }
 0x1ae   :  { %3412 = vmatprep.subr.bf16.mxu0 %v3737_v35  ;;  %2896 = vmatprep.mubr.bf16.mxu1 %v6445_v5  ;;  %v3747_v5 = vld [vmem:[#allocation2 + $0x220] sm:$0xff]  }
 0x1af   :  { %3452 = vmatprep.subr.bf16.mxu1 %v3738_v53 }
 0x1b0   :  { %3413 = vmatpush3.bf16.msra.mxu0 %v3739_v23 }
 0x1b1   :  { %3453 = vmatpush3.bf16.msra.mxu1 %v3740_v19  ;;  %3414 = vmatprep.subr.bf16.mxu0 %v3741_v44 }
 0x1b2   :  { %3454 = vmatprep.subr.bf16.mxu1 %v3742_v21 }
 0x1b3   :  { %2833 = vmatmul.mubr.bf16.gmra.mxu0 %v6439_v3  ;;  %v3750_v3 = vld [vmem:[#allocation2 + $0x2d8] sm:$0xff]  }
 0x1b4   :  { %2897 = vmatmul.mubr.bf16.gmra.mxu1 %v6443_v62  ;;  %3415 = vmatpush3.bf16.msra.mxu0 %v3743_v13  ;;  %v3752_v62 = vld [vmem:[#allocation2 + $0x298] sm:$0xff]  }
 0x1b5   :  { %3455 = vmatpush3.bf16.msra.mxu1 %v3744_v49  ;;  %2840 = vmatprep.mubr.bf16.mxu0 %v6469_v59  ;;  %v3753_v59 = vld [vmem:[#allocation2 + $0x250] sm:$0xff]  }
 0x1b6   :  { %3416 = vmatprep.subr.bf16.mxu0 %v3745_v7  ;;  %2904 = vmatprep.mubr.bf16.mxu1 %v6473_v36  ;;  %v3755_v36 = vld [vmem:[#allocation2 + $0x210] sm:$0xff]  }
 0x1b7   :  { %3456 = vmatprep.subr.bf16.mxu1 %v3746_v61 }
 0x1b8   :  { %3417 = vmatpush3.bf16.msra.mxu0 %v3747_v5 }
 0x1b9   :  { %3457 = vmatpush3.bf16.msra.mxu1 %v3748_v52  ;;  %3418 = vmatprep.subr.bf16.mxu0 %v3749_v34 }
 0x1ba   :  { %3458 = vmatprep.subr.bf16.mxu1 %v3750_v3 }
 0x1bb   :  { %2841 = vmatmul.mubr.bf16.gmra.mxu0 %v6467_v33  ;;  %v3758_v33 = vld [vmem:[#allocation2 + $0x2c8] sm:$0xff]  }
 0x1bc   :  { %2905 = vmatmul.mubr.bf16.gmra.mxu1 %v6471_v17  ;;  %3419 = vmatpush3.bf16.msra.mxu0 %v3751_v29  ;;  %v3760_v17 = vld [vmem:[#allocation2 + $0x288] sm:$0xff]  }
 0x1bd   :  { %3459 = vmatpush3.bf16.msra.mxu1 %v3752_v62  ;;  %2848 = vmatprep.mubr.bf16.mxu0 %v6497_v56  ;;  %v3761_v56 = vld [vmem:[#allocation2 + $0x240] sm:$0xff]  }
 0x1be   :  { %3420 = vmatprep.subr.bf16.mxu0 %v3753_v59  ;;  %2912 = vmatprep.mubr.bf16.mxu1 %v6501_v15  ;;  %v3763_v15 = vld [vmem:[#allocation2 + $0x200] sm:$0xff]  }
 0x1bf   :  { %3460 = vmatprep.subr.bf16.mxu1 %v3754_v1 }
 0x1c0   :  { %3421 = vmatpush3.bf16.msra.mxu0 %v3755_v36 }
 0x1c1   :  { %3461 = vmatpush3.bf16.msra.mxu1 %v3756_v50  ;;  %3422 = vmatprep.subr.bf16.mxu0 %v3757_v57 }
 0x1c2   :  { %3462 = vmatprep.subr.bf16.mxu1 %v3758_v33 }
 0x1c3   :  { %2849 = vmatmul.mubr.bf16.gmra.mxu0 %v6495_v47  ;;  %v3766_v47 = vld [vmem:[#allocation2 + $0x338] sm:$0xff]  }
 0x1c4   :  { %2913 = vmatmul.mubr.bf16.gmra.mxu1 %v6499_v48  ;;  %3423 = vmatpush3.bf16.msra.mxu0 %v3759_v63  ;;  %v3768_v48 = vld [vmem:[#allocation2 + $0x330] sm:$0xff]  }
 0x1c5   :  { %3463 = vmatpush3.bf16.msra.mxu1 %v3760_v17  ;;  %2952 = vmatprep.mubr.bf16.mxu0 %v6421_v51  ;;  %v3769_v51 = vld [vmem:[#allocation2 + $0x368] sm:$0xff]  }
 0x1c6   :  { %3424 = vmatprep.subr.bf16.mxu0 %v3761_v56  ;;  %3016 = vmatprep.mubr.bf16.mxu1 %v6425_v54  ;;  %v3770_v54 = vld [vmem:[#allocation2 + $0x328] sm:$0xff]  }
 0x1c7   :  { %3464 = vmatprep.subr.bf16.mxu1 %v3762_v58 }
 0x1c8   :  { %3425 = vmatpush3.bf16.msra.mxu0 %v3763_v15 }
 0x1c9   :  { %3465 = vmatpush3.bf16.msra.mxu1 %v3764_v26  ;;  %3490 = vmatprep.subr.bf16.mxu0 %v3765_v31 }
 0x1ca   :  { %3530 = vmatprep.subr.bf16.mxu1 %v3765_v31 }
 0x1cb   :  { %2953 = vmatmul.mubr.bf16.vlgmr.msra.gmra.mxu0 %v6419_v28  ;;  %v3772_v28 = vld [vmem:[#allocation2 + $0x320] sm:$0xff]  }
 0x1cc   :  { %3017 = vmatmul.mubr.bf16.vlgmr.msra.gmra.mxu1 %v6423_v18  ;;  %3491 = vmatpush3.bf16.msra.mxu0 %v3766_v47  ;;  %v3773_v18 = vld [vmem:[#allocation2 + $0x358] sm:$0xff]  }
 0x1cd   :  { %3538 = vmatpush3.bf16.msra.mxu1 %v3766_v47  ;;  %3492 = vmatprep.subr.bf16.mxu0 %v3767_v32 }
 0x1ce   :  { %3531 = vmatprep.subr.bf16.mxu1 %v3767_v32  ;;  %2960 = vmatprep.mubr.bf16.mxu0 %v6449_v24  ;;  %v3774_v24 = vld [vmem:[#allocation2 + $0x318] sm:$0xff]  }
 0x1cf   :  { %3024 = vmatprep.mubr.bf16.mxu1 %v6453_v27  ;;  %v3775_v27 = vld [vmem:[#allocation2 + $0x350] sm:$0xff]  }
 0x1d0   :  { %3493 = vmatpush3.bf16.msra.mxu0 %v3768_v48 }
 0x1d1   :  { %3539 = vmatpush3.bf16.msra.mxu1 %v3768_v48  ;;  %3494 = vmatprep.subr.bf16.mxu0 %v3769_v51 }
 0x1d2   :  { %3532 = vmatprep.subr.bf16.mxu1 %v3769_v51 }
 0x1d3   :  { %2961 = vmatmul.mubr.bf16.gmra.mxu0 %v6447_v41  ;;  %v3776_v41 = vld [vmem:[#allocation2 + $0x310] sm:$0xff]  }
 0x1d4   :  { %3025 = vmatmul.mubr.bf16.gmra.mxu1 %v6451_v46  ;;  %3495 = vmatpush3.bf16.msra.mxu0 %v3770_v54  ;;  %v3777_v46 = vld [vmem:[#allocation2 + $0x348] sm:$0xff]  }
 0x1d5   :  { %3540 = vmatpush3.bf16.msra.mxu1 %v3770_v54  ;;  %3496 = vmatprep.subr.bf16.mxu0 %v3771_v6 }
 0x1d6   :  { %3533 = vmatprep.subr.bf16.mxu1 %v3771_v6  ;;  %2968 = vmatprep.mubr.bf16.mxu0 %v6477_v8  ;;  %v3778_v8 = vld [vmem:[#allocation2 + $0x308] sm:$0xff]  }
 0x1d7   :  { %3032 = vmatprep.mubr.bf16.mxu1 %v6481_v45  ;;  %v3779_v45 = vld [vmem:[#allocation2 + $0x340] sm:$0xff]  }
 0x1d8   :  { %3497 = vmatpush3.bf16.msra.mxu0 %v3772_v28 }
 0x1d9   :  { %3541 = vmatpush3.bf16.msra.mxu1 %v3772_v28  ;;  %3498 = vmatprep.subr.bf16.mxu0 %v3773_v18 }
 0x1da   :  { %3534 = vmatprep.subr.bf16.mxu1 %v3773_v18 }
 0x1db   :  { %2969 = vmatmul.mubr.bf16.gmra.mxu0 %v6475_v10  ;;  %v3780_v10 = vld [vmem:[#allocation2 + $0x300] sm:$0xff]  }
 0x1dc   :  { %3033 = vmatmul.mubr.bf16.gmra.mxu1 %v6479_v20  ;;  %3499 = vmatpush3.bf16.msra.mxu0 %v3774_v24 }
 0x1dd   :  { %3542 = vmatpush3.bf16.msra.mxu1 %v3774_v24  ;;  %3500 = vmatprep.subr.bf16.mxu0 %v3775_v27 }
 0x1de   :  { %3535 = vmatprep.subr.bf16.mxu1 %v3775_v27  ;;  %2976 = vmatprep.mubr.bf16.mxu0 %v6505_v37 }
 0x1df   :  { %3040 = vmatprep.mubr.bf16.mxu1 %v6509_v43 }
 0x1e0   :  { %3501 = vmatpush3.bf16.msra.mxu0 %v3776_v41 }
 0x1e1   :  { %3543 = vmatpush3.bf16.msra.mxu1 %v3776_v41  ;;  %3502 = vmatprep.subr.bf16.mxu0 %v3777_v46 }
 0x1e2   :  { %3536 = vmatprep.subr.bf16.mxu1 %v3777_v46 }
 0x1e3   :  { %2977 = vmatmul.mubr.bf16.gmra.mxu0 %v6503_v30 }
 0x1e4   :  { %3041 = vmatmul.mubr.bf16.gmra.mxu1 %v6507_v2  ;;  %3503 = vmatpush3.bf16.msra.mxu0 %v3778_v8 }
 0x1e5   :  { %3544 = vmatpush3.bf16.msra.mxu1 %v3778_v8  ;;  %3504 = vmatprep.subr.bf16.mxu0 %v3779_v45 }
 0x1e6   :  { %3537 = vmatprep.subr.bf16.mxu1 %v3779_v45  ;;  %3080 = vmatprep.mubr.bf16.mxu0 %v6429_v9 }
 0x1e7   :  { %3096 = vmatprep.mubr.bf16.mxu1 %v6485_v39 }
 0x1e8   :  { %3505 = vmatpush3.bf16.msra.mxu0 %v3780_v10 }
 0x1e9   :  { %3545 = vmatpush3.bf16.msra.mxu1 %v3780_v10 }
 0x1eb   :  { %3081 = vmatmul.mubr.bf16.vlgmr.msra.gmra.mxu0 %v6427_v38 }
 0x1ec   :  { %3097 = vmatmul.mubr.bf16.vlgmr.msra.gmra.mxu1 %v6483_v16  ;;  %3088 = vmatprep.mubr.bf16.mxu0 %v6457_v40 }
 0x1ed   :  { %3104 = vmatprep.mubr.bf16.mxu1 %v6513_v25 }
 0x1f3   :  { %3089 = vmatmul.mubr.bf16.gmra.mxu0 %v6455_v60 }
 0x1f4   :  { %3105 = vmatmul.mubr.bf16.gmra.mxu1 %v6511_v4 }
 0x24b   :  { %v3266_v20 = vpop.f32.mrf.mxu0 }
 0x24c   :  { %v3306_v30 = vpop.f32.mrf.mxu1 }
 0x24d   :  { %v3267_v37 = vpop.f32.mrf.mxu0 }
 0x24e   :  { %v3268_v9 = vadd.f32 %v3267_v37, %v3266_v20  ;;  %v3307_v2 = vpop.f32.mrf.mxu1 }
 0x24f   :  { %v3308_v39 = vadd.f32 %v3307_v2, %v3306_v30  ;;  %v3269_v43 = vpop.f32.mrf.mxu0 }
 0x250   :  { %v3309_v11 = vpop.f32.mrf.mxu1 }
 0x251   :  { %v6569_v12 = vadd.f32 %v3308_v39, %v3268_v9  ;;  %v3270_v38 = vpop.f32.mrf.mxu0 }
 0x252   :  { %v3271_v16 = vadd.f32 %v3270_v38, %v3269_v43  ;;  %v3310_v0 = vpop.f32.mrf.mxu1 }
 0x253   :  { %v3311_v40 = vadd.f32 %v3310_v0, %v3309_v11  ;;  %v3272_v14 = vpop.f32.mrf.mxu0 }
 0x254   :  { %v3312_v25 = vpop.f32.mrf.mxu1 }
 0x255   :  { %v6571_v42 = vadd.f32 %v3311_v40, %v3271_v16  ;;  %v3273_v60 = vpop.f32.mrf.mxu0 }
 0x256   :  { %v3274_v4 = vadd.f32 %v3273_v60, %v3272_v14  ;;  %v3313_v55 = vpop.f32.mrf.mxu1 }
 0x257   :  { %v3314_v22 = vadd.f32 %v3313_v55, %v3312_v25  ;;  %v3275_v35 = vpop.f32.mrf.mxu0 }
 0x258   :  { %v3315_v53 = vpop.f32.mrf.mxu1 }
 0x259   :  { %v6573_v23 = vadd.f32 %v3314_v22, %v3274_v4  ;;  %v3276_v19 = vpop.f32.mrf.mxu0 }
 0x25a   :  { %v3277_v44 = vadd.f32 %v3276_v19, %v3275_v35  ;;  %v3316_v21 = vpop.f32.mrf.mxu1 }
 0x25b   :  { %v3317_v13 = vadd.f32 %v3316_v21, %v3315_v53  ;;  %v3278_v49 = vpop.f32.mrf.mxu0 }
 0x25c   :  { %v3318_v7 = vpop.f32.mrf.mxu1 }
 0x25d   :  { %v6575_v61 = vadd.f32 %v3317_v13, %v3277_v44  ;;  %v3279_v5 = vpop.f32.mrf.mxu0 }
 0x25e   :  { %v3280_v52 = vadd.f32 %v3279_v5, %v3278_v49  ;;  %v3319_v34 = vpop.f32.mrf.mxu1 }
 0x25f   :  { %v3320_v3 = vadd.f32 %v3319_v34, %v3318_v7  ;;  %v3281_v29 = vpop.f32.mrf.mxu0 }
 0x260   :  { %v3321_v62 = vpop.f32.mrf.mxu1 }
 0x261   :  { %v6577_v59 = vadd.f32 %v3320_v3, %v3280_v52  ;;  %v3282_v1 = vpop.f32.mrf.mxu0 }
 0x262   :  { %v3283_v36 = vadd.f32 %v3282_v1, %v3281_v29  ;;  %v3322_v50 = vpop.f32.mrf.mxu1 }
 0x263   :  { %v3323_v57 = vadd.f32 %v3322_v50, %v3321_v62  ;;  %v3284_v33 = vpop.f32.mrf.mxu0 }
 0x264   :  { %v3324_v63 = vpop.f32.mrf.mxu1 }
 0x265   :  { %v6579_v17 = vadd.f32 %v3323_v57, %v3283_v36  ;;  %v3285_v56 = vpop.f32.mrf.mxu0 }
 0x266   :  { %v3286_v58 = vadd.f32 %v3285_v56, %v3284_v33  ;;  %v3325_v15 = vpop.f32.mrf.mxu1 }
 0x267   :  { %v3326_v26 = vadd.f32 %v3325_v15, %v3324_v63  ;;  %v3287_v31 = vpop.f32.mrf.mxu0 }
 0x268   :  { %v3327_v47 = vpop.f32.mrf.mxu1 }
 0x269   :  { %v6581_v32 = vadd.f32 %v3326_v26, %v3286_v58  ;;  %v3288_v48 = vpop.f32.mrf.mxu0 }
 0x26a   :  { %v3328_v51 = vpop.f32.mrf.mxu1 }
 0x26b   :  { %v3346_v54 = vpop.f32.mrf.mxu0 }
 0x26c   :  { %v3386_v6 = vpop.f32.mrf.mxu1 }
 0x26d   :  { %v3347_v28 = vpop.f32.mrf.mxu0 }
 0x26e   :  { %v3387_v18 = vpop.f32.mrf.mxu1  ;;  %v3348_v31 = vadd.f32 %v3347_v28, %v3346_v54 }
 0x26f   :  { %v3349_v24 = vpop.f32.mrf.mxu0 }
 0x270   :  { %v6583_v27 = vpop.f32.mrf.mxu1 }
 0x271   :  { %v3350_v41 = vpop.f32.mrf.mxu0 }
 0x272   :  { %v6585_v46 = vpop.f32.mrf.mxu1 }
 0x273   :  { %v6587_v8 = vpop.f32.mrf.mxu0 }
 0x274   :  { %v6589_v45 = vpop.f32.mrf.mxu1 }
 0x275   :  { %v6591_v10 = vpop.f32.mrf.mxu0 }
 0x276   :  { %v6593_v20 = vpop.f32.mrf.mxu1 }
 0x277   :  { %v6595_v30 = vpop.f32.mrf.mxu0 }
 0x278   :  { %v6597_v37 = vpop.f32.mrf.mxu1 }
 0x279   :  { %7314 = vst [vmem:[#allocation65_spill] sm:$0xff] %v6597_v37  ;;  %v6599_v9 = vpop.f32.mrf.mxu0 }
 0x27a   :  { %v6601_v2 = vpop.f32.mrf.mxu1 }
 0x27b   :  { %7315 = vst [vmem:[#allocation27_spill] sm:$0xff] %v6601_v2  ;;  %v3358_v39 = vpop.f32.mrf.mxu0 }
 0x27c   :  { %v3398_v43 = vpop.f32.mrf.mxu1 }
 0x27d   :  { %v3359_v11 = vpop.f32.mrf.mxu0 }
 0x27e   :  { %v3399_v38 = vpop.f32.mrf.mxu1  ;;  %v3360_v48 = vadd.f32 %v3359_v11, %v3358_v39 }
 0x27f   :  { %v3361_v16 = vpop.f32.mrf.mxu0 }
 0x280   :  { %v6603_v0 = vpop.f32.mrf.mxu1 }
 0x281   :  { %v3362_v40 = vpop.f32.mrf.mxu0 }
 0x282   :  { %v3402_v14 = vpop.f32.mrf.mxu1 }
 0x283   :  { %v3364_v25 = vpop.f32.mrf.mxu0 }
 0x284   :  { %v6605_v60 = vpop.f32.mrf.mxu1 }
 0x285   :  { %v3365_v4 = vpop.f32.mrf.mxu0 }
 0x286   :  { %v6607_v55 = vpop.f32.mrf.mxu1 }
 0x287   :  { %v3367_v22 = vpop.f32.mrf.mxu0 }
 0x288   :  { %v3407_v35 = vpop.f32.mrf.mxu1  ;;  %v3351_v22 = vadd.f32 %v3350_v41, %v3349_v24  ;;  %v3391_v24 = vadd.f32 %v6585_v46, %v6583_v27  ;;  %v3366_v41 = vadd.f32 %v3365_v4, %v3364_v25 }
 0x289   :  { %v3368_v53 = vpop.f32.mrf.mxu0 }
 0x28a   :  { %v3408_v19 = vpop.f32.mrf.mxu1  ;;  %v2830_v2 = vadd.f32 %v3351_v22, %v6571_v42 }
 0x28b   :  { %v3426_v44 = vpop.f32.mrf.mxu0  ;;  %v2827_v19 = vadd.f32 %v3348_v31, %v6569_v12  ;;  %v3354_v12 = vadd.f32 %v6591_v10, %v6587_v8  ;;  %v3394_v8 = vadd.f32 %v6593_v20, %v6589_v45 }
 0x28c   :  { %v3466_v21 = vpop.f32.mrf.mxu1 }
 0x28d   :  { %v3427_v13 = vpop.f32.mrf.mxu0  ;;  %v2835_v46 = vadd.f32 %v3354_v12, %v6573_v23 }
 0x28e   :  { %v3467_v49 = vpop.f32.mrf.mxu1  ;;  %v3428_v37 = vadd.f32 %v3427_v13, %v3426_v44  ;;  %v3403_v13 = vadd.f32 %v3402_v14, %v6603_v0 }
 0x28f   :  { %v3429_v7 = vpop.f32.mrf.mxu0 }
 0x290   :  { %v6609_v5 = vpop.f32.mrf.mxu1 }
 0x291   :  { %v3430_v52 = vpop.f32.mrf.mxu0 }
 0x292   :  { %v3470_v34 = vpop.f32.mrf.mxu1 }
 0x293   :  { %v3432_v3 = vpop.f32.mrf.mxu0 }
 0x294   :  { %v6611_v29 = vpop.f32.mrf.mxu1 }
 0x295   :  { %7316 = vst [vmem:[#allocation55_spill] sm:$0xff] %v6611_v29  ;;  %v3433_v62 = vpop.f32.mrf.mxu0 }
 0x296   :  { %v6613_v1 = vpop.f32.mrf.mxu1 }
 0x297   :  { %7317 = vst [vmem:[#allocation54_spill] sm:$0xff] %v6613_v1  ;;  %v6615_v36 = vpop.f32.mrf.mxu0  ;;  %v3363_v1 = vadd.f32 %v3362_v40, %v3361_v16  ;;  %v2894_v16 = vadd.f32 %v3391_v24, %v2830_v2  ;;  %v3468_v40 = vadd.f32 %v3467_v49, %v3466_v21  ;;  %v3406_v2 = vadd.f32 %v6607_v55, %v6605_v60 }
 0x298   :  { %7318 = vst [vmem:[#allocation58_spill] sm:$0xff] %v6615_v36  ;;  %v6617_v50 = vpop.f32.mrf.mxu1  ;;  %v3388_v36 = vadd.f32 %v3387_v18, %v3386_v6  ;;  %v3471_v21 = vadd.f32 %v3470_v34, %v6609_v5  ;;  %v3434_v49 = vadd.f32 %v3433_v62, %v3432_v3 }
 0x299   :  { %7319 = vst [vmem:[#allocation57_spill] sm:$0xff] %v6617_v50  ;;  %v6619_v57 = vpop.f32.mrf.mxu0 }
 0x29a   :  { %7320 = vst [vmem:[#allocation28_spill] sm:$0xff] %v6619_v57  ;;  %v6621_v33 = vpop.f32.mrf.mxu1  ;;  %v2843_v57 = vadd.f32 %v3360_v48, %v6577_v59  ;;  %v2891_v11 = vadd.f32 %v3388_v36, %v2827_v19  ;;  %v2846_v59 = vadd.f32 %v3363_v1, %v6579_v17  ;;  %v3357_v17 = vadd.f32 %v6599_v9, %v6595_v30 }
 0x29b   :  { %7321 = vst [vmem:[#allocation14_spill] sm:$0xff] %v6621_v33  ;;  %v3438_v63 = vpop.f32.mrf.mxu0  ;;  %v3400_v33 = vadd.f32 %v3399_v38, %v3398_v43  ;;  %v3431_v43 = vadd.f32 %v3430_v52, %v3429_v7  ;;  %v2899_v9 = vadd.f32 %v3394_v8, %v2835_v46 }
 0x29c   :  { %v3478_v56 = vpop.f32.mrf.mxu1  ;;  %v2955_v42 = vadd.f32 %v3428_v37, %v2891_v11  ;;  %v2910_v25 = vadd.f32 %v3403_v13, %v2846_v59  ;;  %v2851_v37 = vadd.f32 %v3366_v41, %v6581_v32  ;;  %v7322_v32 = vld [vmem:[#allocation65_spill] sm:$0xff]  ;;  %v7324_v62 = vld [vmem:[#allocation55_spill] sm:$0xff] }
 0x29d   :  { %v3439_v58 = vpop.f32.mrf.mxu0  ;;  %v2907_v18 = vadd.f32 %v3400_v33, %v2843_v57  ;;  %v2958_v0 = vadd.f32 %v3431_v43, %v2894_v16  ;;  %v2838_v57 = vadd.f32 %v3357_v17, %v6575_v61  ;;  %v7323_v33 = vld [vmem:[#allocation27_spill] sm:$0xff]  ;;  %v2963_v3 = vadd.f32 %v3434_v49, %v2899_v9 }
 0x29e   :  { %v3479_v15 = vpop.f32.mrf.mxu1  ;;  %v3440_v28 = vadd.f32 %v3439_v58, %v3438_v63  ;;  %v3019_v4 = vadd.f32 %v3468_v40, %v2955_v42  ;;  %v7325_v48 = vld [vmem:[#allocation54_spill] sm:$0xff] }
 0x29f   :  { %v3441_v26 = vpop.f32.mrf.mxu0  ;;  %v3480_v63 = vadd.f32 %v3479_v15, %v3478_v56  ;;  %v3397_v56 = vadd.f32 %v7323_v33, %v7322_v32  ;;  %v2915_v15 = vadd.f32 %v3406_v2, %v2851_v37 }
 0x2a0   :  { %v3481_v47 = vpop.f32.mrf.mxu1  ;;  %v2971_v36 = vadd.f32 %v3440_v28, %v2907_v18  ;;  %v7328_v40 = vld [vmem:[#allocation57_spill] sm:$0xff] }
 0x2a1   :  { %v3442_v51 = vpop.f32.mrf.mxu0  ;;  %v7327_v22 = vld [vmem:[#allocation28_spill] sm:$0xff]  ;;  %v2902_v24 = vadd.f32 %v3397_v56, %v2838_v57 }
 0x2a2   :  { %v3482_v35 = vpop.f32.mrf.mxu1  ;;  %v3443_v58 = vadd.f32 %v3442_v51, %v3441_v26  ;;  %v3035_v52 = vadd.f32 %v3480_v63, %v2971_v36  ;;  %v3022_v26 = vadd.f32 %v3471_v21, %v2958_v0  ;;  %v3474_v51 = vadd.f32 %v7325_v48, %v7324_v62 }
 0x2a3   :  { %v3444_v53 = vpop.f32.mrf.mxu0  ;;  %v3483_v31 = vadd.f32 %v3482_v35, %v3481_v47 }
 0x2a4   :  { %v6624_v50 = vpop.f32.mrf.mxu1  ;;  %v2974_v45 = vadd.f32 %v3443_v58, %v2910_v25  ;;  %v3027_v41 = vadd.f32 %v3474_v51, %v2963_v3 }
 0x2a5   :  { %v3445_v29 = vpop.f32.mrf.mxu0 }
 0x2a6   :  { %v3485_v54 = vpop.f32.mrf.mxu1  ;;  %v3446_v20 = vadd.f32 %v3445_v29, %v3444_v53  ;;  %v7326_v29 = vld [vmem:[#allocation58_spill] sm:$0xff]  ;;  %v3038_v28 = vadd.f32 %v3483_v31, %v2974_v45 }
 0x2a7   :  { %v3447_v39 = vpop.f32.mrf.mxu0  ;;  %v3437_v53 = vadd.f32 %v7327_v22, %v7326_v29  ;;  %v3486_v11 = vadd.f32 %v3485_v54, %v6624_v50 }
 0x2a8   :  { %v3487_v6 = vpop.f32.mrf.mxu1  ;;  %v2979_v39 = vadd.f32 %v3446_v20, %v2915_v15 }
 0x2a9   :  { %v3448_v38 = vpop.f32.mrf.mxu0  ;;  %v2966_v43 = vadd.f32 %v3437_v53, %v2902_v24 }
 0x2aa   :  { %v3488_v44 = vpop.f32.mrf.mxu1  ;;  %v3043_v50 = vadd.f32 %v3486_v11, %v2979_v39 }
 0x2ab   :  { %v3506_v27 = vpop.f32.mrf.mxu0  ;;  %v7329_v44 = vld [vmem:[#allocation14_spill] sm:$0xff] }
 0x2ac   :  { %v3518_v10 = vpop.f32.mrf.mxu1  ;;  %v3477_v13 = vadd.f32 %v7329_v44, %v7328_v40 }
 0x2ad   :  { %v3507_v14 = vpop.f32.mrf.mxu0 }
 0x2ae   :  { %v3508_v23 = vadd.f32 %v3507_v14, %v3506_v27  ;;  %v3519_v7 = vpop.f32.mrf.mxu1  ;;  %v3030_v46 = vadd.f32 %v3477_v13, %v2966_v43 }
 0x2af   :  { %v3520_v1 = vadd.f32 %v3519_v7, %v3518_v10  ;;  %v3509_v30 = vpop.f32.mrf.mxu0 }
 0x2b0   :  { %v3083_v60 = vadd.f32 %v3508_v23, %v3019_v4  ;;  %v3521_v55 = vpop.f32.mrf.mxu1 }
 0x2b1   :  { %v3099_v5 = vadd.f32 %v3520_v1, %v3035_v52  ;;  %v3510_v34 = vpop.f32.mrf.mxu0 }
 0x2b2   :  { %3112 = vst [vmem:[%s6678_s4] sm:$0xff] %v3083_v60  ;;  %v3511_v61 = vadd.f32 %v3510_v34, %v3509_v30  ;;  %v3522_v19 = vpop.f32.mrf.mxu1 }
 0x2b3   :  { %3116 = vst [vmem:[%s6678_s4 + $0x20] sm:$0xff] %v3099_v5  ;;  %v3523_v47 = vadd.f32 %v3522_v19, %v3521_v55  ;;  %v3512_v35 = vpop.f32.mrf.mxu0 }
 0x2b4   :  { %v3086_v12 = vadd.f32 %v3511_v61, %v3022_v26  ;;  %v3524_v6 = vpop.f32.mrf.mxu1 }
 0x2b5   :  { %v3102_v18 = vadd.f32 %v3523_v47, %v3038_v28  ;;  %v3513_v59 = vpop.f32.mrf.mxu0 }
 0x2b6   :  { %3113 = vst [vmem:[%s6678_s4 + $0x8] sm:$0xff] %v3086_v12  ;;  %v3514_v38 = vadd.f32 %v3513_v59, %v3512_v35  ;;  %v3525_v16 = vpop.f32.mrf.mxu1 }
 0x2b7   :  { %3117 = vst [vmem:[%s6678_s4 + $0x28] sm:$0xff] %v3102_v18  ;;  %v3526_v54 = vadd.f32 %v3525_v16, %v3524_v6  ;;  %v3515_v42 = vpop.f32.mrf.mxu0 }
 0x2b8   :  { %v3091_v36 = vadd.f32 %v3514_v38, %v3027_v41  ;;  %v3527_v63 = vpop.f32.mrf.mxu1 }
 0x2b9   :  { %v3107_v58 = vadd.f32 %v3526_v54, %v3043_v50  ;;  %v3516_v27 = vpop.f32.mrf.mxu0 }
 0x2ba   :  { %3114 = vst [vmem:[%s6678_s4 + $0x10] sm:$0xff] %v3091_v36  ;;  %v3517_v8 = vadd.f32 %v3516_v27, %v3515_v42  ;;  %v3528_v17 = vpop.f32.mrf.mxu1 }
 0x2bb   :  { %3118 = vst [vmem:[%s6678_s4 + $0x30] sm:$0x1] %v3107_v58 }
 0x2bc   :  { %v3094_v10 = vadd.f32 %v3517_v8, %v3030_v46 }
 0x2be   :  { %3115 = vst [vmem:[%s6678_s4 + $0x18] sm:$0xff] %v3094_v10 }
 0x2bf   :  { %3123 = vsyncmov [#allocation3] }
 0x2c2   :  { %s3124_s27 = vpop.sfrf %3123 }
 0x2c3   :  { %p3249_p0 = scmp.ne.s32.totalorder %s3124_s27, 0 }
 0x2c5   :  { %3128 = shalt.err (%p3249_p0)  }

</bundles_post_ra>
